<compile_context>
chip_gen: v7x
topology: tpu7x:2x2x1
jax: 0.10.0
libtpu: 0.0.40
codegen_flags: <defaults>
</compile_context>

<pallas_src>
import math

import jax
import jax.numpy as jnp
from jax.experimental import pallas as pl
from jax.experimental.pallas import tpu as pltpu

# ------------- scaled-down config (original: dim=4096, 32 layers, ...) ------
B = 2
SEQ = 8
BS = B * SEQ
MAX_SEQ = 16
DIM = 128
N_HEADS = 4
HEAD_DIM = DIM // N_HEADS            # 32
HALF = HEAD_DIM // 2                 # 16
N_LAYERS = 4
QUERY_LAYER = 2                      # last QUERY_LAYER layers get visual prompt
QUERY_LEN = 1
VOCAB = 512
VIS_DIM = 64                         # stand-in for ImageBind's 1024-dim feature
FFN_HIDDEN = 256
BRIDGE_HIDDEN = 4 * DIM
NORM_EPS = 1e-6
SCALE = 1.0 / math.sqrt(HEAD_DIM)
NEG_INF = -1e30                      # finite mask value (no -inf NaN hazards)

_VMEM = pl.BlockSpec(memory_space=pltpu.MemorySpace.VMEM)


# ============================ in-kernel helpers =============================

def _rms(x):
    # RMSNorm without gamma (gamma is folded into the following weight rows).
    return x * jax.lax.rsqrt(jnp.mean(x * x, axis=-1, keepdims=True) + NORM_EPS)


def _softmax_rows(s):
    m = jnp.max(s, axis=-1, keepdims=True)
    p = jnp.exp(s - m)
    l = jnp.sum(p, axis=-1, keepdims=True)
    return p * pl.reciprocal(l, approx=True)


def _rot_half_heads(x):
    # rotate-half within each head: [-x_hi, x_lo] per 32-lane head block.
    parts = []
    for h in range(N_HEADS):
        lo = x[:, h * HEAD_DIM:h * HEAD_DIM + HALF]
        hi = x[:, h * HEAD_DIM + HALF:(h + 1) * HEAD_DIM]
        parts.append(-hi)
        parts.append(lo)
    return jnp.concatenate(parts, axis=-1)


# ============================ Pallas kernels ================================

def _llama_fused_kernel(x_ref, cos_ref, sin_ref, mask_ref,
                        wqkv_ref, bqkv_ref, wo_ref, bo_ref,
                        w13_ref, b13_ref, w2_ref, b2_ref,
                        adv_ref, hw_ref,
                        logits_ref, h_ref):
    layer = pl.program_id(0)

    @pl.when(layer == 0)
    def _():
        h_ref[...] = x_ref[...]

    x = h_ref[...]                                          # [BS, D] f32

    # ---------------- attention (attn_norm gamma folded into wqkv) ---------
    xn = _rms(x)
    qkv = jnp.dot(xn.astype(jnp.bfloat16), wqkv_ref[0],
                  preferred_element_type=jnp.float32) + bqkv_ref[0]
    q = qkv[:, 0 * DIM:1 * DIM]
    k = qkv[:, 1 * DIM:2 * DIM]
    v = qkv[:, 2 * DIM:3 * DIM]

    # rotate-half RoPE (Wq/Wk columns pre-permuted to this convention)
    cosf = cos_ref[...]
    sinf = sin_ref[...]
    q = q * cosf + _rot_half_heads(q) * sinf
    k = k * cosf + _rot_half_heads(k) * sinf

    neg = mask_ref[...]                                     # block-diag causal
    heads = []
    for h in range(N_HEADS):
        sl = slice(h * HEAD_DIM, (h + 1) * HEAD_DIM)
        qh = q[:, sl].astype(jnp.bfloat16)
        kh = k[:, sl].astype(jnp.bfloat16)
        vh = v[:, sl].astype(jnp.bfloat16)
        s = jax.lax.dot_general(qh, kh, (((1,), (1,)), ((), ())),
                                preferred_element_type=jnp.float32) * SCALE
        p = _softmax_rows(s + neg)
        heads.append(jnp.dot(p.astype(jnp.bfloat16), vh,
                             preferred_element_type=jnp.float32))

    # Gated visual-prefix adapter contribution: with QUERY_LEN == 1 the
    # adapter softmax is identically 1, so the contribution per head is just
    # tanh(gate_h) * (adapter @ Wv)_h broadcast over positions.  It is
    # precomputed per layer (zero rows for non-adapter layers) and added
    # before the output projection.
    attn = jnp.concatenate(heads, axis=-1) + adv_ref[0]     # [BS, D]
    attn = jnp.dot(attn.astype(jnp.bfloat16), wo_ref[0],
                   preferred_element_type=jnp.float32) + bo_ref[0]
    h1 = x + attn

    # ---------------- SwiGLU FFN (ffn_norm gamma folded into w13) ----------
    hn = _rms(h1)
    h13 = jnp.dot(hn.astype(jnp.bfloat16), w13_ref[0],
                  preferred_element_type=jnp.float32) + b13_ref[0]
    a = h13[:, :FFN_HIDDEN]
    b3 = h13[:, FFN_HIDDEN:]
    g = (a * jax.nn.sigmoid(a)) * b3
    ffn = jnp.dot(g.astype(jnp.bfloat16), w2_ref[0],
                  preferred_element_type=jnp.float32) + b2_ref[0]
    h_ref[...] = h1 + ffn

    # ---------------- final RMSNorm + vocab head (fused, last step) --------
    @pl.when(layer == pl.num_programs(0) - 1)
    def _():
        hn2 = _rms(h_ref[...])
        logits_ref[...] = jnp.dot(hn2.astype(jnp.bfloat16), hw_ref[...],
                                  preferred_element_type=jnp.float32)


def _bridge_kernel(feat_ref, pw_ref, pb_ref,
                   w13_1_ref, w2_1_ref, w13_2_ref, w2_2_ref,
                   w13_3_ref, w2_3_ref, o_ref):
    # F.normalize(dim=-1) (+ input-weight scale folded into proj_w) + proj +
    # 3 RMSNorm/SwiGLU bridge blocks (bridge norms folded into w13 rows).
    f = feat_ref[...]
    ss = jnp.sum(f * f, axis=-1, keepdims=True)
    f = f * jax.lax.rsqrt(jnp.maximum(ss, 1e-24))
    x = jnp.dot(f.astype(jnp.bfloat16), pw_ref[...],
                preferred_element_type=jnp.float32) + pb_ref[...]
    for w13_ref, w2_ref in ((w13_1_ref, w2_1_ref),
                            (w13_2_ref, w2_2_ref),
                            (w13_3_ref, w2_3_ref)):
        xn = _rms(x)
        h13 = jnp.dot(xn.astype(jnp.bfloat16), w13_ref[...],
                      preferred_element_type=jnp.float32)
        a = h13[:, :BRIDGE_HIDDEN]
        b3 = h13[:, BRIDGE_HIDDEN:]
        g = (a * jax.nn.sigmoid(a)) * b3
        x = x + jnp.dot(g.astype(jnp.bfloat16), w2_ref[...],
                        preferred_element_type=jnp.float32)
    o_ref[...] = x


# ============================ kernel wrappers ===============================

def llama_forward_fused(prep, h0, adv):
    """Single fused pallas_call over all transformer layers + vocab head."""

    def lyr(*shape):
        n = len(shape)
        return pl.BlockSpec((1,) + shape, lambda l, n=n: (l,) + (0,) * n)

    def const(*shape):
        n = len(shape)
        return pl.BlockSpec(shape, lambda l, n=n: (0,) * n)

    in_specs = [
        const(BS, DIM),                     # x (token embeddings), resident
        const(BS, DIM),                     # cos
        const(BS, DIM),                     # sin
        const(BS, BS),                      # block-diagonal causal mask
        lyr(DIM, 3 * DIM),                  # wqkv (per layer)
        lyr(1, 3 * DIM),                    # bqkv
        lyr(DIM, DIM),                      # wo
        lyr(1, DIM),                        # bo
        lyr(DIM, 2 * FFN_HIDDEN),           # w13
        lyr(1, 2 * FFN_HIDDEN),             # b13
        lyr(FFN_HIDDEN, DIM),               # w2
        lyr(1, DIM),                        # b2
        lyr(BS, DIM),                       # gated adapter-value contribution
        const(DIM, VOCAB),                  # vocab head (final norm folded)
    ]
    args = (h0, prep['rope_cos'], prep['rope_sin'], prep['mask'],
            prep['wqkv'], prep['bqkv'], prep['wo'], prep['bo'],
            prep['w13'], prep['b13'], prep['w2'], prep['b2'],
            adv, prep['head_w'])

    flops = int(N_LAYERS * (2 * BS * DIM * (3 * DIM + DIM + 2 * FFN_HIDDEN)
                            + 2 * BS * FFN_HIDDEN * DIM
                            + 4 * BS * BS * DIM)
                + 2 * BS * DIM * VOCAB)
    trans = int(N_LAYERS * (N_HEADS * BS * BS + BS * FFN_HIDDEN + 4 * BS))
    bytes_acc = int(sum(int(a.size) * a.dtype.itemsize for a in args)
                    + BS * VOCAB * 4)

    return pl.pallas_call(
        _llama_fused_kernel,
        out_shape=jax.ShapeDtypeStruct((BS, VOCAB), jnp.float32),
        grid_spec=pltpu.PrefetchScalarGridSpec(
            num_scalar_prefetch=0,
            grid=(N_LAYERS,),
            in_specs=in_specs,
            out_specs=pl.BlockSpec((BS, VOCAB), lambda l: (0, 0)),
            scratch_shapes=[pltpu.VMEM((BS, DIM), jnp.float32)],
        ),
        compiler_params=pltpu.CompilerParams(
            dimension_semantics=("arbitrary",)),
        cost_estimate=pl.CostEstimate(flops=flops, transcendentals=trans,
                                      bytes_accessed=bytes_acc),
    )(*args)


def bridge_forward(prep, img_feats):
    # TODO(synk): ImageBind/x2touch backbone and the faiss KNN cache are not
    # translated; `img_feats` stands in for image_bind({'vision': imgs}).
    b1, b2, b3 = prep['bridge']
    return pl.pallas_call(
        _bridge_kernel,
        out_shape=jax.ShapeDtypeStruct((img_feats.shape[0], DIM), jnp.float32),
        in_specs=[_VMEM] * 9,
        out_specs=_VMEM,
    )(img_feats, prep['proj_w'], prep['proj_b'],
      b1['w13'], b1['w2'], b2['w13'], b2['w2'], b3['w13'], b3['w2'])


# ============================ forward (JAX glue) ============================

def forward(prep, tokens, labels, img_feats):
    visual = bridge_forward(prep, img_feats)                 # [B, DIM]

    h0 = prep['tok_emb'][tokens].reshape(BS, DIM)            # embedding gather

    # Per-layer gated adapter value contribution (QUERY_LEN == 1 -> softmax
    # over a single key is 1): tanh(gate) already folded into wv_gate.
    prefix = prep['prefix_query'].reshape(QUERY_LAYER, DIM)
    adapter = visual[None, :, :] + prefix[:, None, :]        # [QL, B, D]
    adv_back = jnp.einsum('lbd,lde->lbe', adapter, prep['wv_gate'])
    adv_back = jnp.repeat(adv_back, SEQ, axis=1)             # [QL, BS, D]
    n_front = N_LAYERS - QUERY_LAYER
    adv = jnp.concatenate(
        [jnp.zeros((n_front, BS, DIM), jnp.float32), adv_back], axis=0)
    # TODO(synk): w_lora low-rank adapters on wq/wk/wv/wo are not translated.

    logits = llama_forward_fused(prep, h0, adv).reshape(B, SEQ, VOCAB)

    logits = logits[:, :-1, :]
    labels_s = labels[:, 1:]
    lf = labels_s.reshape(-1)
    logp = jax.nn.log_softmax(logits.reshape(-1, VOCAB), axis=-1)
    nll = -jnp.take_along_axis(logp, lf[:, None], axis=-1)[:, 0]
    valid = lf != 0                                           # ignore_index=0
    n_valid = jnp.sum(valid)
    ce = jnp.sum(jnp.where(valid, nll, 0.0)) / jnp.maximum(n_valid, 1)
    c_loss = jnp.where(jnp.sum(labels_s) == 0, 0.0 * logits.mean(), ce)
    return c_loss, c_loss


# ============================ parameters ====================================

def precompute_rope(hd, max_seq, theta=10000.0):
    inv = 1.0 / (theta ** (jnp.arange(0, hd, 2, dtype=jnp.float32) / hd))
    t = jnp.arange(max_seq, dtype=jnp.float32)
    freqs = jnp.outer(t, inv)                       # [max_seq, hd/2]
    return jnp.cos(freqs), jnp.sin(freqs)


def _perm_rope_cols(w):
    # interleaved complex-pair layout -> rotate-half layout per head:
    # within each head, new column order is [evens..., odds...].
    w4 = w.reshape(w.shape[0], N_HEADS, HALF, 2)
    return jnp.transpose(w4, (0, 1, 3, 2)).reshape(w.shape[0], DIM)


def _perm_rope_vec(b):
    b4 = b.reshape(N_HEADS, HALF, 2)
    return jnp.transpose(b4, (0, 2, 1)).reshape(DIM)


def init_params(seed=0):
    key = jax.random.PRNGKey(seed)

    def nxt():
        nonlocal key
        key, sub = jax.random.split(key)
        return sub

    def nrm(shape, scale=0.02):
        return (scale * jax.random.normal(nxt(), shape)).astype(jnp.float32)

    params = {
        'proj_w': nrm((VIS_DIM, DIM)),
        'proj_b': nrm((DIM,)),
        'bridge': [
            {'norm': jnp.ones((DIM,), jnp.float32),
             'f1': nrm((DIM, BRIDGE_HIDDEN)),
             'f2': nrm((BRIDGE_HIDDEN, DIM)),
             'f3': nrm((DIM, BRIDGE_HIDDEN))}
            for _ in range(3)
        ],
        'tok_emb': nrm((VOCAB, DIM)),
        'layers': [
            {'attn_norm': jnp.ones((DIM,), jnp.float32),
             'wq': nrm((DIM, DIM)), 'bq': nrm((DIM,)),
             'wk': nrm((DIM, DIM)),
             'wv': nrm((DIM, DIM)),
             'wo': nrm((DIM, DIM)), 'bo': nrm((DIM,)),
             'gate': nrm((N_HEADS,), 0.1),
             'ffn_norm': jnp.ones((DIM,), jnp.float32),
             'w1': nrm((DIM, FFN_HIDDEN)), 'b1': nrm((FFN_HIDDEN,)),
             'w2': nrm((FFN_HIDDEN, DIM)), 'b2': nrm((DIM,)),
             'w3': nrm((DIM, FFN_HIDDEN)), 'b3': nrm((FFN_HIDDEN,))}
            for _ in range(N_LAYERS)
        ],
        'norm': jnp.ones((DIM,), jnp.float32),
        'out_w': nrm((DIM, VOCAB)),
        'prefix_query': nrm((QUERY_LAYER * QUERY_LEN, DIM)),
    }
    return params


def prepare_params(p):
    """Fuse / fold / stack / bf16-cast the module parameters once."""
    zeros_d = jnp.zeros((DIM,), jnp.float32)
    n_front = N_LAYERS - QUERY_LAYER
    wqkv, bqkv, wo, bo, w13, b13, w2, b2, wv_gate = ([] for _ in range(9))
    for li, lp in enumerate(p['layers']):
        an = lp['attn_norm'][:, None]                 # fold gamma into rows
        wq = _perm_rope_cols(lp['wq'])
        wk = _perm_rope_cols(lp['wk'])
        bq = _perm_rope_vec(lp['bq'])
        wqkv.append((jnp.concatenate([wq, wk, lp['wv']], axis=1)
                     * an).astype(jnp.bfloat16))                  # [D, 3D]
        bqkv.append(jnp.concatenate([bq, zeros_d, zeros_d])[None, :])
        wo.append(lp['wo'].astype(jnp.bfloat16))
        bo.append(lp['bo'][None, :])
        fn = lp['ffn_norm'][:, None]
        w13.append((jnp.concatenate([lp['w1'], lp['w3']], axis=1)
                    * fn).astype(jnp.bfloat16))
        b13.append(jnp.concatenate([lp['b1'], lp['b3']])[None, :])
        w2.append(lp['w2'].astype(jnp.bfloat16))
        b2.append(lp['b2'][None, :])
        if li >= n_front:
            grow = jnp.repeat(jnp.tanh(lp['gate']), HEAD_DIM)     # [D]
            wv_gate.append(lp['wv'] * grow[None, :])              # Wv * tanh(g)

    bridge = []
    for blk in p['bridge']:
        g = blk['norm'][:, None]
        bridge.append({
            'w13': (jnp.concatenate([blk['f1'], blk['f3']], axis=1)
                    * g).astype(jnp.bfloat16),
            'w2': blk['f2'].astype(jnp.bfloat16),
        })

    cos_h, sin_h = precompute_rope(HEAD_DIM, MAX_SEQ)             # [MS, HD/2]
    cos_head = jnp.concatenate([cos_h, cos_h], axis=-1)           # [MS, HD]
    sin_head = jnp.concatenate([sin_h, sin_h], axis=-1)
    cos_full = jnp.tile(cos_head[:SEQ], (B, N_HEADS))             # [BS, D]
    sin_full = jnp.tile(sin_head[:SEQ], (B, N_HEADS))

    r = jnp.arange(BS)
    same = (r[:, None] // SEQ) == (r[None, :] // SEQ)
    causal = (r[:, None] % SEQ) >= (r[None, :] % SEQ)
    mask = jnp.where(same & causal, 0.0, NEG_INF).astype(jnp.float32)

    return {
        'proj_w': (p['proj_w'] * (1.0 / (1.0 + 1e-6))).astype(jnp.bfloat16),
        'proj_b': p['proj_b'][None, :],
        'bridge': bridge,
        'tok_emb': p['tok_emb'],
        'wqkv': jnp.stack(wqkv), 'bqkv': jnp.stack(bqkv),
        'wo': jnp.stack(wo), 'bo': jnp.stack(bo),
        'w13': jnp.stack(w13), 'b13': jnp.stack(b13),
        'w2': jnp.stack(w2), 'b2': jnp.stack(b2),
        'wv_gate': jnp.stack(wv_gate),                            # [QL, D, D]
        'head_w': (p['out_w'] * p['norm'][:, None]).astype(jnp.bfloat16),
        'prefix_query': p['prefix_query'],
        'rope_cos': cos_full, 'rope_sin': sin_full,
        'mask': mask,
    }


# ============================ main ==========================================

if __name__ == "__main__":
    prep = prepare_params(init_params(0))
    key = jax.random.PRNGKey(0)
    k1, k2, k3 = jax.random.split(key, 3)
    tokens = jax.random.randint(k1, (B, SEQ), 0, VOCAB, dtype=jnp.int32)
    labels = jax.random.randint(k2, (B, SEQ), 0, VOCAB, dtype=jnp.int32)
    img_feats = jax.random.normal(k3, (B, VIS_DIM), dtype=jnp.float32)

    loss, loss2 = jax.jit(forward)(prep, tokens, labels, img_feats)
    jax.block_until_ready(loss)
    assert bool(jnp.isfinite(loss)), "loss is not finite"
    print("KERNEL_OK")
</pallas_src>

<mosaic_0001>
module attributes {stable_mosaic.version = 11 : i64} {
  func.func @_bridge_kernel(%arg0: memref<2x64xf32, #tpu.memory_space<vmem>>, %arg1: memref<64x128xbf16, #tpu.memory_space<vmem>>, %arg2: memref<1x128xf32, #tpu.memory_space<vmem>>, %arg3: memref<128x1024xbf16, #tpu.memory_space<vmem>>, %arg4: memref<512x128xbf16, #tpu.memory_space<vmem>>, %arg5: memref<128x1024xbf16, #tpu.memory_space<vmem>>, %arg6: memref<512x128xbf16, #tpu.memory_space<vmem>>, %arg7: memref<128x1024xbf16, #tpu.memory_space<vmem>>, %arg8: memref<512x128xbf16, #tpu.memory_space<vmem>>, %arg9: memref<2x128xf32, #tpu.memory_space<vmem>>) attributes {dimension_semantics = [], scalar_prefetch = 0 : i64, scratch_operands = 0 : i64, tpu.core_type = #tpu.core_type<tc>} {
    %c0 = arith.constant 0 : index
    %c0_0 = arith.constant 0 : index
    %0 = vector.load %arg0[%c0, %c0_0] : memref<2x64xf32, #tpu.memory_space<vmem>>, vector<2x64xf32>
    %1 = arith.mulf %0, %0 : vector<2x64xf32>
    %cst = arith.constant dense<0.000000e+00> : vector<2xf32>
    %2 = vector.multi_reduction <add>, %1, %cst [1] : vector<2x64xf32> to vector<2xf32>
    %3 = vector.shape_cast %2 : vector<2xf32> to vector<2x1xf32>
    %cst_1 = arith.constant 1.000000e-24 : f32
    %4 = vector.broadcast %cst_1 : f32 to vector<2x1xf32>
    %5 = arith.maximumf %3, %4 : vector<2x1xf32>
    %6 = math.rsqrt %5 : vector<2x1xf32>
    %7 = vector.broadcast %6 : vector<2x1xf32> to vector<2x64xf32>
    %8 = arith.mulf %0, %7 : vector<2x64xf32>
    %9 = arith.truncf %8 : vector<2x64xf32> to vector<2x64xbf16>
    %c0_2 = arith.constant 0 : index
    %c0_3 = arith.constant 0 : index
    %10 = vector.load %arg1[%c0_2, %c0_3] : memref<64x128xbf16, #tpu.memory_space<vmem>>, vector<64x128xbf16>
    %cst_4 = arith.constant dense<0.000000e+00> : vector<2x128xf32>
    %11 = tpu.matmul %9, %10, %cst_4 {dimension_numbers = #tpu.dot_dimension_numbers<[1], [0], [0], [1], [0, 0, 1, 1], [], []>} : vector<2x64xbf16>, vector<64x128xbf16>, vector<2x128xf32> -> vector<2x128xf32>
    %c0_5 = arith.constant 0 : index
    %c0_6 = arith.constant 0 : index
    %12 = vector.load %arg2[%c0_5, %c0_6] : memref<1x128xf32, #tpu.memory_space<vmem>>, vector<1x128xf32>
    %13 = vector.broadcast %12 : vector<1x128xf32> to vector<2x128xf32>
    %14 = arith.addf %11, %13 : vector<2x128xf32>
    %15 = arith.mulf %14, %14 : vector<2x128xf32>
    %cst_7 = arith.constant dense<0.000000e+00> : vector<2xf32>
    %16 = vector.multi_reduction <add>, %15, %cst_7 [1] : vector<2x128xf32> to vector<2xf32>
    %17 = vector.shape_cast %16 : vector<2xf32> to vector<2x1xf32>
    %cst_8 = arith.constant 1.280000e+02 : f32
    %18 = vector.broadcast %cst_8 : f32 to vector<2x1xf32>
    %19 = arith.divf %17, %18 : vector<2x1xf32>
    %cst_9 = arith.constant 9.99999997E-7 : f32
    %20 = vector.broadcast %cst_9 : f32 to vector<2x1xf32>
    %21 = arith.addf %19, %20 : vector<2x1xf32>
    %22 = math.rsqrt %21 : vector<2x1xf32>
    %23 = vector.broadcast %22 : vector<2x1xf32> to vector<2x128xf32>
    %24 = arith.mulf %14, %23 : vector<2x128xf32>
    %25 = arith.truncf %24 : vector<2x128xf32> to vector<2x128xbf16>
    %c0_10 = arith.constant 0 : index
    %c0_11 = arith.constant 0 : index
    %26 = vector.load %arg3[%c0_10, %c0_11] : memref<128x1024xbf16, #tpu.memory_space<vmem>>, vector<128x1024xbf16>
    %cst_12 = arith.constant dense<0.000000e+00> : vector<2x1024xf32>
    %27 = tpu.matmul %25, %26, %cst_12 {dimension_numbers = #tpu.dot_dimension_numbers<[1], [0], [0], [1], [0, 0, 1, 1], [], []>} : vector<2x128xbf16>, vector<128x1024xbf16>, vector<2x1024xf32> -> vector<2x1024xf32>
    %28 = vector.extract_strided_slice %27 {offsets = [0, 0], sizes = [2, 512], strides = [1, 1]} : vector<2x1024xf32> to vector<2x512xf32>
    %29 = vector.extract_strided_slice %27 {offsets = [0, 512], sizes = [2, 512], strides = [1, 1]} : vector<2x1024xf32> to vector<2x512xf32>
    %30 = arith.negf %28 : vector<2x512xf32>
    %31 = math.exp %30 : vector<2x512xf32>
    %cst_13 = arith.constant 1.000000e+00 : f32
    %32 = vector.broadcast %cst_13 : f32 to vector<2x512xf32>
    %33 = arith.addf %32, %31 : vector<2x512xf32>
    %34 = arith.divf %32, %33 : vector<2x512xf32>
    %35 = arith.mulf %28, %34 : vector<2x512xf32>
    %36 = arith.mulf %35, %29 : vector<2x512xf32>
    %37 = arith.truncf %36 : vector<2x512xf32> to vector<2x512xbf16>
    %c0_14 = arith.constant 0 : index
    %c0_15 = arith.constant 0 : index
    %38 = vector.load %arg4[%c0_14, %c0_15] : memref<512x128xbf16, #tpu.memory_space<vmem>>, vector<512x128xbf16>
    %cst_16 = arith.constant dense<0.000000e+00> : vector<2x128xf32>
    %39 = tpu.matmul %37, %38, %cst_16 {dimension_numbers = #tpu.dot_dimension_numbers<[1], [0], [0], [1], [0, 0, 1, 1], [], []>} : vector<2x512xbf16>, vector<512x128xbf16>, vector<2x128xf32> -> vector<2x128xf32>
    %40 = arith.addf %14, %39 : vector<2x128xf32>
    %41 = arith.mulf %40, %40 : vector<2x128xf32>
    %cst_17 = arith.constant dense<0.000000e+00> : vector<2xf32>
    %42 = vector.multi_reduction <add>, %41, %cst_17 [1] : vector<2x128xf32> to vector<2xf32>
    %43 = vector.shape_cast %42 : vector<2xf32> to vector<2x1xf32>
    %cst_18 = arith.constant 1.280000e+02 : f32
    %44 = vector.broadcast %cst_18 : f32 to vector<2x1xf32>
    %45 = arith.divf %43, %44 : vector<2x1xf32>
    %cst_19 = arith.constant 9.99999997E-7 : f32
    %46 = vector.broadcast %cst_19 : f32 to vector<2x1xf32>
    %47 = arith.addf %45, %46 : vector<2x1xf32>
    %48 = math.rsqrt %47 : vector<2x1xf32>
    %49 = vector.broadcast %48 : vector<2x1xf32> to vector<2x128xf32>
    %50 = arith.mulf %40, %49 : vector<2x128xf32>
    %51 = arith.truncf %50 : vector<2x128xf32> to vector<2x128xbf16>
    %c0_20 = arith.constant 0 : index
    %c0_21 = arith.constant 0 : index
    %52 = vector.load %arg5[%c0_20, %c0_21] : memref<128x1024xbf16, #tpu.memory_space<vmem>>, vector<128x1024xbf16>
    %cst_22 = arith.constant dense<0.000000e+00> : vector<2x1024xf32>
    %53 = tpu.matmul %51, %52, %cst_22 {dimension_numbers = #tpu.dot_dimension_numbers<[1], [0], [0], [1], [0, 0, 1, 1], [], []>} : vector<2x128xbf16>, vector<128x1024xbf16>, vector<2x1024xf32> -> vector<2x1024xf32>
    %54 = vector.extract_strided_slice %53 {offsets = [0, 0], sizes = [2, 512], strides = [1, 1]} : vector<2x1024xf32> to vector<2x512xf32>
    %55 = vector.extract_strided_slice %53 {offsets = [0, 512], sizes = [2, 512], strides = [1, 1]} : vector<2x1024xf32> to vector<2x512xf32>
    %56 = arith.negf %54 : vector<2x512xf32>
    %57 = math.exp %56 : vector<2x512xf32>
    %cst_23 = arith.constant 1.000000e+00 : f32
    %58 = vector.broadcast %cst_23 : f32 to vector<2x512xf32>
    %59 = arith.addf %58, %57 : vector<2x512xf32>
    %60 = arith.divf %58, %59 : vector<2x512xf32>
    %61 = arith.mulf %54, %60 : vector<2x512xf32>
    %62 = arith.mulf %61, %55 : vector<2x512xf32>
    %63 = arith.truncf %62 : vector<2x512xf32> to vector<2x512xbf16>
    %c0_24 = arith.constant 0 : index
    %c0_25 = arith.constant 0 : index
    %64 = vector.load %arg6[%c0_24, %c0_25] : memref<512x128xbf16, #tpu.memory_space<vmem>>, vector<512x128xbf16>
    %cst_26 = arith.constant dense<0.000000e+00> : vector<2x128xf32>
    %65 = tpu.matmul %63, %64, %cst_26 {dimension_numbers = #tpu.dot_dimension_numbers<[1], [0], [0], [1], [0, 0, 1, 1], [], []>} : vector<2x512xbf16>, vector<512x128xbf16>, vector<2x128xf32> -> vector<2x128xf32>
    %66 = arith.addf %40, %65 : vector<2x128xf32>
    %67 = arith.mulf %66, %66 : vector<2x128xf32>
    %cst_27 = arith.constant dense<0.000000e+00> : vector<2xf32>
    %68 = vector.multi_reduction <add>, %67, %cst_27 [1] : vector<2x128xf32> to vector<2xf32>
    %69 = vector.shape_cast %68 : vector<2xf32> to vector<2x1xf32>
    %cst_28 = arith.constant 1.280000e+02 : f32
    %70 = vector.broadcast %cst_28 : f32 to vector<2x1xf32>
    %71 = arith.divf %69, %70 : vector<2x1xf32>
    %cst_29 = arith.constant 9.99999997E-7 : f32
    %72 = vector.broadcast %cst_29 : f32 to vector<2x1xf32>
    %73 = arith.addf %71, %72 : vector<2x1xf32>
    %74 = math.rsqrt %73 : vector<2x1xf32>
    %75 = vector.broadcast %74 : vector<2x1xf32> to vector<2x128xf32>
    %76 = arith.mulf %66, %75 : vector<2x128xf32>
    %77 = arith.truncf %76 : vector<2x128xf32> to vector<2x128xbf16>
    %c0_30 = arith.constant 0 : index
    %c0_31 = arith.constant 0 : index
    %78 = vector.load %arg7[%c0_30, %c0_31] : memref<128x1024xbf16, #tpu.memory_space<vmem>>, vector<128x1024xbf16>
    %cst_32 = arith.constant dense<0.000000e+00> : vector<2x1024xf32>
    %79 = tpu.matmul %77, %78, %cst_32 {dimension_numbers = #tpu.dot_dimension_numbers<[1], [0], [0], [1], [0, 0, 1, 1], [], []>} : vector<2x128xbf16>, vector<128x1024xbf16>, vector<2x1024xf32> -> vector<2x1024xf32>
    %80 = vector.extract_strided_slice %79 {offsets = [0, 0], sizes = [2, 512], strides = [1, 1]} : vector<2x1024xf32> to vector<2x512xf32>
    %81 = vector.extract_strided_slice %79 {offsets = [0, 512], sizes = [2, 512], strides = [1, 1]} : vector<2x1024xf32> to vector<2x512xf32>
    %82 = arith.negf %80 : vector<2x512xf32>
    %83 = math.exp %82 : vector<2x512xf32>
    %cst_33 = arith.constant 1.000000e+00 : f32
    %84 = vector.broadcast %cst_33 : f32 to vector<2x512xf32>
    %85 = arith.addf %84, %83 : vector<2x512xf32>
    %86 = arith.divf %84, %85 : vector<2x512xf32>
    %87 = arith.mulf %80, %86 : vector<2x512xf32>
    %88 = arith.mulf %87, %81 : vector<2x512xf32>
    %89 = arith.truncf %88 : vector<2x512xf32> to vector<2x512xbf16>
    %c0_34 = arith.constant 0 : index
    %c0_35 = arith.constant 0 : index
    %90 = vector.load %arg8[%c0_34, %c0_35] : memref<512x128xbf16, #tpu.memory_space<vmem>>, vector<512x128xbf16>
    %cst_36 = arith.constant dense<0.000000e+00> : vector<2x128xf32>
    %91 = tpu.matmul %89, %90, %cst_36 {dimension_numbers = #tpu.dot_dimension_numbers<[1], [0], [0], [1], [0, 0, 1, 1], [], []>} : vector<2x512xbf16>, vector<512x128xbf16>, vector<2x128xf32> -> vector<2x128xf32>
    %92 = arith.addf %66, %91 : vector<2x128xf32>
    %c0_37 = arith.constant 0 : index
    %c0_38 = arith.constant 0 : index
    %93 = vector.load %arg9[%c0_37, %c0_38] : memref<2x128xf32, #tpu.memory_space<vmem>>, vector<2x128xf32>
    tpu.vector_store %arg9[%c0_37, %c0_38], %92 {strides = array<i32>} : memref<2x128xf32, #tpu.memory_space<vmem>>, vector<2x128xf32>,
    return
  }
}

module attributes {stable_mosaic.version = 11 : i64} {
  func.func @_llama_fused_kernel(%arg0: i32, %arg1: memref<16x128xf32, #tpu.memory_space<vmem>>, %arg2: memref<16x128xf32, #tpu.memory_space<vmem>>, %arg3: memref<16x128xf32, #tpu.memory_space<vmem>>, %arg4: memref<16x16xf32, #tpu.memory_space<vmem>>, %arg5: memref<1x128x384xbf16, #tpu.memory_space<vmem>>, %arg6: memref<1x1x384xf32, #tpu.memory_space<vmem>>, %arg7: memref<1x128x128xbf16, #tpu.memory_space<vmem>>, %arg8: memref<1x1x128xf32, #tpu.memory_space<vmem>>, %arg9: memref<1x128x512xbf16, #tpu.memory_space<vmem>>, %arg10: memref<1x1x512xf32, #tpu.memory_space<vmem>>, %arg11: memref<1x256x128xbf16, #tpu.memory_space<vmem>>, %arg12: memref<1x1x128xf32, #tpu.memory_space<vmem>>, %arg13: memref<1x16x128xf32, #tpu.memory_space<vmem>>, %arg14: memref<128x512xbf16, #tpu.memory_space<vmem>>, %arg15: memref<16x512xf32, #tpu.memory_space<vmem>>, %arg16: memref<16x128xf32, #tpu.memory_space<vmem>>) attributes {dimension_semantics = [#tpu.dimension_semantics<arbitrary>], iteration_bounds = array<i64: 4>, scalar_prefetch = 0 : i64, scratch_operands = 1 : i64, tpu.core_type = #tpu.core_type<tc>, window_params = [{pipeline_mode = #tpu.pipeline_mode<synchronous>, transform_indices = @transform_0, window_bounds = array<i64: 16, 128>}, {pipeline_mode = #tpu.pipeline_mode<synchronous>, transform_indices = @transform_1, window_bounds = array<i64: 16, 128>}, {pipeline_mode = #tpu.pipeline_mode<synchronous>, transform_indices = @transform_2, window_bounds = array<i64: 16, 128>}, {pipeline_mode = #tpu.pipeline_mode<synchronous>, transform_indices = @transform_3, window_bounds = array<i64: 16, 16>}, {transform_indices = @transform_4, window_bounds = array<i64: 1, 128, 384>}, {transform_indices = @transform_5, window_bounds = array<i64: 1, 1, 384>}, {transform_indices = @transform_6, window_bounds = array<i64: 1, 128, 128>}, {transform_indices = @transform_7, window_bounds = array<i64: 1, 1, 128>}, {transform_indices = @transform_8, window_bounds = array<i64: 1, 128, 512>}, {transform_indices = @transform_9, window_bounds = array<i64: 1, 1, 512>}, {transform_indices = @transform_10, window_bounds = array<i64: 1, 256, 128>}, {transform_indices = @transform_11, window_bounds = array<i64: 1, 1, 128>}, {transform_indices = @transform_12, window_bounds = array<i64: 1, 16, 128>}, {pipeline_mode = #tpu.pipeline_mode<synchronous>, transform_indices = @transform_13, window_bounds = array<i64: 128, 512>}, {pipeline_mode = #tpu.pipeline_mode<synchronous>, transform_indices = @transform_14, window_bounds = array<i64: 16, 512>}]} {
    %c0_i32 = arith.constant 0 : i32
    %0 = arith.cmpi eq, %arg0, %c0_i32 : i32
    %1 = arith.extui %0 : i1 to i32
    %c0_i32_0 = arith.constant 0 : i32
    %2 = arith.cmpi ne, %1, %c0_i32_0 : i32
    scf.if %2 {
      %c0_76 = arith.constant 0 : index
      %c0_77 = arith.constant 0 : index
      %209 = vector.load %arg1[%c0_76, %c0_77] : memref<16x128xf32, #tpu.memory_space<vmem>>, vector<16x128xf32>
      %c0_78 = arith.constant 0 : index
      %c0_79 = arith.constant 0 : index
      %210 = vector.load %arg16[%c0_78, %c0_79] : memref<16x128xf32, #tpu.memory_space<vmem>>, vector<16x128xf32>
      tpu.vector_store %arg16[%c0_78, %c0_79], %209 {strides = array<i32>} : memref<16x128xf32, #tpu.memory_space<vmem>>, vector<16x128xf32>,
    } else {
    }
    %c0 = arith.constant 0 : index
    %c0_1 = arith.constant 0 : index
    %3 = vector.load %arg16[%c0, %c0_1] : memref<16x128xf32, #tpu.memory_space<vmem>>, vector<16x128xf32>
    %4 = arith.mulf %3, %3 : vector<16x128xf32>
    %cst = arith.constant dense<0.000000e+00> : vector<16xf32>
    %5 = vector.multi_reduction <add>, %4, %cst [1] : vector<16x128xf32> to vector<16xf32>
    %6 = vector.shape_cast %5 : vector<16xf32> to vector<16x1xf32>
    %cst_2 = arith.constant 1.280000e+02 : f32
    %7 = vector.broadcast %cst_2 : f32 to vector<16x1xf32>
    %8 = arith.divf %6, %7 : vector<16x1xf32>
    %cst_3 = arith.constant 9.99999997E-7 : f32
    %9 = vector.broadcast %cst_3 : f32 to vector<16x1xf32>
    %10 = arith.addf %8, %9 : vector<16x1xf32>
    %11 = math.rsqrt %10 : vector<16x1xf32>
    %12 = vector.broadcast %11 : vector<16x1xf32> to vector<16x128xf32>
    %13 = arith.mulf %3, %12 : vector<16x128xf32>
    %14 = arith.truncf %13 : vector<16x128xf32> to vector<16x128xbf16>
    %c0_4 = arith.constant 0 : index
    %c0_5 = arith.constant 0 : index
    %c0_6 = arith.constant 0 : index
    %15 = vector.load %arg5[%c0_4, %c0_5, %c0_6] : memref<1x128x384xbf16, #tpu.memory_space<vmem>>, vector<1x128x384xbf16>
    %16 = vector.shape_cast %15 : vector<1x128x384xbf16> to vector<128x384xbf16>
    %cst_7 = arith.constant dense<0.000000e+00> : vector<16x384xf32>
    %17 = tpu.matmul %14, %16, %cst_7 {dimension_numbers = #tpu.dot_dimension_numbers<[1], [0], [0], [1], [0, 0, 1, 1], [], []>} : vector<16x128xbf16>, vector<128x384xbf16>, vector<16x384xf32> -> vector<16x384xf32>
    %c0_8 = arith.constant 0 : index
    %c0_9 = arith.constant 0 : index
    %c0_10 = arith.constant 0 : index
    %18 = vector.load %arg6[%c0_8, %c0_9, %c0_10] : memref<1x1x384xf32, #tpu.memory_space<vmem>>, vector<1x1x384xf32>
    %19 = vector.shape_cast %18 : vector<1x1x384xf32> to vector<1x384xf32>
    %20 = vector.broadcast %19 : vector<1x384xf32> to vector<16x384xf32>
    %21 = arith.addf %17, %20 : vector<16x384xf32>
    %22 = vector.extract_strided_slice %21 {offsets = [0, 0], sizes = [16, 128], strides = [1, 1]} : vector<16x384xf32> to vector<16x128xf32>
    %23 = vector.extract_strided_slice %21 {offsets = [0, 128], sizes = [16, 128], strides = [1, 1]} : vector<16x384xf32> to vector<16x128xf32>
    %24 = vector.extract_strided_slice %21 {offsets = [0, 256], sizes = [16, 128], strides = [1, 1]} : vector<16x384xf32> to vector<16x128xf32>
    %c0_11 = arith.constant 0 : index
    %c0_12 = arith.constant 0 : index
    %25 = vector.load %arg2[%c0_11, %c0_12] : memref<16x128xf32, #tpu.memory_space<vmem>>, vector<16x128xf32>
    %c0_13 = arith.constant 0 : index
    %c0_14 = arith.constant 0 : index
    %26 = vector.load %arg3[%c0_13, %c0_14] : memref<16x128xf32, #tpu.memory_space<vmem>>, vector<16x128xf32>
    %27 = arith.mulf %22, %25 : vector<16x128xf32>
    %28 = vector.extract_strided_slice %22 {offsets = [0, 0], sizes = [16, 16], strides = [1, 1]} : vector<16x128xf32> to vector<16x16xf32>
    %29 = vector.extract_strided_slice %22 {offsets = [0, 16], sizes = [16, 16], strides = [1, 1]} : vector<16x128xf32> to vector<16x16xf32>
    %cst_15 = arith.constant 0.000000e+00 : f32
    %30 = vector.broadcast %cst_15 : f32 to vector<16x16xf32>
    %31 = arith.subf %30, %29 : vector<16x16xf32>
    %32 = vector.extract_strided_slice %22 {offsets = [0, 32], sizes = [16, 16], strides = [1, 1]} : vector<16x128xf32> to vector<16x16xf32>
    %33 = vector.extract_strided_slice %22 {offsets = [0, 48], sizes = [16, 16], strides = [1, 1]} : vector<16x128xf32> to vector<16x16xf32>
    %cst_16 = arith.constant 0.000000e+00 : f32
    %34 = vector.broadcast %cst_16 : f32 to vector<16x16xf32>
    %35 = arith.subf %34, %33 : vector<16x16xf32>
    %36 = vector.extract_strided_slice %22 {offsets = [0, 64], sizes = [16, 16], strides = [1, 1]} : vector<16x128xf32> to vector<16x16xf32>
    %37 = vector.extract_strided_slice %22 {offsets = [0, 80], sizes = [16, 16], strides = [1, 1]} : vector<16x128xf32> to vector<16x16xf32>
    %cst_17 = arith.constant 0.000000e+00 : f32
    %38 = vector.broadcast %cst_17 : f32 to vector<16x16xf32>
    %39 = arith.subf %38, %37 : vector<16x16xf32>
    %40 = vector.extract_strided_slice %22 {offsets = [0, 96], sizes = [16, 16], strides = [1, 1]} : vector<16x128xf32> to vector<16x16xf32>
    %41 = vector.extract_strided_slice %22 {offsets = [0, 112], sizes = [16, 16], strides = [1, 1]} : vector<16x128xf32> to vector<16x16xf32>
    %cst_18 = arith.constant 0.000000e+00 : f32
    %42 = vector.broadcast %cst_18 : f32 to vector<16x16xf32>
    %43 = arith.subf %42, %41 : vector<16x16xf32>
    %44 = tpu.concatenate %31, %28, %35, %32, %39, %36, %43, %40 in 1 : vector<16x16xf32>, vector<16x16xf32>, vector<16x16xf32>, vector<16x16xf32>, vector<16x16xf32>, vector<16x16xf32>, vector<16x16xf32>, vector<16x16xf32> -> vector<16x128xf32>
    %45 = arith.mulf %44, %26 : vector<16x128xf32>
    %46 = arith.addf %27, %45 : vector<16x128xf32>
    %47 = arith.mulf %23, %25 : vector<16x128xf32>
    %48 = vector.extract_strided_slice %23 {offsets = [0, 0], sizes = [16, 16], strides = [1, 1]} : vector<16x128xf32> to vector<16x16xf32>
    %49 = vector.extract_strided_slice %23 {offsets = [0, 16], sizes = [16, 16], strides = [1, 1]} : vector<16x128xf32> to vector<16x16xf32>
    %cst_19 = arith.constant 0.000000e+00 : f32
    %50 = vector.broadcast %cst_19 : f32 to vector<16x16xf32>
    %51 = arith.subf %50, %49 : vector<16x16xf32>
    %52 = vector.extract_strided_slice %23 {offsets = [0, 32], sizes = [16, 16], strides = [1, 1]} : vector<16x128xf32> to vector<16x16xf32>
    %53 = vector.extract_strided_slice %23 {offsets = [0, 48], sizes = [16, 16], strides = [1, 1]} : vector<16x128xf32> to vector<16x16xf32>
    %cst_20 = arith.constant 0.000000e+00 : f32
    %54 = vector.broadcast %cst_20 : f32 to vector<16x16xf32>
    %55 = arith.subf %54, %53 : vector<16x16xf32>
    %56 = vector.extract_strided_slice %23 {offsets = [0, 64], sizes = [16, 16], strides = [1, 1]} : vector<16x128xf32> to vector<16x16xf32>
    %57 = vector.extract_strided_slice %23 {offsets = [0, 80], sizes = [16, 16], strides = [1, 1]} : vector<16x128xf32> to vector<16x16xf32>
    %cst_21 = arith.constant 0.000000e+00 : f32
    %58 = vector.broadcast %cst_21 : f32 to vector<16x16xf32>
    %59 = arith.subf %58, %57 : vector<16x16xf32>
    %60 = vector.extract_strided_slice %23 {offsets = [0, 96], sizes = [16, 16], strides = [1, 1]} : vector<16x128xf32> to vector<16x16xf32>
    %61 = vector.extract_strided_slice %23 {offsets = [0, 112], sizes = [16, 16], strides = [1, 1]} : vector<16x128xf32> to vector<16x16xf32>
    %cst_22 = arith.constant 0.000000e+00 : f32
    %62 = vector.broadcast %cst_22 : f32 to vector<16x16xf32>
    %63 = arith.subf %62, %61 : vector<16x16xf32>
    %64 = tpu.concatenate %51, %48, %55, %52, %59, %56, %63, %60 in 1 : vector<16x16xf32>, vector<16x16xf32>, vector<16x16xf32>, vector<16x16xf32>, vector<16x16xf32>, vector<16x16xf32>, vector<16x16xf32>, vector<16x16xf32> -> vector<16x128xf32>
    %65 = arith.mulf %64, %26 : vector<16x128xf32>
    %66 = arith.addf %47, %65 : vector<16x128xf32>
    %c0_23 = arith.constant 0 : index
    %c0_24 = arith.constant 0 : index
    %67 = vector.load %arg4[%c0_23, %c0_24] : memref<16x16xf32, #tpu.memory_space<vmem>>, vector<16x16xf32>
    %68 = vector.extract_strided_slice %46 {offsets = [0, 0], sizes = [16, 32], strides = [1, 1]} : vector<16x128xf32> to vector<16x32xf32>
    %69 = arith.truncf %68 : vector<16x32xf32> to vector<16x32xbf16>
    %70 = vector.extract_strided_slice %66 {offsets = [0, 0], sizes = [16, 32], strides = [1, 1]} : vector<16x128xf32> to vector<16x32xf32>
    %71 = arith.truncf %70 : vector<16x32xf32> to vector<16x32xbf16>
    %72 = vector.extract_strided_slice %24 {offsets = [0, 0], sizes = [16, 32], strides = [1, 1]} : vector<16x128xf32> to vector<16x32xf32>
    %73 = arith.truncf %72 : vector<16x32xf32> to vector<16x32xbf16>
    %cst_25 = arith.constant dense<0.000000e+00> : vector<16x16xf32>
    %74 = tpu.matmul %69, %71, %cst_25 {dimension_numbers = #tpu.dot_dimension_numbers<[1], [1], [0], [0], [0, 0, 1, 0], [], []>} : vector<16x32xbf16>, vector<16x32xbf16>, vector<16x16xf32> -> vector<16x16xf32>
    %cst_26 = arith.constant 0.176776692 : f32
    %75 = vector.broadcast %cst_26 : f32 to vector<16x16xf32>
    %76 = arith.mulf %74, %75 : vector<16x16xf32>
    %77 = arith.addf %76, %67 : vector<16x16xf32>
    %cst_27 = arith.constant dense<0xFF800000> : vector<16xf32>
    %78 = vector.multi_reduction <maximumf>, %77, %cst_27 [1] : vector<16x16xf32> to vector<16xf32>
    %79 = vector.shape_cast %78 : vector<16xf32> to vector<16x1xf32>
    %80 = vector.broadcast %79 : vector<16x1xf32> to vector<16x16xf32>
    %81 = arith.subf %77, %80 : vector<16x16xf32>
    %82 = math.exp %81 : vector<16x16xf32>
    %cst_28 = arith.constant dense<0.000000e+00> : vector<16xf32>
    %83 = vector.multi_reduction <add>, %82, %cst_28 [1] : vector<16x16xf32> to vector<16xf32>
    %84 = vector.shape_cast %83 : vector<16xf32> to vector<16x1xf32>
    %85 = tpu.reciprocal %84 {approx = true} : vector<16x1xf32> -> vector<16x1xf32>
    %86 = vector.broadcast %85 : vector<16x1xf32> to vector<16x16xf32>
    %87 = arith.mulf %82, %86 : vector<16x16xf32>
    %88 = arith.truncf %87 : vector<16x16xf32> to vector<16x16xbf16>
    %cst_29 = arith.constant dense<0.000000e+00> : vector<16x32xf32>
    %89 = tpu.matmul %88, %73, %cst_29 {dimension_numbers = #tpu.dot_dimension_numbers<[1], [0], [0], [1], [0, 0, 1, 1], [], []>} : vector<16x16xbf16>, vector<16x32xbf16>, vector<16x32xf32> -> vector<16x32xf32>
    %90 = vector.extract_strided_slice %46 {offsets = [0, 32], sizes = [16, 32], strides = [1, 1]} : vector<16x128xf32> to vector<16x32xf32>
    %91 = arith.truncf %90 : vector<16x32xf32> to vector<16x32xbf16>
    %92 = vector.extract_strided_slice %66 {offsets = [0, 32], sizes = [16, 32], strides = [1, 1]} : vector<16x128xf32> to vector<16x32xf32>
    %93 = arith.truncf %92 : vector<16x32xf32> to vector<16x32xbf16>
    %94 = vector.extract_strided_slice %24 {offsets = [0, 32], sizes = [16, 32], strides = [1, 1]} : vector<16x128xf32> to vector<16x32xf32>
    %95 = arith.truncf %94 : vector<16x32xf32> to vector<16x32xbf16>
    %cst_30 = arith.constant dense<0.000000e+00> : vector<16x16xf32>
    %96 = tpu.matmul %91, %93, %cst_30 {dimension_numbers = #tpu.dot_dimension_numbers<[1], [1], [0], [0], [0, 0, 1, 0], [], []>} : vector<16x32xbf16>, vector<16x32xbf16>, vector<16x16xf32> -> vector<16x16xf32>
    %cst_31 = arith.constant 0.176776692 : f32
    %97 = vector.broadcast %cst_31 : f32 to vector<16x16xf32>
    %98 = arith.mulf %96, %97 : vector<16x16xf32>
    %99 = arith.addf %98, %67 : vector<16x16xf32>
    %cst_32 = arith.constant dense<0xFF800000> : vector<16xf32>
    %100 = vector.multi_reduction <maximumf>, %99, %cst_32 [1] : vector<16x16xf32> to vector<16xf32>
    %101 = vector.shape_cast %100 : vector<16xf32> to vector<16x1xf32>
    %102 = vector.broadcast %101 : vector<16x1xf32> to vector<16x16xf32>
    %103 = arith.subf %99, %102 : vector<16x16xf32>
    %104 = math.exp %103 : vector<16x16xf32>
    %cst_33 = arith.constant dense<0.000000e+00> : vector<16xf32>
    %105 = vector.multi_reduction <add>, %104, %cst_33 [1] : vector<16x16xf32> to vector<16xf32>
    %106 = vector.shape_cast %105 : vector<16xf32> to vector<16x1xf32>
    %107 = tpu.reciprocal %106 {approx = true} : vector<16x1xf32> -> vector<16x1xf32>
    %108 = vector.broadcast %107 : vector<16x1xf32> to vector<16x16xf32>
    %109 = arith.mulf %104, %108 : vector<16x16xf32>
    %110 = arith.truncf %109 : vector<16x16xf32> to vector<16x16xbf16>
    %cst_34 = arith.constant dense<0.000000e+00> : vector<16x32xf32>
    %111 = tpu.matmul %110, %95, %cst_34 {dimension_numbers = #tpu.dot_dimension_numbers<[1], [0], [0], [1], [0, 0, 1, 1], [], []>} : vector<16x16xbf16>, vector<16x32xbf16>, vector<16x32xf32> -> vector<16x32xf32>
    %112 = vector.extract_strided_slice %46 {offsets = [0, 64], sizes = [16, 32], strides = [1, 1]} : vector<16x128xf32> to vector<16x32xf32>
    %113 = arith.truncf %112 : vector<16x32xf32> to vector<16x32xbf16>
    %114 = vector.extract_strided_slice %66 {offsets = [0, 64], sizes = [16, 32], strides = [1, 1]} : vector<16x128xf32> to vector<16x32xf32>
    %115 = arith.truncf %114 : vector<16x32xf32> to vector<16x32xbf16>
    %116 = vector.extract_strided_slice %24 {offsets = [0, 64], sizes = [16, 32], strides = [1, 1]} : vector<16x128xf32> to vector<16x32xf32>
    %117 = arith.truncf %116 : vector<16x32xf32> to vector<16x32xbf16>
    %cst_35 = arith.constant dense<0.000000e+00> : vector<16x16xf32>
    %118 = tpu.matmul %113, %115, %cst_35 {dimension_numbers = #tpu.dot_dimension_numbers<[1], [1], [0], [0], [0, 0, 1, 0], [], []>} : vector<16x32xbf16>, vector<16x32xbf16>, vector<16x16xf32> -> vector<16x16xf32>
    %cst_36 = arith.constant 0.176776692 : f32
    %119 = vector.broadcast %cst_36 : f32 to vector<16x16xf32>
    %120 = arith.mulf %118, %119 : vector<16x16xf32>
    %121 = arith.addf %120, %67 : vector<16x16xf32>
    %cst_37 = arith.constant dense<0xFF800000> : vector<16xf32>
    %122 = vector.multi_reduction <maximumf>, %121, %cst_37 [1] : vector<16x16xf32> to vector<16xf32>
    %123 = vector.shape_cast %122 : vector<16xf32> to vector<16x1xf32>
    %124 = vector.broadcast %123 : vector<16x1xf32> to vector<16x16xf32>
    %125 = arith.subf %121, %124 : vector<16x16xf32>
    %126 = math.exp %125 : vector<16x16xf32>
    %cst_38 = arith.constant dense<0.000000e+00> : vector<16xf32>
    %127 = vector.multi_reduction <add>, %126, %cst_38 [1] : vector<16x16xf32> to vector<16xf32>
    %128 = vector.shape_cast %127 : vector<16xf32> to vector<16x1xf32>
    %129 = tpu.reciprocal %128 {approx = true} : vector<16x1xf32> -> vector<16x1xf32>
    %130 = vector.broadcast %129 : vector<16x1xf32> to vector<16x16xf32>
    %131 = arith.mulf %126, %130 : vector<16x16xf32>
    %132 = arith.truncf %131 : vector<16x16xf32> to vector<16x16xbf16>
    %cst_39 = arith.constant dense<0.000000e+00> : vector<16x32xf32>
    %133 = tpu.matmul %132, %117, %cst_39 {dimension_numbers = #tpu.dot_dimension_numbers<[1], [0], [0], [1], [0, 0, 1, 1], [], []>} : vector<16x16xbf16>, vector<16x32xbf16>, vector<16x32xf32> -> vector<16x32xf32>
    %134 = vector.extract_strided_slice %46 {offsets = [0, 96], sizes = [16, 32], strides = [1, 1]} : vector<16x128xf32> to vector<16x32xf32>
    %135 = arith.truncf %134 : vector<16x32xf32> to vector<16x32xbf16>
    %136 = vector.extract_strided_slice %66 {offsets = [0, 96], sizes = [16, 32], strides = [1, 1]} : vector<16x128xf32> to vector<16x32xf32>
    %137 = arith.truncf %136 : vector<16x32xf32> to vector<16x32xbf16>
    %138 = vector.extract_strided_slice %24 {offsets = [0, 96], sizes = [16, 32], strides = [1, 1]} : vector<16x128xf32> to vector<16x32xf32>
    %139 = arith.truncf %138 : vector<16x32xf32> to vector<16x32xbf16>
    %cst_40 = arith.constant dense<0.000000e+00> : vector<16x16xf32>
    %140 = tpu.matmul %135, %137, %cst_40 {dimension_numbers = #tpu.dot_dimension_numbers<[1], [1], [0], [0], [0, 0, 1, 0], [], []>} : vector<16x32xbf16>, vector<16x32xbf16>, vector<16x16xf32> -> vector<16x16xf32>
    %cst_41 = arith.constant 0.176776692 : f32
    %141 = vector.broadcast %cst_41 : f32 to vector<16x16xf32>
    %142 = arith.mulf %140, %141 : vector<16x16xf32>
    %143 = arith.addf %142, %67 : vector<16x16xf32>
    %cst_42 = arith.constant dense<0xFF800000> : vector<16xf32>
    %144 = vector.multi_reduction <maximumf>, %143, %cst_42 [1] : vector<16x16xf32> to vector<16xf32>
    %145 = vector.shape_cast %144 : vector<16xf32> to vector<16x1xf32>
    %146 = vector.broadcast %145 : vector<16x1xf32> to vector<16x16xf32>
    %147 = arith.subf %143, %146 : vector<16x16xf32>
    %148 = math.exp %147 : vector<16x16xf32>
    %cst_43 = arith.constant dense<0.000000e+00> : vector<16xf32>
    %149 = vector.multi_reduction <add>, %148, %cst_43 [1] : vector<16x16xf32> to vector<16xf32>
    %150 = vector.shape_cast %149 : vector<16xf32> to vector<16x1xf32>
    %151 = tpu.reciprocal %150 {approx = true} : vector<16x1xf32> -> vector<16x1xf32>
    %152 = vector.broadcast %151 : vector<16x1xf32> to vector<16x16xf32>
    %153 = arith.mulf %148, %152 : vector<16x16xf32>
    %154 = arith.truncf %153 : vector<16x16xf32> to vector<16x16xbf16>
    %cst_44 = arith.constant dense<0.000000e+00> : vector<16x32xf32>
    %155 = tpu.matmul %154, %139, %cst_44 {dimension_numbers = #tpu.dot_dimension_numbers<[1], [0], [0], [1], [0, 0, 1, 1], [], []>} : vector<16x16xbf16>, vector<16x32xbf16>, vector<16x32xf32> -> vector<16x32xf32>
    %156 = tpu.concatenate %89, %111, %133, %155 in 1 : vector<16x32xf32>, vector<16x32xf32>, vector<16x32xf32>, vector<16x32xf32> -> vector<16x128xf32>
    %c0_45 = arith.constant 0 : index
    %c0_46 = arith.constant 0 : index
    %c0_47 = arith.constant 0 : index
    %157 = vector.load %arg13[%c0_45, %c0_46, %c0_47] : memref<1x16x128xf32, #tpu.memory_space<vmem>>, vector<1x16x128xf32>
    %158 = vector.shape_cast %157 : vector<1x16x128xf32> to vector<16x128xf32>
    %159 = arith.addf %156, %158 : vector<16x128xf32>
    %160 = arith.truncf %159 : vector<16x128xf32> to vector<16x128xbf16>
    %c0_48 = arith.constant 0 : index
    %c0_49 = arith.constant 0 : index
    %c0_50 = arith.constant 0 : index
    %161 = vector.load %arg7[%c0_48, %c0_49, %c0_50] : memref<1x128x128xbf16, #tpu.memory_space<vmem>>, vector<1x128x128xbf16>
    %162 = vector.shape_cast %161 : vector<1x128x128xbf16> to vector<128x128xbf16>
    %cst_51 = arith.constant dense<0.000000e+00> : vector<16x128xf32>
    %163 = tpu.matmul %160, %162, %cst_51 {dimension_numbers = #tpu.dot_dimension_numbers<[1], [0], [0], [1], [0, 0, 1, 1], [], []>} : vector<16x128xbf16>, vector<128x128xbf16>, vector<16x128xf32> -> vector<16x128xf32>
    %c0_52 = arith.constant 0 : index
    %c0_53 = arith.constant 0 : index
    %c0_54 = arith.constant 0 : index
    %164 = vector.load %arg8[%c0_52, %c0_53, %c0_54] : memref<1x1x128xf32, #tpu.memory_space<vmem>>, vector<1x1x128xf32>
    %165 = vector.shape_cast %164 : vector<1x1x128xf32> to vector<1x128xf32>
    %166 = vector.broadcast %165 : vector<1x128xf32> to vector<16x128xf32>
    %167 = arith.addf %163, %166 : vector<16x128xf32>
    %168 = arith.addf %3, %167 : vector<16x128xf32>
    %169 = arith.mulf %168, %168 : vector<16x128xf32>
    %cst_55 = arith.constant dense<0.000000e+00> : vector<16xf32>
    %170 = vector.multi_reduction <add>, %169, %cst_55 [1] : vector<16x128xf32> to vector<16xf32>
    %171 = vector.shape_cast %170 : vector<16xf32> to vector<16x1xf32>
    %cst_56 = arith.constant 1.280000e+02 : f32
    %172 = vector.broadcast %cst_56 : f32 to vector<16x1xf32>
    %173 = arith.divf %171, %172 : vector<16x1xf32>
    %cst_57 = arith.constant 9.99999997E-7 : f32
    %174 = vector.broadcast %cst_57 : f32 to vector<16x1xf32>
    %175 = arith.addf %173, %174 : vector<16x1xf32>
    %176 = math.rsqrt %175 : vector<16x1xf32>
    %177 = vector.broadcast %176 : vector<16x1xf32> to vector<16x128xf32>
    %178 = arith.mulf %168, %177 : vector<16x128xf32>
    %179 = arith.truncf %178 : vector<16x128xf32> to vector<16x128xbf16>
    %c0_58 = arith.constant 0 : index
    %c0_59 = arith.constant 0 : index
    %c0_60 = arith.constant 0 : index
    %180 = vector.load %arg9[%c0_58, %c0_59, %c0_60] : memref<1x128x512xbf16, #tpu.memory_space<vmem>>, vector<1x128x512xbf16>
    %181 = vector.shape_cast %180 : vector<1x128x512xbf16> to vector<128x512xbf16>
    %cst_61 = arith.constant dense<0.000000e+00> : vector<16x512xf32>
    %182 = tpu.matmul %179, %181, %cst_61 {dimension_numbers = #tpu.dot_dimension_numbers<[1], [0], [0], [1], [0, 0, 1, 1], [], []>} : vector<16x128xbf16>, vector<128x512xbf16>, vector<16x512xf32> -> vector<16x512xf32>
    %c0_62 = arith.constant 0 : index
    %c0_63 = arith.constant 0 : index
    %c0_64 = arith.constant 0 : index
    %183 = vector.load %arg10[%c0_62, %c0_63, %c0_64] : memref<1x1x512xf32, #tpu.memory_space<vmem>>, vector<1x1x512xf32>
    %184 = vector.shape_cast %183 : vector<1x1x512xf32> to vector<1x512xf32>
    %185 = vector.broadcast %184 : vector<1x512xf32> to vector<16x512xf32>
    %186 = arith.addf %182, %185 : vector<16x512xf32>
    %187 = vector.extract_strided_slice %186 {offsets = [0, 0], sizes = [16, 256], strides = [1, 1]} : vector<16x512xf32> to vector<16x256xf32>
    %188 = vector.extract_strided_slice %186 {offsets = [0, 256], sizes = [16, 256], strides = [1, 1]} : vector<16x512xf32> to vector<16x256xf32>
    %189 = arith.negf %187 : vector<16x256xf32>
    %190 = math.exp %189 : vector<16x256xf32>
    %cst_65 = arith.constant 1.000000e+00 : f32
    %191 = vector.broadcast %cst_65 : f32 to vector<16x256xf32>
    %192 = arith.addf %191, %190 : vector<16x256xf32>
    %193 = arith.divf %191, %192 : vector<16x256xf32>
    %194 = arith.mulf %187, %193 : vector<16x256xf32>
    %195 = arith.mulf %194, %188 : vector<16x256xf32>
    %196 = arith.truncf %195 : vector<16x256xf32> to vector<16x256xbf16>
    %c0_66 = arith.constant 0 : index
    %c0_67 = arith.constant 0 : index
    %c0_68 = arith.constant 0 : index
    %197 = vector.load %arg11[%c0_66, %c0_67, %c0_68] : memref<1x256x128xbf16, #tpu.memory_space<vmem>>, vector<1x256x128xbf16>
    %198 = vector.shape_cast %197 : vector<1x256x128xbf16> to vector<256x128xbf16>
    %cst_69 = arith.constant dense<0.000000e+00> : vector<16x128xf32>
    %199 = tpu.matmul %196, %198, %cst_69 {dimension_numbers = #tpu.dot_dimension_numbers<[1], [0], [0], [1], [0, 0, 1, 1], [], []>} : vector<16x256xbf16>, vector<256x128xbf16>, vector<16x128xf32> -> vector<16x128xf32>
    %c0_70 = arith.constant 0 : index
    %c0_71 = arith.constant 0 : index
    %c0_72 = arith.constant 0 : index
    %200 = vector.load %arg12[%c0_70, %c0_71, %c0_72] : memref<1x1x128xf32, #tpu.memory_space<vmem>>, vector<1x1x128xf32>
    %201 = vector.shape_cast %200 : vector<1x1x128xf32> to vector<1x128xf32>
    %202 = vector.broadcast %201 : vector<1x128xf32> to vector<16x128xf32>
    %203 = arith.addf %199, %202 : vector<16x128xf32>
    %204 = arith.addf %168, %203 : vector<16x128xf32>
    %c0_73 = arith.constant 0 : index
    %c0_74 = arith.constant 0 : index
    %205 = vector.load %arg16[%c0_73, %c0_74] : memref<16x128xf32, #tpu.memory_space<vmem>>, vector<16x128xf32>
    tpu.vector_store %arg16[%c0_73, %c0_74], %204 {strides = array<i32>} : memref<16x128xf32, #tpu.memory_space<vmem>>, vector<16x128xf32>,
    %c3_i32 = arith.constant 3 : i32
    %206 = arith.cmpi eq, %arg0, %c3_i32 : i32
    %207 = arith.extui %206 : i1 to i32
    %c0_i32_75 = arith.constant 0 : i32
    %208 = arith.cmpi ne, %207, %c0_i32_75 : i32
    scf.if %208 {
      %c0_76 = arith.constant 0 : index
      %c0_77 = arith.constant 0 : index
      %209 = vector.load %arg16[%c0_76, %c0_77] : memref<16x128xf32, #tpu.memory_space<vmem>>, vector<16x128xf32>
      %210 = arith.mulf %209, %209 : vector<16x128xf32>
      %cst_78 = arith.constant dense<0.000000e+00> : vector<16xf32>
      %211 = vector.multi_reduction <add>, %210, %cst_78 [1] : vector<16x128xf32> to vector<16xf32>
      %212 = vector.shape_cast %211 : vector<16xf32> to vector<16x1xf32>
      %cst_79 = arith.constant 1.280000e+02 : f32
      %213 = vector.broadcast %cst_79 : f32 to vector<16x1xf32>
      %214 = arith.divf %212, %213 : vector<16x1xf32>
      %cst_80 = arith.constant 9.99999997E-7 : f32
      %215 = vector.broadcast %cst_80 : f32 to vector<16x1xf32>
      %216 = arith.addf %214, %215 : vector<16x1xf32>
      %217 = math.rsqrt %216 : vector<16x1xf32>
      %218 = vector.broadcast %217 : vector<16x1xf32> to vector<16x128xf32>
      %219 = arith.mulf %209, %218 : vector<16x128xf32>
      %220 = arith.truncf %219 : vector<16x128xf32> to vector<16x128xbf16>
      %c0_81 = arith.constant 0 : index
      %c0_82 = arith.constant 0 : index
      %221 = vector.load %arg14[%c0_81, %c0_82] : memref<128x512xbf16, #tpu.memory_space<vmem>>, vector<128x512xbf16>
      %cst_83 = arith.constant dense<0.000000e+00> : vector<16x512xf32>
      %222 = tpu.matmul %220, %221, %cst_83 {dimension_numbers = #tpu.dot_dimension_numbers<[1], [0], [0], [1], [0, 0, 1, 1], [], []>} : vector<16x128xbf16>, vector<128x512xbf16>, vector<16x512xf32> -> vector<16x512xf32>
      %c0_84 = arith.constant 0 : index
      %c0_85 = arith.constant 0 : index
      %223 = vector.load %arg15[%c0_84, %c0_85] : memref<16x512xf32, #tpu.memory_space<vmem>>, vector<16x512xf32>
      tpu.vector_store %arg15[%c0_84, %c0_85], %222 {strides = array<i32>} : memref<16x512xf32, #tpu.memory_space<vmem>>, vector<16x512xf32>,
    } else {
    }
    return
  }
  func.func @transform_0(%arg0: i32) -> (i32, i32) {
    %c0_i32 = arith.constant 0 : i32
    %c0_i32_0 = arith.constant 0 : i32
    %c0_i32_1 = arith.constant 0 : i32
    return %c0_i32, %c0_i32_0 : i32, i32
  }
  func.func @transform_1(%arg0: i32) -> (i32, i32) {
    %c0_i32 = arith.constant 0 : i32
    %c0_i32_0 = arith.constant 0 : i32
    %c0_i32_1 = arith.constant 0 : i32
    return %c0_i32, %c0_i32_0 : i32, i32
  }
  func.func @transform_2(%arg0: i32) -> (i32, i32) {
    %c0_i32 = arith.constant 0 : i32
    %c0_i32_0 = arith.constant 0 : i32
    %c0_i32_1 = arith.constant 0 : i32
    return %c0_i32, %c0_i32_0 : i32, i32
  }
  func.func @transform_3(%arg0: i32) -> (i32, i32) {
    %c0_i32 = arith.constant 0 : i32
    %c0_i32_0 = arith.constant 0 : i32
    %c0_i32_1 = arith.constant 0 : i32
    return %c0_i32, %c0_i32_0 : i32, i32
  }
  func.func @transform_4(%arg0: i32) -> (i32, i32, i32) {
    %c0_i32 = arith.constant 0 : i32
    %c0_i32_0 = arith.constant 0 : i32
    %c0_i32_1 = arith.constant 0 : i32
    return %arg0, %c0_i32, %c0_i32_0 : i32, i32, i32
  }
  func.func @transform_5(%arg0: i32) -> (i32, i32, i32) {
    %c0_i32 = arith.constant 0 : i32
    %c0_i32_0 = arith.constant 0 : i32
    %c0_i32_1 = arith.constant 0 : i32
    return %arg0, %c0_i32, %c0_i32_0 : i32, i32, i32
  }
  func.func @transform_6(%arg0: i32) -> (i32, i32, i32) {
    %c0_i32 = arith.constant 0 : i32
    %c0_i32_0 = arith.constant 0 : i32
    %c0_i32_1 = arith.constant 0 : i32
    return %arg0, %c0_i32, %c0_i32_0 : i32, i32, i32
  }
  func.func @transform_7(%arg0: i32) -> (i32, i32, i32) {
    %c0_i32 = arith.constant 0 : i32
    %c0_i32_0 = arith.constant 0 : i32
    %c0_i32_1 = arith.constant 0 : i32
    return %arg0, %c0_i32, %c0_i32_0 : i32, i32, i32
  }
  func.func @transform_8(%arg0: i32) -> (i32, i32, i32) {
    %c0_i32 = arith.constant 0 : i32
    %c0_i32_0 = arith.constant 0 : i32
    %c0_i32_1 = arith.constant 0 : i32
    return %arg0, %c0_i32, %c0_i32_0 : i32, i32, i32
  }
  func.func @transform_9(%arg0: i32) -> (i32, i32, i32) {
    %c0_i32 = arith.constant 0 : i32
    %c0_i32_0 = arith.constant 0 : i32
    %c0_i32_1 = arith.constant 0 : i32
    return %arg0, %c0_i32, %c0_i32_0 : i32, i32, i32
  }
  func.func @transform_10(%arg0: i32) -> (i32, i32, i32) {
    %c0_i32 = arith.constant 0 : i32
    %c0_i32_0 = arith.constant 0 : i32
    %c0_i32_1 = arith.constant 0 : i32
    return %arg0, %c0_i32, %c0_i32_0 : i32, i32, i32
  }
  func.func @transform_11(%arg0: i32) -> (i32, i32, i32) {
    %c0_i32 = arith.constant 0 : i32
    %c0_i32_0 = arith.constant 0 : i32
    %c0_i32_1 = arith.constant 0 : i32
    return %arg0, %c0_i32, %c0_i32_0 : i32, i32, i32
  }
  func.func @transform_12(%arg0: i32) -> (i32, i32, i32) {
    %c0_i32 = arith.constant 0 : i32
    %c0_i32_0 = arith.constant 0 : i32
    %c0_i32_1 = arith.constant 0 : i32
    return %arg0, %c0_i32, %c0_i32_0 : i32, i32, i32
  }
  func.func @transform_13(%arg0: i32) -> (i32, i32) {
    %c0_i32 = arith.constant 0 : i32
    %c0_i32_0 = arith.constant 0 : i32
    %c0_i32_1 = arith.constant 0 : i32
    return %c0_i32, %c0_i32_0 : i32, i32
  }
  func.func @transform_14(%arg0: i32) -> (i32, i32) {
    %c0_i32 = arith.constant 0 : i32
    %c0_i32_0 = arith.constant 0 : i32
    %c0_i32_1 = arith.constant 0 : i32
    return %c0_i32, %c0_i32_0 : i32, i32
  }
}

</mosaic_0001>

<bundles_post_ra>
// kernel: forward.3
= control target key start
LH: loop header
LB: loop body
LE: loop exit
PB: predicated region body
PF: predicated region fallthrough
CT: control target
= control target key end

     0   :  { %s3191_s29 = smov 0   ;;  %s3697_s0 = inlined_call_operand.vmem [shape: f32[16,128], index: 0, kind: input, shape index: {}]   ;;  %s3698_s1 = inlined_call_operand.vmem [shape: f32[16,128], index: 1, kind: input, shape index: {}]   ;;  %s3699_s2 = inlined_call_operand.vmem [shape: f32[16,128], index: 2, kind: input, shape index: {}]   ;;  %s3700_s3 = inlined_call_operand.vmem [shape: f32[16,16], index: 3, kind: input, shape index: {}]   ;;  %s3701_s4 = inlined_call_operand.vmem [shape: bf16[4,128,384], index: 4, kind: input, shape index: {}]   ;;  %s3702_s5 = inlined_call_operand.vmem [shape: f32[4,1,384], index: 5, kind: input, shape index: {}]   ;;  %s3703_s6 = inlined_call_operand.vmem [shape: bf16[4,128,128], index: 6, kind: input, shape index: {}]   ;;  %s3704_s7 = inlined_call_operand.vmem [shape: f32[4,1,128], index: 7, kind: input, shape index: {}]   ;;  %s3705_s8 = inlined_call_operand.vmem [shape: bf16[4,128,512], index: 8, kind: input, shape index: {}]   ;;  %s3706_s9 = inlined_call_operand.vmem [shape: f32[4,1,512], index: 9, kind: input, shape index: {}]   ;;  %s3707_s10 = inlined_call_operand.vmem [shape: bf16[4,256,128], index: 10, kind: input, shape index: {}]   ;;  %s3708_s11 = inlined_call_operand.vmem [shape: f32[4,1,128], index: 11, kind: input, shape index: {}]   ;;  %s3709_s12 = inlined_call_operand.vmem [shape: f32[4,16,128], index: 12, kind: input, shape index: {}]   ;;  %s3710_s13 = inlined_call_operand.vmem [shape: bf16[128,512], index: 13, kind: input, shape index: {}]   ;;  %s3711_s14 = inlined_call_operand.vmem [shape: f32[16,512], index: 14, kind: output, shape index: {}]  }
   0x1   :  { %3717 = sst [smem:[#allocation4_spill]] %s3698_s1 }
   0x2   :  { %3718 = sst [smem:[#allocation5_spill]] %s3700_s3 }
   0x3   :  { %3719 = sst [smem:[#allocation6_spill]] %s3701_s4 }
   0x4   :  { %3720 = sst [smem:[#allocation7_spill]] %s3710_s13 }
   0x5   :  { %3721 = sst [smem:[#allocation8_spill]] %s3711_s14 }
   0x6 LB: > { %3722 = sst [smem:[#allocation3_spill]] %s3105_s29  ;;  %s3197_s30 = sadd.s32 4294967295, %s3105_s29   ;;  %s3105_s29 = sphi %s3191_s29, %s24_s29  }
   0x7   : > { %p2577_p0 = scmp.ge.s32.totalorder %s3105_s29, 1  ;;  %p481_p1 = scmp.lt.s32.totalorder %s3105_s29, 5 }
   0x9   : > { %p482_p2 = pnand %p2577_p0, %p481_p1 }
   0xa   : > { %p556_p3 = scmp.lt.s32.totalorder (!%p482_p2), %s3197_s30, 3  ;;  %s3723_s4 = sld [smem:[#allocation6_spill]] (!%p482_p2) }
   0xb   : > { %485 = sbr.rel (%p482_p2) target bundleno = 2856 (0xb28), region = 76  ;;  %p2588_p4 = scmp.ne.s32.totalorder (!%p482_p2), %s3197_s30, 0 }
  0x12   : > { %s3203_s15 = scalar_select %p556_p3, %s3197_s30, 3 }
  0x13   : > { %v600_v0 = vld [vmem:[%s3697_s0] sm:$0xff] (!%p2588_p4)  ;;  %v601_v1 = vld [vmem:[%s3697_s0 + $0x8] sm:$0xff] (!%p2588_p4) }
  0x14   : > { %s2866_s16 = smul.u32 192, %s3203_s15  ;;  %s2718_s17 = sshll.u32 %s3203_s15, 6  ;;  %602 = vst [vmem:[#allocation2] sm:$0xff] (!%p2588_p4), %v600_v0  ;;  %603 = vst [vmem:[#allocation2 + $0x8] sm:$0xff] (!%p2588_p4), %v601_v1 }
  0x15   : > { %s2867_s18 = smul.u32 3, %s3203_s15  ;;  %s3211_s21 = scalar_lea.vmem %s3703_s6, %s2718_s17 }
  0x16   : > { %s3216_s24 = scalar_lea.vmem %s3723_s4, %s2866_s16  ;;  %s2719_s13 = sshll.u32 %s3203_s15, 8 }
  0x17   : > { %s3225_s14 = scalar_lea.vmem %s3702_s5, %s2867_s18  ;;  %s3231_s17 = scalar_lea.vmem %s3705_s8, %s2719_s13 }
  0x18   : > { %s2583_s19 = sshll.u32 %s3203_s15, 2  ;;  %s2720_s23 = sshll.u32 %s3203_s15, 7 }
  0x19   : > { %s3237_s16 = scalar_lea.vmem %s3706_s9, %s2583_s19  ;;  %s3243_s27 = scalar_lea.vmem %s3707_s10, %s2720_s23 }
  0x1a   : > { %s589_s28 = scalar_lea.vmem %s3708_s11, %s3203_s15  ;;  %s2721_s4 = sshll.u32 %s3203_s15, 4 }
  0x1b   : > { %s3253_s13 = scalar_lea.vmem %s3709_s12, %s2721_s4  ;;  %599 = sbr.rel (%p2588_p4) target bundleno = 34 (0x22), region = 80 }
  0x22 PF: > { %v3262_v2 = vld [vmem:[#allocation2] sm:$0xff]  ;;  %v3264_v3 = vld [vmem:[#allocation2 + $0x8] sm:$0xff]  ;;  %v3107_v6 = vmov 0.0   ;;  %v2895_v14 = vld [vmem:[%s3216_s24 + $0x30] ss:$12 sps:$4 sm:$0xff]   ;;  %v3108_v31 = vmov 0   ;;  %v656_v43 = vlaneseq  ;;  %s3726_s1 = scalar_lea.vmem %s3704_s7, %s3203_s15 }
  0x23   : > { %v606_v4 = vmul.f32 %v3262_v2, %v3262_v2  ;;  %v2885_v5 = vld [vmem:[%s3216_s24 + $0x4] ss:$12 sps:$4 sm:$0xff]   ;;  %2778 = vmatprep.subr.bf16.mxu1 %v3107_v6  ;;  %v2887_v7 = vld [vmem:[%s3216_s24] ss:$12 sps:$4 sm:$0xff]   ;;  %v2888_v8 = vld [vmem:[%s3216_s24 + $0x8] ss:$12 sps:$4 sm:$0xff]   ;;  %v607_v9 = vmul.f32 %v3264_v3, %v3264_v3  ;;  %831 = vmatprep.mubr.bf16.mxu0 %v3108_v31 }
  0x24   : > { %799 = vmatprep.subr.bf16.mxu0 %v2885_v5  ;;  %v2889_v10 = vld [vmem:[%s3216_s24 + $0x1c] ss:$12 sps:$4 sm:$0xff]   ;;  %2779 = vmatpush3.bf16.msra.mxu1 %v2888_v8  ;;  %v2891_v11 = vld [vmem:[%s3216_s24 + $0x18] ss:$12 sps:$4 sm:$0xff]   ;;  %v2892_v12 = vld [vmem:[%s3216_s24 + $0x20] ss:$12 sps:$4 sm:$0xff]  }
  0x25   : > { %608 = vadd.xlane.f32.xlu0 %v606_v4  ;;  %800 = vmatpush1.bf16.msra.mxu0 %v2887_v7  ;;  %v2893_v13 = vld [vmem:[%s3216_s24 + $0x34] ss:$12 sps:$4 sm:$0xff]   ;;  %v2896_v15 = vld [vmem:[%s3216_s24 + $0x38] ss:$12 sps:$4 sm:$0xff]   ;;  %v2900_v18 = vld [vmem:[%s3216_s24 + $0x50] ss:$12 sps:$4 sm:$0xff]  }
  0x26   : > { %801 = vmatprep.subr.bf16.mxu0 %v2889_v10  ;;  %2780 = vmatprep.subr.bf16.mxu1 %v3107_v6  ;;  %v2897_v16 = vld [vmem:[%s3216_s24 + $0x4c] ss:$12 sps:$4 sm:$0xff]   ;;  %v2899_v17 = vld [vmem:[%s3216_s24 + $0x48] ss:$12 sps:$4 sm:$0xff]   ;;  %v2901_v19 = vld [vmem:[%s3216_s24 + $0x64] ss:$12 sps:$4 sm:$0xff]  }
  0x27   : > { %v2903_v20 = vld [vmem:[%s3216_s24 + $0x60] ss:$12 sps:$4 sm:$0xff]   ;;  %v2904_v21 = vld [vmem:[%s3216_s24 + $0x68] ss:$12 sps:$4 sm:$0xff]   ;;  %v2907_v23 = vld [vmem:[%s3216_s24 + $0x78] ss:$12 sps:$4 sm:$0xff]  }
  0x28   : > { %2781 = vmatpush3.bf16.msra.mxu1 %v2892_v12  ;;  %v2905_v22 = vld [vmem:[%s3216_s24 + $0x7c] ss:$12 sps:$4 sm:$0xff]   ;;  %v2908_v24 = vld [vmem:[%s3216_s24 + $0x80] ss:$12 sps:$4 sm:$0xff]   ;;  %v2912_v27 = vld [vmem:[%s3216_s24 + $0x98] ss:$12 sps:$4 sm:$0xff]  }
  0x29   : > { %610 = vadd.xlane.f32.xlu0 %v607_v9  ;;  %802 = vmatpush1.bf16.msra.mxu0 %v2891_v11  ;;  %v2909_v25 = vld [vmem:[%s3216_s24 + $0x94] ss:$12 sps:$4 sm:$0xff]   ;;  %v2911_v26 = vld [vmem:[%s3216_s24 + $0x90] ss:$12 sps:$4 sm:$0xff]   ;;  %v2913_v28 = vld [vmem:[%s3216_s24 + $0xac] ss:$12 sps:$4 sm:$0xff]  }
  0x2a   : > { %803 = vmatprep.subr.bf16.mxu0 %v2893_v13  ;;  %2782 = vmatprep.subr.bf16.mxu1 %v3107_v6  ;;  %v2915_v29 = vld [vmem:[%s3216_s24 + $0xa8] ss:$12 sps:$4 sm:$0xff]   ;;  %v2916_v30 = vld [vmem:[%s3216_s24 + $0xb0] ss:$12 sps:$4 sm:$0xff]   ;;  %vm3109_vm0 = vmmov 0   ;;  %v3313_v44 = vshrl.u32 %v656_v43, 7 }
  0x2b   : > { %2794 = vmatprep.mubr.msk.bf16.mxu1 %vm3109_vm0, %v3107_v6  ;;  %v654_v46 = vld [vmem:[%s3225_s14] sm:$0x7]  ;;  %s3110_s4 = smov 16   ;;  %s3111_s14 = smov 112   ;;  %vm907_vm1 = vcmask 130048   ;;  %vm910_vm2 = vcmask 261120  }
  0x2c   : > { %2783 = vmatpush3.bf16.msra.mxu1 %v2896_v15  ;;  %v658_v45 = vsub.s32 0, %v3313_v44  ;;  %v662_v47 = vsub.s32 1, %v3313_v44  ;;  %v666_v48 = vsub.s32 2, %v3313_v44  ;;  %vm913_vm3 = vcmask 392192   ;;  %s3724_s18 = sld [smem:[#allocation4_spill]]  ;;  %s3112_s22 = smov 96  }
  0x2d   : > { %804 = vmatpush1.bf16.msra.mxu0 %v2895_v14  ;;  %2784 = vmatprep.subr.bf16.mxu1 %v3107_v6  ;;  %vm916_vm4 = vcmask 523264   ;;  %vm919_vm5 = vcmask 654336   ;;  %vm922_vm6 = vcmask 785408   ;;  %vm925_vm7 = vcmask 916480   ;;  %s3113_s23 = smov 64   ;;  %s3725_s25 = sld [smem:[#allocation5_spill]] }
  0x2e   : > { %805 = vmatprep.subr.bf16.mxu0 %v2897_v16  ;;  %v659_v49 = vrot.slane %v654_v46, %v658_v45  ;;  %v663_v50 = vrot.slane %v654_v46, %v662_v47  ;;  %v667_v51 = vrot.slane %v654_v46, %v666_v48  ;;  %p2683_p5 = scmp.ne.s32.totalorder %s3197_s30, 3 }
  0x2f   : > { %s3728_s29 = sld [smem:[#allocation8_spill]] (!%p2683_p5) }
  0x30   : > { %2785 = vmatpush3.bf16.msra.mxu1 %v2900_v18 }
  0x31   : > { %806 = vmatpush1.bf16.msra.mxu0 %v2899_v17  ;;  %2786 = vmatprep.subr.bf16.mxu1 %v3107_v6 }
  0x32   : > { %807 = vmatprep.subr.bf16.mxu0 %v2901_v19 }
  0x34   : > { %2787 = vmatpush3.bf16.msra.mxu1 %v2904_v21 }
  0x35   : > { %808 = vmatpush1.bf16.msra.mxu0 %v2903_v20  ;;  %2788 = vmatprep.subr.bf16.mxu1 %v3107_v6 }
  0x36   : > { %809 = vmatprep.subr.bf16.mxu0 %v2905_v22 }
  0x38   : > { %2789 = vmatpush3.bf16.msra.mxu1 %v2908_v24  ;;  %v885_v24 = vld [vmem:[%s3699_s2] sm:$0xff] }
  0x39   : > { %810 = vmatpush1.bf16.msra.mxu0 %v2907_v23  ;;  %2790 = vmatprep.subr.bf16.mxu1 %v3107_v6 }
  0x3a   : > { %811 = vmatprep.subr.bf16.mxu0 %v2909_v25 }
  0x3c   : > { %2791 = vmatpush3.bf16.msra.mxu1 %v2912_v27  ;;  %v883_v27 = vld [vmem:[%s3724_s18] sm:$0xff] }
  0x3d   : > { %812 = vmatpush1.bf16.msra.mxu0 %v2911_v26  ;;  %2792 = vmatprep.subr.bf16.mxu1 %v3107_v6 }
  0x3e   : > { %813 = vmatprep.subr.bf16.mxu0 %v2913_v28  ;;  %v884_v28 = vld [vmem:[%s3724_s18 + $0x8] sm:$0xff] }
  0x40   : > { %2793 = vmatpush3.bf16.msra.mxu1 %v2916_v30 }
  0x41   : > { %814 = vmatpush1.bf16.msra.mxu0 %v2915_v29  ;;  %2804 = vmatprep.subr.bf16.mxu1 %v3107_v6 }
  0x42   : > { %2798 = vmatprep.subr.bf16.mxu0 %v3107_v6 }
  0xb2   : > { %v609_v32 = vpop.xlane.xlu0 %608 }
  0xb3   : > { %v613_v33 = vmul.f32 0.0078125, %v609_v32  ;;  %v886_v32 = vld [vmem:[%s3699_s2 + $0x8] sm:$0xff] }
  0xb5   : > { %v615_v34 = vadd.f32 1e-06, %v613_v33 }
  0xb6   : > { %v611_v35 = vpop.xlane.xlu0 %610 }
  0xb7   : > { %v614_v36 = vmul.f32 0.0078125, %v611_v35  ;;  %2989 = vrsqrt.f32 %v615_v34 }
  0xb9   : > { %v616_v37 = vadd.f32 1e-06, %v614_v36 }
  0xbb   : > { %2991 = vrsqrt.f32 %v616_v37 }
  0xc1   : > { %v2990_v38 = vpop.eup %2989 }
  0xc2   : > { %v619_v40 = vmul.f32 %v2990_v38, %v3262_v2 }
  0xc5   : > { %v2992_v39 = vpop.eup %2991 }
  0xc6   : > { %v620_v41 = vmul.f32 %v2992_v39, %v3264_v3 }
  0xc8   : > { %v621_v42 = vpack.c.bf16 %v620_v41, %v619_v40 }
  0xca   : > { %832 = vmatmul.mubr.bf16.vlgmr.msra.gmra.mrb[0].mxu0 %v621_v42  ;;  %2795 = vmatmul.mubr.bf16.vlgmr.msra.gmra.mrb[0].mxu1 %v621_v42 }
  0xcb   : > { %2800 = vmatprep.mubr.msk.bf16.mxu0 %vm3109_vm0, %v3107_v6  ;;  %2806 = vmatprep.mubr.msk.bf16.mxu1 %vm3109_vm0, %v3107_v6 }
 0x19d   : > { %v833_v52 = vpop.f32.mrb[0].mxu0  ;;  %v876_v53 = vpop.f32.mrb[0].mxu1 }
 0x19e   : > { %v3325_v54 = vadd.f32 %v833_v52, %v659_v49  ;;  %v835_v55 = vpop.f32.mrb[1].mxu0  ;;  %v2796_v56 = vpop.f32.mrb[1].mxu1  ;;  %v877_v60 = vadd.f32 %v876_v53, %v667_v51 }
 0x19f   : > { %v3327_v57 = vadd.f32 %v835_v55, %v663_v50  ;;  %v837_v58 = vpop.f32.mrb[2].mxu0  ;;  %v879_v59 = vpop.f32.mrb[2].mxu1 }
 0x1a0   : > { %v880_v61 = vadd.f32 %v879_v59, %v667_v51  ;;  %v839_v62 = vpop.f32.mrb[3].mxu0  ;;  %v2797_v63 = vpop.f32.mrb[3].mxu1  ;;  %v889_v0 = vsub.f32 0.0, %v3325_v54  ;;  %v3336_v3 = vadd.f32 %v837_v58, %v659_v49 }
 0x1a1   : > { %946 = vrot.lane.b32.xlu0 %v3327_v57, %s3110_s4  ;;  %v934_v2 = vsub.f32 0.0, %v3327_v57  ;;  %v840_v4 = vadd.f32 %v839_v62, %v663_v50  ;;  %v932_v38 = vmul.f32 %v883_v27, %v3327_v57  ;;  %v887_v63 = vmul.f32 %v883_v27, %v3325_v54 }
 0x1a2   : > { %v3331_v1 = vpack.c.bf16 %v880_v61, %v877_v60  ;;  %893 = vrot.lane.b32.xlu1 %v889_v0, %s3111_s14  ;;  %v890_v5 = vsub.f32 0.0, %v3336_v3  ;;  %v888_v0 = vmul.f32 %v884_v28, %v3336_v3 }
 0x1a3   : > { %v935_v7 = vsub.f32 0.0, %v840_v4  ;;  %v933_v39 = vmul.f32 %v884_v28, %v840_v4 }
 0x1a4   : > { %2805 = vmatpush3.bf16.msra.mxu1 %v3331_v1 }
 0x1a5   : > { %2816 = vmatprep.subr.bf16.mxu1 %v3107_v6 }
 0x1a6   : > { %938 = vrot.lane.b32.xlu1 %v934_v2, %s3111_s14 }
 0x1aa   : > { %948 = vrot.lane.b32.xlu1 %v840_v4, %s3110_s4 }
 0x1ae   : > { %895 = vrot.lane.b32.xlu1 %v890_v5, %s3111_s14 }
 0x1b2   : > { %940 = vrot.lane.b32.xlu1 %v935_v7, %s3111_s14 }
 0x1b6   : > { %901 = vrot.lane.b32.xlu1 %v3325_v54, %s3110_s4 }
 0x1ba   : > { %903 = vrot.lane.b32.xlu1 %v3336_v3, %s3110_s4  ;;  %s3114_s4 = smov 32  }
 0x213   : > { %v947_v9 = vpop.permute.xlu0 %946 }
 0x214   : > { %v894_v8 = vpop.permute.xlu1 %893 }
 0x218   : > { %v939_v10 = vpop.permute.xlu1 %938 }
 0x219   : > { %v952_v11 = vsel %vm907_vm1, %v939_v10, %v947_v9 }
 0x21a   : > { %v954_v12 = vsel %vm910_vm2, %v952_v11, %v939_v10 }
 0x21b   : > { %v956_v13 = vsel %vm913_vm3, %v954_v12, %v947_v9 }
 0x21c   : > { %v949_v14 = vpop.permute.xlu1 %948  ;;  %v958_v15 = vsel %vm916_vm4, %v956_v13, %v939_v10 }
 0x21d   : > { %v960_v17 = vsel %vm919_vm5, %v958_v15, %v947_v9 }
 0x21e   : > { %v962_v18 = vsel %vm922_vm6, %v960_v17, %v939_v10 }
 0x21f   : > { %v964_v22 = vsel %vm925_vm7, %v962_v18, %v947_v9 }
 0x220   : > { %v896_v16 = vpop.permute.xlu1 %895  ;;  %v966_v34 = vmul.f32 %v964_v22, %v885_v24 }
 0x222   : > { %v968_v51 = vadd.f32 %v966_v34, %v932_v38 }
 0x224   : > { %v941_v19 = vpop.permute.xlu1 %940 }
 0x225   : > { %v953_v20 = vsel %vm907_vm1, %v941_v19, %v949_v14 }
 0x226   : > { %v955_v21 = vsel %vm910_vm2, %v953_v20, %v941_v19  ;;  %v971_v20 = vld [vmem:[%s3725_s25 + $0x8] sm:$0xff] }
 0x227   : > { %v957_v23 = vsel %vm913_vm3, %v955_v21, %v949_v14 }
 0x228   : > { %v959_v25 = vsel %vm916_vm4, %v957_v23, %v941_v19  ;;  %v902_v26 = vpop.permute.xlu1 %901 }
 0x229   : > { %v961_v29 = vsel %vm919_vm5, %v959_v25, %v949_v14  ;;  %v908_v30 = vsel %vm907_vm1, %v894_v8, %v902_v26 }
 0x22a   : > { %v963_v33 = vsel %vm922_vm6, %v961_v29, %v941_v19  ;;  %v911_v35 = vsel %vm910_vm2, %v908_v30, %v894_v8 }
 0x22b   : > { %v965_v36 = vsel %vm925_vm7, %v963_v33, %v949_v14  ;;  %v914_v37 = vsel %vm913_vm3, %v911_v35, %v902_v26 }
 0x22c   : > { %v917_v40 = vsel %vm916_vm4, %v914_v37, %v894_v8  ;;  %v967_v41 = vmul.f32 %v965_v36, %v886_v32  ;;  %v904_v42 = vpop.permute.xlu1 %903 }
 0x22d   : > { %v920_v43 = vsel %vm919_vm5, %v917_v40, %v902_v26  ;;  %v909_v46 = vsel %vm907_vm1, %v896_v16, %v904_v42 }
 0x22e   : > { %v923_v49 = vsel %vm922_vm6, %v920_v43, %v894_v8  ;;  %v912_v50 = vsel %vm910_vm2, %v909_v46, %v896_v16  ;;  %v969_v52 = vadd.f32 %v967_v41, %v933_v39 }
 0x22f   : > { %v926_v53 = vsel %vm925_vm7, %v923_v49, %v902_v26  ;;  %v915_v55 = vsel %vm913_vm3, %v912_v50, %v904_v42 }
 0x230   : > { %v918_v56 = vsel %vm916_vm4, %v915_v55, %v896_v16  ;;  %v973_v57 = vpack.c.bf16 %v969_v52, %v968_v51  ;;  %v928_v59 = vmul.f32 %v926_v53, %v885_v24 }
 0x231   : > { %v921_v58 = vsel %vm919_vm5, %v918_v56, %v904_v42 }
 0x232   : > { %v924_v60 = vsel %vm922_vm6, %v921_v58, %v896_v16  ;;  %1097 = vrot.lane.b32.xlu1 %v973_v57, %s3112_s22  ;;  %v979_v61 = vsel %vm910_vm2, %v973_v57, 0  ;;  %v930_v4 = vadd.f32 %v928_v59, %v887_v63  ;;  %v970_v16 = vld [vmem:[%s3725_s25] sm:$0xff] }
 0x233   : > { %v927_v62 = vsel %vm925_vm7, %v924_v60, %v904_v42  ;;  %2799 = vmatpush3.bf16.xpose.msra.mxu0 %v979_v61 }
 0x234   : > { %v929_v2 = vmul.f32 %v927_v62, %v886_v32  ;;  %2810 = vmatprep.subr.bf16.mxu0 %v3107_v6 }
 0x236   : > { %v931_v5 = vadd.f32 %v929_v2, %v888_v0  ;;  %1223 = vrot.lane.b32.xlu1 %v973_v57, %s3113_s23 }
 0x238   : > { %v972_v7 = vpack.c.bf16 %v931_v5, %v930_v4 }
 0x23a   : > { %1348 = vrot.lane.b32.xlu1 %v973_v57, %s3114_s4  ;;  %1094 = vrot.lane.b32.xlu0 %v972_v7, %s3112_s22 }
 0x23b   : > { %2801 = vmatmul.mubr.msk.bf16.vlgmr.msra.gmra.mrb[4].mxu0 %vm910_vm2, %v972_v7 }
 0x23c   : > { %2812 = vmatprep.mubr.msk.bf16.mxu0 %vm3109_vm0, %v3107_v6 }
 0x23e   : > { %1221 = vrot.lane.b32.xlu0 %v972_v7, %s3113_s23 }
 0x242   : > { %1346 = vrot.lane.b32.xlu0 %v972_v7, %s3114_s4 }
 0x2a4   : > { %v1098_v54 = vpop.permute.xlu1 %1097 }
 0x2a5   : > { %v1103_v3 = vsel %vm910_vm2, %v1098_v54, 0 }
 0x2a6   : > { %2811 = vmatpush3.bf16.xpose.msra.mxu0 %v1103_v3 }
 0x2a7   : > { %2822 = vmatprep.subr.bf16.mxu0 %v3107_v6 }
 0x2a8   : > { %v1224_v8 = vpop.permute.xlu1 %1223 }
 0x2a9   : > { %v1229_v10 = vsel %vm910_vm2, %v1224_v8, 0 }
 0x2ac   : > { %v1095_v9 = vpop.permute.xlu0 %1094  ;;  %v1349_v11 = vpop.permute.xlu1 %1348 }
 0x2ad   : > { %2813 = vmatmul.mubr.msk.bf16.vlgmr.msra.gmra.mrb[8].mxu0 %vm910_vm2, %v1095_v9  ;;  %v1354_v13 = vsel %vm910_vm2, %v1349_v11, 0 }
 0x2ae   : > { %2823 = vmatpush3.bf16.xpose.msra.mxu0 %v1229_v10  ;;  %2824 = vmatprep.mubr.msk.bf16.mxu0 %vm3109_vm0, %v3107_v6 }
 0x2af   : > { %2834 = vmatprep.subr.bf16.mxu0 %v3107_v6 }
 0x2b0   : > { %v1222_v12 = vpop.permute.xlu0 %1221 }
 0x2b4   : > { %v1347_v14 = vpop.permute.xlu0 %1346 }
 0x2b5   : > { %2825 = vmatmul.mubr.msk.bf16.vlgmr.msra.gmra.mrb[12].mxu0 %vm910_vm2, %v1222_v12 }
 0x2b6   : > { %2835 = vmatpush3.bf16.xpose.msra.mxu0 %v1354_v13  ;;  %2836 = vmatprep.mubr.msk.bf16.mxu0 %vm3109_vm0, %v3107_v6 }
 0x2b7   : > { %2846 = vmatprep.subr.bf16.mxu0 %v3107_v6 }
 0x2bd   : > { %2837 = vmatmul.mubr.msk.bf16.vlgmr.msra.gmra.mrb[16].mxu0 %vm910_vm2, %v1347_v14 }
 0x2be   : > { %2862 = vmatprep.mubr.msk.bf16.mxu0 %vm3109_vm0, %v3107_v6 }
 0x30e   : > { %v1015_v15 = vpop.f32.mrb[4].mxu0 }
 0x30f   : > { %v1022_v17 = vmul.f32 0.17677669, %v1015_v15  ;;  %v2802_v18 = vpop.f32.mrb[5].mxu0 }
 0x310   : > { %v1018_v19 = vpop.f32.mrb[6].mxu0 }
 0x311   : > { %v1023_v21 = vmul.f32 0.17677669, %v1018_v19  ;;  %v2803_v22 = vpop.f32.mrb[7].mxu0  ;;  %v1024_v23 = vadd.f32 %v1022_v17, %v970_v16 }
 0x313   : > { %v1026_v24 = vsel %vm907_vm1, %v1024_v23, -inf  ;;  %v1025_v25 = vadd.f32 %v1023_v21, %v971_v20 }
 0x314   : > { %1027 = vmax.xlane.f32.xlu1 %v1026_v24 }
 0x315   : > { %v1029_v26 = vsel %vm907_vm1, %v1025_v25, -inf }
 0x316   : > { %1030 = vmax.xlane.f32.xlu0 %v1029_v26 }
 0x380   : > { %v1139_v27 = vpop.f32.mrb[8].mxu0 }
 0x381   : > { %v1146_v28 = vmul.f32 0.17677669, %v1139_v27  ;;  %v2814_v29 = vpop.f32.mrb[9].mxu0 }
 0x382   : > { %v1142_v30 = vpop.f32.mrb[10].mxu0 }
 0x383   : > { %v1147_v32 = vmul.f32 0.17677669, %v1142_v30  ;;  %v2815_v33 = vpop.f32.mrb[11].mxu0  ;;  %v1148_v34 = vadd.f32 %v1146_v28, %v970_v16 }
 0x385   : > { %v1150_v35 = vsel %vm907_vm1, %v1148_v34, -inf  ;;  %v1149_v36 = vadd.f32 %v1147_v32, %v971_v20 }
 0x386   : > { %1151 = vmax.xlane.f32.xlu0 %v1150_v35 }
 0x387   : > { %v1153_v37 = vsel %vm907_vm1, %v1149_v36, -inf }
 0x388   : > { %1154 = vmax.xlane.f32.xlu1 %v1153_v37  ;;  %v1265_v38 = vpop.f32.mrb[12].mxu0 }
 0x389   : > { %v1272_v39 = vmul.f32 0.17677669, %v1265_v38  ;;  %v2826_v40 = vpop.f32.mrb[13].mxu0 }
 0x38a   : > { %v1268_v41 = vpop.f32.mrb[14].mxu0 }
 0x38b   : > { %v1273_v42 = vmul.f32 0.17677669, %v1268_v41  ;;  %v2827_v43 = vpop.f32.mrb[15].mxu0  ;;  %v1274_v46 = vadd.f32 %v1272_v39, %v970_v16 }
 0x38d   : > { %v1276_v49 = vsel %vm907_vm1, %v1274_v46, -inf  ;;  %v1275_v50 = vadd.f32 %v1273_v42, %v971_v20 }
 0x38e   : > { %1277 = vmax.xlane.f32.xlu0 %v1276_v49 }
 0x38f   : > { %v1279_v51 = vsel %vm907_vm1, %v1275_v50, -inf }
 0x390   : > { %1280 = vmax.xlane.f32.xlu1 %v1279_v51  ;;  %v1390_v52 = vpop.f32.mrb[16].mxu0 }
 0x391   : > { %v1397_v53 = vmul.f32 0.17677669, %v1390_v52  ;;  %v2838_v55 = vpop.f32.mrb[17].mxu0 }
 0x392   : > { %v1393_v56 = vpop.f32.mrb[18].mxu0 }
 0x393   : > { %v1398_v57 = vmul.f32 0.17677669, %v1393_v56  ;;  %v2839_v58 = vpop.f32.mrb[19].mxu0  ;;  %v1399_v59 = vadd.f32 %v1397_v53, %v970_v16 }
 0x395   : > { %v1401_v60 = vsel %vm907_vm1, %v1399_v59, -inf  ;;  %v3423_v61 = vadd.f32 %v1398_v57, %v971_v20 }
 0x396   : > { %1402 = vmax.xlane.f32.xlu0 %v1401_v60 }
 0x397   : > { %v1404_v62 = vsel %vm907_vm1, %v3423_v61, -inf }
 0x398   : > { %1405 = vmax.xlane.f32.xlu1 %v1404_v62 }
 0x3a1   : > { %v1028_v63 = vpop.xlane.xlu1 %1027 }
 0x3a2   : > { %v1032_v0 = vsub.f32 %v1024_v23, %v1028_v63 }
 0x3a3   : > { %v1031_v2 = vpop.xlane.xlu0 %1030 }
 0x3a4   : > { %v1034_v4 = vmul.f32 1.442695, %v1032_v0  ;;  %v1033_v5 = vsub.f32 %v1025_v25, %v1031_v2 }
 0x3a6   : > { %2993 = vpow2.f32 %v1034_v4  ;;  %v1036_v7 = vmul.f32 1.442695, %v1033_v5 }
 0x3a8   : > { %2995 = vpow2.f32 %v1036_v7 }
 0x3b0   : > { %v2994_v54 = vpop.eup %2993 }
 0x3b1   : > { %v1038_v3 = vsel %vm907_vm1, %v2994_v54, 0.0 }
 0x3b2   : > { %v2996_v8 = vpop.eup %2995  ;;  %1039 = vadd.xlane.f32.xlu0 %v1038_v3 }
 0x3b3   : > { %v1041_v9 = vsel %vm907_vm1, %v2996_v8, 0.0 }
 0x3b4   : > { %1042 = vadd.xlane.f32.xlu1 %v1041_v9 }
 0x413   : > { %v1152_v10 = vpop.xlane.xlu0 %1151 }
 0x414   : > { %v1156_v11 = vsub.f32 %v1148_v34, %v1152_v10 }
 0x415   : > { %v1155_v12 = vpop.xlane.xlu1 %1154 }
 0x416   : > { %v1158_v13 = vmul.f32 1.442695, %v1156_v11  ;;  %v1157_v14 = vsub.f32 %v1149_v36, %v1155_v12 }
 0x418   : > { %2997 = vpow2.f32 %v1158_v13  ;;  %v1160_v15 = vmul.f32 1.442695, %v1157_v14 }
 0x41a   : > { %2999 = vpow2.f32 %v1160_v15 }
 0x41b   : > { %v1278_v16 = vpop.xlane.xlu0 %1277 }
 0x41c   : > { %v1282_v17 = vsub.f32 %v1274_v46, %v1278_v16 }
 0x41d   : > { %v1281_v18 = vpop.xlane.xlu1 %1280 }
 0x41e   : > { %v1284_v19 = vmul.f32 1.442695, %v1282_v17  ;;  %v1283_v20 = vsub.f32 %v1275_v50, %v1281_v18  ;;  %v2917_v17 = vld [vmem:[%s3211_s21] sm:$0xff]  }
 0x41f   : > { %2847 = vmatpush3.bf16.msra.mxu0 %v2917_v17 }
 0x420   : > { %3001 = vpow2.f32 %v1284_v19  ;;  %v1286_v21 = vmul.f32 1.442695, %v1283_v20  ;;  %v2918_v19 = vld [vmem:[%s3211_s21 + $0x8] sm:$0xff]   ;;  %2848 = vmatprep.subr.bf16.mxu0 %v3107_v6 }
 0x422   : > { %v2998_v22 = vpop.eup %2997  ;;  %3003 = vpow2.f32 %v1286_v21 }
 0x423   : > { %v1403_v23 = vpop.xlane.xlu0 %1402  ;;  %v1162_v24 = vsel %vm907_vm1, %v2998_v22, 0.0  ;;  %2849 = vmatpush3.bf16.msra.mxu0 %v2918_v19  ;;  %v2945_v19 = vld [vmem:[%s3231_s17 + $0x64] ss:$16 sps:$4 sm:$0xff]  }
 0x424   : > { %v3000_v25 = vpop.eup %2999  ;;  %v1407_v26 = vsub.f32 %v1399_v59, %v1403_v23  ;;  %1163 = vadd.xlane.f32.xlu0 %v1162_v24  ;;  %v2919_v23 = vld [vmem:[%s3211_s21 + $0x10] sm:$0xff]   ;;  %2850 = vmatprep.subr.bf16.mxu0 %v3107_v6 }
 0x425   : > { %v1165_v27 = vsel %vm907_vm1, %v3000_v25, 0.0  ;;  %v1406_v36 = vpop.xlane.xlu1 %1405 }
 0x426   : > { %v1409_v28 = vmul.f32 1.442695, %v1407_v26  ;;  %1166 = vadd.xlane.f32.xlu1 %v1165_v27  ;;  %v1408_v41 = vsub.f32 %v3423_v61, %v1406_v36 }
 0x427   : > { %2851 = vmatpush3.bf16.msra.mxu0 %v2919_v23  ;;  %v2951_v23 = vld [vmem:[%s3231_s17 + $0x84] ss:$16 sps:$4 sm:$0xff]  }
 0x428   : > { %3005 = vpow2.f32 %v1409_v28  ;;  %v1411_v49 = vmul.f32 1.442695, %v1408_v41  ;;  %2852 = vmatprep.subr.bf16.mxu0 %v3107_v6 }
 0x42a   : > { %v3002_v29 = vpop.eup %3001 }
 0x42b   : > { %v1288_v30 = vsel %vm907_vm1, %v3002_v29, 0.0 }
 0x42c   : > { %v3004_v32 = vpop.eup %3003  ;;  %1289 = vadd.xlane.f32.xlu0 %v1288_v30  ;;  %v2922_v30 = vld [vmem:[%s3211_s21 + $0x28] sm:$0xff]  }
 0x42d   : > { %v1291_v33 = vsel %vm907_vm1, %v3004_v32, 0.0 }
 0x42e   : > { %1292 = vadd.xlane.f32.xlu1 %v1291_v33  ;;  %v2924_v33 = vld [vmem:[%s3211_s21 + $0x38] sm:$0xff]  }
 0x432   : > { %v3006_v34 = vpop.eup %3005 }
 0x433   : > { %v1413_v35 = vsel %vm907_vm1, %v3006_v34, 0.0 }
 0x434   : > { %1414 = vadd.xlane.f32.xlu0 %v1413_v35 }
 0x43f   : > { %v1040_v37 = vpop.xlane.xlu0 %1039  ;;  %1299 = vrot.lane.b32.xlu1 %v3331_v1, %s3113_s23 }
 0x440   : > { %3007 = vrcp.f32 %v1040_v37 }
 0x441   : > { %v1043_v38 = vpop.xlane.xlu1 %1042 }
 0x442   : > { %3009 = vrcp.f32 %v1043_v38 }
 0x443   : > { %3011 = vpow2.f32 %v1411_v49  ;;  %v1501_v49 = vld [vmem:[%s3253_s13] sm:$0xff] }
 0x44a   : > { %v3008_v39 = vpop.eup %3007  ;;  %1174 = vrot.lane.b32.xlu0 %v3331_v1, %s3112_s22 }
 0x44b   : > { %v1046_v42 = vmul.f32 %v3008_v39, %v2994_v54 }
 0x44c   : > { %v3010_v40 = vpop.eup %3009 }
 0x44d   : > { %v1047_v43 = vmul.f32 %v3010_v40, %v2996_v8  ;;  %v3012_v50 = vpop.eup %3011 }
 0x44e   : > { %v1416_v51 = vsel %vm907_vm1, %v3012_v50, 0.0 }
 0x44f   : > { %v1048_v46 = vpack.c.bf16 %v1047_v43, %v1046_v42 }
 0x451   : > { %2807 = vmatmul.mubr.msk.bf16.vlgmr.msra.gmra.mrb[4].mxu1 %vm907_vm1, %v1048_v46 }
 0x452   : > { %2818 = vmatprep.mubr.msk.bf16.mxu1 %vm3109_vm0, %v3107_v6 }
 0x463   : > { %1417 = vadd.xlane.f32.xlu1 %v1416_v51  ;;  %v1502_v51 = vld [vmem:[%s3253_s13 + $0x8] sm:$0xff] }
 0x474   : > { %1424 = vrot.lane.b32.xlu1 %v3331_v1, %s3114_s4 }
 0x4b1   : > { %v1164_v53 = vpop.xlane.xlu0 %1163 }
 0x4b3   : > { %v1167_v52 = vpop.xlane.xlu1 %1166 }
 0x4b4   : > { %3013 = vrcp.f32 %v1167_v52 }
 0x4b5   : > { %3015 = vrcp.f32 %v1164_v53 }
 0x4b9   : > { %v1290_v56 = vpop.xlane.xlu0 %1289 }
 0x4bb   : > { %v1293_v55 = vpop.xlane.xlu1 %1292 }
 0x4bc   : > { %3017 = vrcp.f32 %v1293_v55 }
 0x4bd   : > { %3019 = vrcp.f32 %v1290_v56 }
 0x4be   : > { %v3014_v57 = vpop.eup %3013 }
 0x4bf   : > { %v3016_v59 = vpop.eup %3015  ;;  %v1171_v60 = vmul.f32 %v3014_v57, %v3000_v25  ;;  %v1300_v1 = vpop.permute.xlu1 %1299  ;;  %v2920_v25 = vld [vmem:[%s3211_s21 + $0x18] sm:$0xff]  }
 0x4c0   : > { %v1170_v61 = vmul.f32 %v3016_v59, %v2998_v22  ;;  %2853 = vmatpush3.bf16.msra.mxu0 %v2920_v25  ;;  %v2925_v59 = vld [vmem:[%s3231_s17] ss:$16 sps:$4 sm:$0xff]  }
 0x4c1   : > { %v1415_v58 = vpop.xlane.xlu0 %1414  ;;  %2854 = vmatprep.subr.bf16.mxu0 %v3107_v6  ;;  %v2949_v25 = vld [vmem:[%s3231_s17 + $0x80] ss:$16 sps:$4 sm:$0xff]  }
 0x4c2   : > { %v1172_v63 = vpack.c.bf16 %v1171_v60, %v1170_v61  ;;  %3021 = vrcp.f32 %v1415_v58  ;;  %v2927_v60 = vld [vmem:[%s3231_s17 + $0x4] ss:$16 sps:$4 sm:$0xff]   ;;  %v2928_v61 = vld [vmem:[%s3231_s17 + $0x8] ss:$16 sps:$4 sm:$0xff]  }
 0x4c5   : > { %v1175_v62 = vpop.permute.xlu0 %1174 }
 0x4c6   : > { %2817 = vmatpush3.bf16.msra.mxu1 %v1175_v62  ;;  %v3018_v0 = vpop.eup %3017  ;;  %v2930_v62 = vld [vmem:[%s3231_s17 + $0xc] ss:$16 sps:$4 sm:$0xff]  }
 0x4c7   : > { %2828 = vmatprep.subr.bf16.mxu1 %v3107_v6  ;;  %v3020_v2 = vpop.eup %3019  ;;  %v1297_v4 = vmul.f32 %v3018_v0, %v3004_v32  ;;  %v2923_v32 = vld [vmem:[%s3211_s21 + $0x30] sm:$0xff]   ;;  %v2936_v0 = vld [vmem:[%s3231_s17 + $0x2c] ss:$16 sps:$4 sm:$0xff]  }
 0x4c8   : > { %v1296_v5 = vmul.f32 %v3020_v2, %v3002_v29  ;;  %v2921_v29 = vld [vmem:[%s3211_s21 + $0x20] sm:$0xff]   ;;  %v2934_v2 = vld [vmem:[%s3231_s17 + $0x28] ss:$16 sps:$4 sm:$0xff]   ;;  %s3729_s21 = smov (!%p2683_p5), %s3728_s29 }
 0x4c9   : > { %2819 = vmatmul.mubr.msk.bf16.vlgmr.msra.gmra.mrb[8].mxu1 %vm907_vm1, %v1172_v63  ;;  %2855 = vmatpush3.bf16.msra.mxu0 %v2921_v29  ;;  %v2933_v63 = vld [vmem:[%s3231_s17 + $0x24] ss:$16 sps:$4 sm:$0xff]   ;;  %v2958_v29 = vld [vmem:[%s3231_s17 + $0xa8] ss:$16 sps:$4 sm:$0xff]  }
 0x4ca   : > { %2829 = vmatpush3.bf16.msra.mxu1 %v1300_v1  ;;  %2830 = vmatprep.mubr.msk.bf16.mxu1 %vm3109_vm0, %v3107_v6  ;;  %v1298_v7 = vpack.c.bf16 %v1297_v4, %v1296_v5  ;;  %v2931_v1 = vld [vmem:[%s3231_s17 + $0x20] ss:$16 sps:$4 sm:$0xff]   ;;  %v2939_v4 = vld [vmem:[%s3231_s17 + $0x44] ss:$16 sps:$4 sm:$0xff]  }
 0x4cb   : > { %2840 = vmatprep.subr.bf16.mxu1 %v3107_v6  ;;  %2856 = vmatprep.subr.bf16.mxu0 %v3107_v6  ;;  %v2937_v5 = vld [vmem:[%s3231_s17 + $0x40] ss:$16 sps:$4 sm:$0xff]  }
 0x4cc   : > { %v3022_v8 = vpop.eup %3021 }
 0x4cd   : > { %v1421_v10 = vmul.f32 %v3022_v8, %v3006_v34  ;;  %2857 = vmatpush3.bf16.msra.mxu0 %v2922_v30  ;;  %v2960_v30 = vld [vmem:[%s3231_s17 + $0xac] ss:$16 sps:$4 sm:$0xff]  }
 0x4ce   : > { %2858 = vmatprep.subr.bf16.mxu0 %v3107_v6 }
 0x4d1   : > { %2831 = vmatmul.mubr.msk.bf16.vlgmr.msra.gmra.mrb[12].mxu1 %vm907_vm1, %v1298_v7  ;;  %2859 = vmatpush3.bf16.msra.mxu0 %v2923_v32  ;;  %v2940_v7 = vld [vmem:[%s3231_s17 + $0x48] ss:$16 sps:$4 sm:$0xff]   ;;  %v2963_v32 = vld [vmem:[%s3231_s17 + $0xc4] ss:$16 sps:$4 sm:$0xff]  }
 0x4d2   : > { %2842 = vmatprep.mubr.msk.bf16.mxu1 %vm3109_vm0, %v3107_v6  ;;  %2860 = vmatprep.subr.bf16.mxu0 %v3107_v6 }
 0x4d5   : > { %2861 = vmatpush3.bf16.msra.mxu0 %v2924_v33  ;;  %v2966_v33 = vld [vmem:[%s3231_s17 + $0xcc] ss:$16 sps:$4 sm:$0xff]  }
 0x4d6   : > { %1892 = vmatprep.subr.bf16.mxu0 %v2930_v62  ;;  %v2980_v62 = vld [vmem:[%s3243_s27 + $0x18] sm:$0xff]  }
 0x4f0   : > { %v1418_v54 = vpop.xlane.xlu1 %1417 }
 0x4f1   : > { %3023 = vrcp.f32 %v1418_v54  ;;  %v2621_v54 = vld [vmem:[%s3726_s1] ss:$0 sm:$0xff] }
 0x4f4   : > { %v1425_v3 = vpop.permute.xlu1 %1424 }
 0x4f5   : > { %2841 = vmatpush3.bf16.msra.mxu1 %v1425_v3 }
 0x4f6   : > { %1849 = vmatprep.subr.bf16.mxu1 %v2927_v60  ;;  %v2978_v60 = vld [vmem:[%s3243_s27 + $0x10] sm:$0xff]  }
 0x4fb   : > { %v3024_v9 = vpop.eup %3023 }
 0x4fc   : > { %v1422_v11 = vmul.f32 %v3024_v9, %v3012_v50 }
 0x4fe   : > { %v1423_v12 = vpack.c.bf16 %v1422_v11, %v1421_v10  ;;  %v3045_v11 = vld [vmem:[#allocation2] sm:$0xff] }
 0x500   : > { %2843 = vmatmul.mubr.msk.bf16.vlgmr.msra.gmra.mrb[16].mxu1 %vm907_vm1, %v1423_v12 }
 0x501   : > { %1881 = vmatprep.mubr.bf16.mxu1 %v3108_v31  ;;  %1850 = vmatpush1.bf16.msra.mxu1 %v2925_v59  ;;  %v2977_v59 = vld [vmem:[%s3243_s27 + $0x50] sm:$0xff]  }
 0x502   : > { %1851 = vmatprep.subr.bf16.mxu1 %v2933_v63  ;;  %v2981_v63 = vld [vmem:[%s3243_s27 + $0x60] sm:$0xff]  }
 0x505   : > { %1852 = vmatpush1.bf16.msra.mxu1 %v2931_v1  ;;  %v2983_v1 = vld [vmem:[%s3243_s27 + $0x68] sm:$0xff]  }
 0x506   : > { %1853 = vmatprep.subr.bf16.mxu1 %v2939_v4  ;;  %v2985_v4 = vld [vmem:[%s3243_s27 + $0x70] sm:$0xff]  }
 0x509   : > { %1854 = vmatpush1.bf16.msra.mxu1 %v2937_v5  ;;  %v2987_v5 = vld [vmem:[%s3243_s27 + $0x78] sm:$0xff]  }
 0x50a   : > { %1855 = vmatprep.subr.bf16.mxu1 %v2945_v19 }
 0x524   : > { %v1086_v13 = vpop.f32.mrb[4].mxu1 }
 0x525   : > { %v2808_v14 = vpop.f32.mrb[5].mxu1 }
 0x526   : > { %v1089_v15 = vpop.f32.mrb[6].mxu1 }
 0x527   : > { %v2809_v16 = vpop.f32.mrb[7].mxu1 }
 0x59c   : > { %v1214_v18 = vpop.f32.mrb[8].mxu1 }
 0x59d   : > { %1473 = vrot.lane.b32.xlu0 %v1214_v18, %s3114_s4  ;;  %v2820_v20 = vpop.f32.mrb[9].mxu1 }
 0x59e   : > { %v1217_v21 = vpop.f32.mrb[10].mxu1  ;;  %v2948_v20 = vld [vmem:[%s3231_s17 + $0x6c] ss:$16 sps:$4 sm:$0xff]  }
 0x59f   : > { %1475 = vrot.lane.b32.xlu1 %v1217_v21, %s3114_s4  ;;  %v2821_v22 = vpop.f32.mrb[11].mxu1  ;;  %v2943_v21 = vld [vmem:[%s3231_s17 + $0x60] ss:$16 sps:$4 sm:$0xff]  }
 0x5a0   : > { %v2946_v22 = vld [vmem:[%s3231_s17 + $0x68] ss:$16 sps:$4 sm:$0xff]   ;;  %1856 = vmatpush1.bf16.msra.mxu1 %v2943_v21 }
 0x5a1   : > { %1857 = vmatprep.subr.bf16.mxu1 %v2951_v23 }
 0x5a4   : > { %v1339_v24 = vpop.f32.mrb[12].mxu1  ;;  %1858 = vmatpush1.bf16.msra.mxu1 %v2949_v25 }
 0x5a5   : > { %1481 = vrot.lane.b32.xlu0 %v1339_v24, %s3113_s23  ;;  %v2832_v26 = vpop.f32.mrb[13].mxu1  ;;  %v2954_v24 = vld [vmem:[%s3231_s17 + $0x8c] ss:$16 sps:$4 sm:$0xff]  }
 0x5a6   : > { %v1342_v27 = vpop.f32.mrb[14].mxu1  ;;  %v2952_v26 = vld [vmem:[%s3231_s17 + $0x88] ss:$16 sps:$4 sm:$0xff]  }
 0x5a7   : > { %1483 = vrot.lane.b32.xlu1 %v1342_v27, %s3113_s23  ;;  %v2833_v28 = vpop.f32.mrb[15].mxu1  ;;  %v2957_v27 = vld [vmem:[%s3231_s17 + $0xa4] ss:$16 sps:$4 sm:$0xff]  }
 0x5a8   : > { %v2955_v28 = vld [vmem:[%s3231_s17 + $0xa0] ss:$16 sps:$4 sm:$0xff]   ;;  %1859 = vmatprep.subr.bf16.mxu1 %v2957_v27 }
 0x5a9   : > { %1860 = vmatpush1.bf16.msra.mxu1 %v2955_v28 }
 0x5aa   : > { %1861 = vmatprep.subr.bf16.mxu1 %v2963_v32 }
 0x5d3   : > { %v1464_v34 = vpop.f32.mrb[16].mxu1 }
 0x5d4   : > { %1489 = vrot.lane.b32.xlu0 %v1464_v34, %s3112_s22  ;;  %v2844_v35 = vpop.f32.mrb[17].mxu1  ;;  %v2961_v34 = vld [vmem:[%s3231_s17 + $0xc0] ss:$16 sps:$4 sm:$0xff]  }
 0x5d5   : > { %v1467_v36 = vpop.f32.mrb[18].mxu1  ;;  %v2964_v35 = vld [vmem:[%s3231_s17 + $0xc8] ss:$16 sps:$4 sm:$0xff]   ;;  %1862 = vmatpush1.bf16.msra.mxu1 %v2961_v34  ;;  %v1683_v34 = vsub.s32 3, %v3313_v44 }
 0x5d6   : > { %1491 = vrot.lane.b32.xlu1 %v1467_v36, %s3112_s22  ;;  %v2845_v37 = vpop.f32.mrb[19].mxu1  ;;  %v2969_v36 = vld [vmem:[%s3231_s17 + $0xe4] ss:$16 sps:$4 sm:$0xff]  }
 0x5d7   : > { %v2972_v37 = vld [vmem:[%s3231_s17 + $0xec] ss:$16 sps:$4 sm:$0xff]   ;;  %1863 = vmatprep.subr.bf16.mxu1 %v2969_v36 }
 0x60f   : > { %v1474_v38 = vpop.permute.xlu0 %1473 }
 0x610   : > { %v1495_v42 = vsel %vm910_vm2, %v1086_v13, %v1474_v38  ;;  %v2967_v38 = vld [vmem:[%s3231_s17 + $0xe0] ss:$16 sps:$4 sm:$0xff]  }
 0x611   : > { %v1476_v39 = vpop.permute.xlu1 %1475  ;;  %1864 = vmatpush1.bf16.msra.mxu1 %v2967_v38 }
 0x612   : > { %v1496_v46 = vsel %vm910_vm2, %v1089_v15, %v1476_v39  ;;  %v3046_v15 = vld [vmem:[#allocation2 + $0x8] sm:$0xff] }
 0x613   : > { %v2970_v39 = vld [vmem:[%s3231_s17 + $0xe8] ss:$16 sps:$4 sm:$0xff]  }
 0x617   : > { %v1482_v40 = vpop.permute.xlu0 %1481 }
 0x618   : > { %v1497_v6 = vsel %vm916_vm4, %v1495_v42, %v1482_v40 }
 0x619   : > { %v1484_v41 = vpop.permute.xlu1 %1483 }
 0x61a   : > { %v1498_v52 = vsel %vm916_vm4, %v1496_v46, %v1484_v41 }
 0x646   : > { %v1490_v43 = vpop.permute.xlu0 %1489 }
 0x647   : > { %v1499_v50 = vsel %vm922_vm6, %v1497_v6, %v1490_v43 }
 0x648   : > { %v1492_v53 = vpop.permute.xlu1 %1491  ;;  %v1503_v56 = vadd.f32 %v1501_v49, %v1499_v50 }
 0x649   : > { %v1500_v55 = vsel %vm922_vm6, %v1498_v52, %v1492_v53 }
 0x64a   : > { %v1504_v57 = vadd.f32 %v1502_v51, %v1500_v55  ;;  %v2973_v55 = vld [vmem:[%s3243_s27 + $0x40] sm:$0xff]  }
 0x64b   : > { %2756 = vmatprep.subr.bf16.mxu1 %v2973_v55 }
 0x64c   : > { %v1505_v58 = vpack.c.bf16 %v1504_v57, %v1503_v56  ;;  %v2974_v56 = vld [vmem:[%s3243_s27] sm:$0xff]   ;;  %v2975_v57 = vld [vmem:[%s3243_s27 + $0x48] sm:$0xff]  }
 0x64e   : > { %2863 = vmatmul.mubr.bf16.vlgmr.msra.gmra.mrb[20].mxu0 %v1505_v58  ;;  %v2976_v58 = vld [vmem:[%s3243_s27 + $0x8] sm:$0xff]  }
 0x64f   : > { %1924 = vmatprep.mubr.bf16.mxu0 %v3108_v31  ;;  %1893 = vmatpush1.bf16.msra.mxu0 %v2928_v61  ;;  %v2942_v31 = vld [vmem:[%s3231_s17 + $0x4c] ss:$16 sps:$4 sm:$0xff]  }
 0x650   : > { %1894 = vmatprep.subr.bf16.mxu0 %v2936_v0  ;;  %v2979_v61 = vld [vmem:[%s3243_s27 + $0x58] sm:$0xff]   ;;  %v2982_v0 = vld [vmem:[%s3243_s27 + $0x20] sm:$0xff]  }
 0x653   : > { %1895 = vmatpush1.bf16.msra.mxu0 %v2934_v2  ;;  %v2984_v2 = vld [vmem:[%s3243_s27 + $0x28] sm:$0xff]  }
 0x654   : > { %1896 = vmatprep.subr.bf16.mxu0 %v2942_v31  ;;  %v2986_v31 = vld [vmem:[%s3243_s27 + $0x30] sm:$0xff]  }
 0x657   : > { %1897 = vmatpush1.bf16.msra.mxu0 %v2940_v7  ;;  %v2988_v7 = vld [vmem:[%s3243_s27 + $0x38] sm:$0xff]  }
 0x658   : > { %1898 = vmatprep.subr.bf16.mxu0 %v2948_v20 }
 0x65b   : > { %1899 = vmatpush1.bf16.msra.mxu0 %v2946_v22 }
 0x65c   : > { %1900 = vmatprep.subr.bf16.mxu0 %v2954_v24 }
 0x65f   : > { %1901 = vmatpush1.bf16.msra.mxu0 %v2952_v26 }
 0x660   : > { %1902 = vmatprep.subr.bf16.mxu0 %v2960_v30 }
 0x663   : > { %1903 = vmatpush1.bf16.msra.mxu0 %v2958_v29 }
 0x664   : > { %1904 = vmatprep.subr.bf16.mxu0 %v2966_v33 }
 0x667   : > { %1905 = vmatpush1.bf16.msra.mxu0 %v2964_v35 }
 0x668   : > { %1906 = vmatprep.subr.bf16.mxu0 %v2972_v37 }
 0x66b   : > { %1907 = vmatpush1.bf16.msra.mxu0 %v2970_v39 }
 0x721   : > { %v1611_v3 = vpop.f32.mrb[20].mxu0 }
 0x722   : > { %v1612_v8 = vadd.f32 %v2621_v54, %v1611_v3  ;;  %v2864_v9 = vpop.f32.mrb[21].mxu0 }
 0x723   : > { %v1614_v10 = vpop.f32.mrb[22].mxu0 }
 0x724   : > { %v3502_v12 = vadd.f32 %v3045_v11, %v1612_v8  ;;  %v1615_v13 = vadd.f32 %v2621_v54, %v1614_v10  ;;  %v2865_v14 = vpop.f32.mrb[23].mxu0  ;;  %v1667_v54 = vld [vmem:[%s3237_s16] sm:$0xf] }
 0x725   : > { %v1672_v3 = vrot.slane %v1667_v54, %v658_v45  ;;  %v1676_v8 = vrot.slane %v1667_v54, %v662_v47  ;;  %v1680_v35 = vrot.slane %v1667_v54, %v666_v48  ;;  %v1684_v36 = vrot.slane %v1667_v54, %v1683_v34 }
 0x726   : > { %v3504_v16 = vadd.f32 %v3046_v15, %v1615_v13  ;;  %v1620_v17 = vmul.f32 %v3502_v12, %v3502_v12 }
 0x728   : > { %1622 = vadd.xlane.f32.xlu0 %v1620_v17  ;;  %v1621_v18 = vmul.f32 %v3504_v16, %v3504_v16 }
 0x72a   : > { %1624 = vadd.xlane.f32.xlu1 %v1621_v18 }
 0x7b5   : > { %v1623_v40 = vpop.xlane.xlu0 %1622 }
 0x7b6   : > { %v1626_v41 = vmul.f32 0.0078125, %v1623_v40 }
 0x7b7   : > { %v1625_v42 = vpop.xlane.xlu1 %1624 }
 0x7b8   : > { %v1628_v6 = vadd.f32 1e-06, %v1626_v41  ;;  %v1627_v43 = vmul.f32 0.0078125, %v1625_v42 }
 0x7ba   : > { %3025 = vrsqrt.f32 %v1628_v6  ;;  %v1629_v46 = vadd.f32 1e-06, %v1627_v43 }
 0x7bc   : > { %3027 = vrsqrt.f32 %v1629_v46 }
 0x7c4   : > { %v3026_v49 = vpop.eup %3025 }
 0x7c5   : > { %v1632_v51 = vmul.f32 %v3026_v49, %v3502_v12 }
 0x7c6   : > { %v3028_v50 = vpop.eup %3027 }
 0x7c7   : > { %v1633_v52 = vmul.f32 %v3028_v50, %v3504_v16 }
 0x7c9   : > { %v1634_v53 = vpack.c.bf16 %v1633_v52, %v1632_v51 }
 0x7cb   : > { %1882 = vmatmul.mubr.bf16.vlgmr.msra.gmra.mrb[20].mxu1 %v1634_v53  ;;  %1925 = vmatmul.mubr.bf16.vlgmr.msra.gmra.mrb[24].mxu0 %v1634_v53 }
 0x7cc   : > { %2757 = vmatpush3.bf16.msra.mxu1 %v2974_v56 }
 0x7cd   : > { %2758 = vmatprep.subr.bf16.mxu1 %v2975_v57 }
 0x7d0   : > { %2759 = vmatpush3.bf16.msra.mxu1 %v2976_v58  ;;  %v2666_v58 = vld [vmem:[%s589_s28] ss:$0 sm:$0xff]  ;;  %s3727_s28 = sld [smem:[#allocation7_spill]] (!%p2683_p5) }
 0x7d1   : > { %2760 = vmatprep.subr.bf16.mxu1 %v2977_v59 }
 0x7d4   : > { %2761 = vmatpush3.bf16.msra.mxu1 %v2978_v60 }
 0x7d5   : > { %2762 = vmatprep.subr.bf16.mxu1 %v2979_v61 }
 0x7d6   : > { %v3047_v54 = vld [vmem:[%s3727_s28 + $0x4] ss:$16 sps:$4 sm:$0xff] (!%p2683_p5)  }
 0x7d7   : > { %2362 = vmatprep.subr.bf16.mxu0 (!%p2683_p5), %v3047_v54  ;;  %v3089_v34 = vld [vmem:[%s3727_s28 + $0xe4] ss:$16 sps:$4 sm:$0xff] (!%p2683_p5)  }
 0x7d8   : > { %2763 = vmatpush3.bf16.msra.mxu1 %v2980_v62 }
 0x7d9   : > { %2764 = vmatprep.subr.bf16.mxu1 %v2981_v63 }
 0x7dc   : > { %2765 = vmatpush3.bf16.msra.mxu1 %v2982_v0 }
 0x7dd   : > { %2766 = vmatprep.subr.bf16.mxu1 %v2983_v1 }
 0x7e0   : > { %2767 = vmatpush3.bf16.msra.mxu1 %v2984_v2 }
 0x7e1   : > { %2768 = vmatprep.subr.bf16.mxu1 %v2985_v4 }
 0x7e4   : > { %2769 = vmatpush3.bf16.msra.mxu1 %v2986_v31 }
 0x7e5   : > { %2770 = vmatprep.subr.bf16.mxu1 %v2987_v5 }
 0x7e8   : > { %2771 = vmatpush3.bf16.msra.mxu1 %v2988_v7 }
 0x89e   : > { %v1883_v9 = vpop.f32.mrb[20].mxu1  ;;  %v1926_v10 = vpop.f32.mrb[24].mxu0 }
 0x89f   : > { %v1884_v11 = vadd.f32 %v1883_v9, %v1672_v3  ;;  %v1885_v13 = vpop.f32.mrb[21].mxu1  ;;  %v1928_v14 = vpop.f32.mrb[25].mxu0  ;;  %v1927_v40 = vadd.f32 %v1926_v10, %v1680_v35  ;;  %v3053_v9 = vld [vmem:[%s3727_s28 + $0x24] ss:$16 sps:$4 sm:$0xff] (!%p2683_p5)   ;;  %v3055_v10 = vld [vmem:[%s3727_s28 + $0x2c] ss:$16 sps:$4 sm:$0xff] (!%p2683_p5)  }
 0x8a0   : > { %v1886_v15 = vadd.f32 %v1885_v13, %v1676_v8  ;;  %v1887_v17 = vpop.f32.mrb[22].mxu1  ;;  %v1930_v18 = vpop.f32.mrb[26].mxu0  ;;  %v1929_v6 = vadd.f32 %v1928_v14, %v1684_v36  ;;  %v3058_v13 = vld [vmem:[%s3727_s28 + $0x28] ss:$16 sps:$4 sm:$0xff] (!%p2683_p5)   ;;  %v3059_v14 = vld [vmem:[%s3727_s28 + $0x44] ss:$16 sps:$4 sm:$0xff] (!%p2683_p5)  }
 0x8a1   : > { %v2662_v19 = vmul.f32 -1.442695, %v1884_v11  ;;  %v1888_v20 = vadd.f32 %v1887_v17, %v1672_v3  ;;  %v1889_v21 = vpop.f32.mrb[23].mxu1  ;;  %v1932_v22 = vpop.f32.mrb[27].mxu0  ;;  %v1931_v50 = vadd.f32 %v1930_v18, %v1680_v35  ;;  %v3063_v17 = vld [vmem:[%s3727_s28 + $0x40] ss:$16 sps:$4 sm:$0xff] (!%p2683_p5)  }
 0x8a2   : > { %v2663_v23 = vmul.f32 -1.442695, %v1886_v15  ;;  %v1890_v24 = vadd.f32 %v1889_v21, %v1676_v8  ;;  %v1933_v53 = vadd.f32 %v1932_v22, %v1684_v36  ;;  %v3052_v8 = vld [vmem:[%s3727_s28 + $0x8] ss:$16 sps:$4 sm:$0xff] (!%p2683_p5)   ;;  %v3069_v21 = vld [vmem:[%s3727_s28 + $0x60] ss:$16 sps:$4 sm:$0xff] (!%p2683_p5)  }
 0x8a3   : > { %3029 = vpow2.f32 %v2662_v19  ;;  %v2664_v25 = vmul.f32 -1.442695, %v1888_v20  ;;  %v3064_v18 = vld [vmem:[%s3727_s28 + $0x48] ss:$16 sps:$4 sm:$0xff] (!%p2683_p5)   ;;  %v3065_v19 = vld [vmem:[%s3727_s28 + $0x64] ss:$16 sps:$4 sm:$0xff] (!%p2683_p5)  }
 0x8a4   : > { %3031 = vpow2.f32 %v2663_v23  ;;  %v2665_v45 = vmul.f32 -1.442695, %v1890_v24  ;;  %v3070_v22 = vld [vmem:[%s3727_s28 + $0x68] ss:$16 sps:$4 sm:$0xff] (!%p2683_p5)   ;;  %v3071_v23 = vld [vmem:[%s3727_s28 + $0x84] ss:$16 sps:$4 sm:$0xff] (!%p2683_p5)  }
 0x8a5   : > { %3033 = vpow2.f32 %v2664_v25  ;;  %v3075_v25 = vld [vmem:[%s3727_s28 + $0x80] ss:$16 sps:$4 sm:$0xff] (!%p2683_p5)   ;;  %v3091_v35 = vld [vmem:[%s3727_s28 + $0xec] ss:$16 sps:$4 sm:$0xff] (!%p2683_p5)   ;;  %v3115_v36 = vmov (!%p2683_p5), 0  }
 0x8a6   : > { %3035 = vpow2.f32 %v2665_v45  ;;  %v3076_v45 = vld [vmem:[%s3727_s28 + $0x88] ss:$16 sps:$4 sm:$0xff] (!%p2683_p5)   ;;  %2394 = vmatprep.mubr.bf16.mxu0 (!%p2683_p5), %v3115_v36 }
 0x8ad   : > { %v3030_v47 = vpop.eup %3029 }
 0x8ae   : > { %v3032_v26 = vpop.eup %3031  ;;  %v1947_v27 = vadd.f32 1.0, %v3030_v47  ;;  %v3077_v47 = vld [vmem:[%s3727_s28 + $0xa4] ss:$16 sps:$4 sm:$0xff] (!%p2683_p5)  }
 0x8af   : > { %v3034_v28 = vpop.eup %3033  ;;  %v1948_v29 = vadd.f32 1.0, %v3032_v26  ;;  %v3079_v26 = vld [vmem:[%s3727_s28 + $0xac] ss:$16 sps:$4 sm:$0xff] (!%p2683_p5)  }
 0x8b0   : > { %v3036_v30 = vpop.eup %3035  ;;  %3037 = vrcp.f32 %v1947_v27  ;;  %v1949_v32 = vadd.f32 1.0, %v3034_v28  ;;  %v3081_v27 = vld [vmem:[%s3727_s28 + $0xa0] ss:$16 sps:$4 sm:$0xff] (!%p2683_p5)   ;;  %v3082_v28 = vld [vmem:[%s3727_s28 + $0xa8] ss:$16 sps:$4 sm:$0xff] (!%p2683_p5)  }
 0x8b1   : > { %3039 = vrcp.f32 %v1948_v29  ;;  %v1950_v33 = vadd.f32 1.0, %v3036_v30  ;;  %v3083_v29 = vld [vmem:[%s3727_s28 + $0xc4] ss:$16 sps:$4 sm:$0xff] (!%p2683_p5)   ;;  %v3085_v30 = vld [vmem:[%s3727_s28 + $0xcc] ss:$16 sps:$4 sm:$0xff] (!%p2683_p5)  }
 0x8b2   : > { %3041 = vrcp.f32 %v1949_v32  ;;  %v3087_v32 = vld [vmem:[%s3727_s28 + $0xc0] ss:$16 sps:$4 sm:$0xff] (!%p2683_p5)  }
 0x8b3   : > { %3043 = vrcp.f32 %v1950_v33  ;;  %v3088_v33 = vld [vmem:[%s3727_s28 + $0xc8] ss:$16 sps:$4 sm:$0xff] (!%p2683_p5)  }
 0x8ba   : > { %v3038_v37 = vpop.eup %3037 }
 0x8bb   : > { %v3040_v38 = vpop.eup %3039  ;;  %v1959_v39 = vmul.f32 %v3038_v37, %v1884_v11  ;;  %v3057_v11 = vld [vmem:[%s3727_s28 + $0x20] ss:$16 sps:$4 sm:$0xff] (!%p2683_p5)  }
 0x8bc   : > { %v3042_v41 = vpop.eup %3041  ;;  %v1960_v42 = vmul.f32 %v3040_v38, %v1886_v15  ;;  %v3061_v15 = vld [vmem:[%s3727_s28 + $0x4c] ss:$16 sps:$4 sm:$0xff] (!%p2683_p5)   ;;  %v3093_v37 = vld [vmem:[%s3727_s28 + $0xe0] ss:$16 sps:$4 sm:$0xff] (!%p2683_p5)   ;;  %v3094_v38 = vld [vmem:[%s3727_s28 + $0xe8] ss:$16 sps:$4 sm:$0xff] (!%p2683_p5)  }
 0x8bd   : > { %v3044_v43 = vpop.eup %3043  ;;  %v1963_v46 = vmul.f32 %v1959_v39, %v1927_v40  ;;  %v1961_v49 = vmul.f32 %v3042_v41, %v1888_v20  ;;  %v3067_v20 = vld [vmem:[%s3727_s28 + $0x6c] ss:$16 sps:$4 sm:$0xff] (!%p2683_p5)  }
 0x8be   : > { %v1964_v51 = vmul.f32 %v1960_v42, %v1929_v6  ;;  %v1962_v52 = vmul.f32 %v3044_v43, %v1890_v24  ;;  %v3073_v24 = vld [vmem:[%s3727_s28 + $0x8c] ss:$16 sps:$4 sm:$0xff] (!%p2683_p5)  }
 0x8bf   : > { %v1965_v55 = vmul.f32 %v1961_v49, %v1931_v50 }
 0x8c0   : > { %v1966_v56 = vmul.f32 %v1962_v52, %v1933_v53 }
 0x8c1   : > { %v1967_v44 = vpack.c.bf16 %v1965_v55, %v1963_v46 }
 0x8c2   : > { %v1968_v48 = vpack.c.bf16 %v1966_v56, %v1964_v51 }
 0x8c4   : > { %2136 = vmatprep.mubr.bf16.mxu1 %v1968_v48 }
 0x8c5   : > { %2137 = vmatmul.mubr.bf16.vlgmr.msra.gmra.mrb[24].mxu1 %v1967_v44 }
 0x8c6   : > { %2437 = vmatprep.mubr.bf16.mxu1 (!%p2683_p5), %v3115_v36 }
 0x998   : > { %v2772_v57 = vpop.f32.mrb[24].mxu1 }
 0x999   : > { %v2773_v59 = vpop.f32.mrb[25].mxu1 }
 0x99a   : > { %v2774_v60 = vadd.f32 %v2773_v59, %v2772_v57  ;;  %v2775_v61 = vpop.f32.mrb[26].mxu1 }
 0x99b   : > { %v2776_v62 = vpop.f32.mrb[27].mxu1 }
 0x99c   : > { %v2139_v63 = vadd.f32 %v2774_v60, %v2666_v58  ;;  %v2777_v0 = vadd.f32 %v2776_v62, %v2775_v61  ;;  %2152 = sbr.rel (%p2683_p5) target bundleno = 2856 (0xb28), region = 84 }
 0x99e   : > { %v2145_v1 = vadd.f32 %v2139_v63, %v3502_v12  ;;  %v2142_v2 = vadd.f32 %v2777_v0, %v2666_v58  ;;  %v3049_v12 = vld [vmem:[%s3727_s28 + $0xc] ss:$16 sps:$4 sm:$0xff] (!%p2683_p5)  }
 0x99f   : > { %2405 = vmatprep.subr.bf16.mxu1 (!%p2683_p5), %v3049_v12 }
 0x9a0   : > { %2147 = vst [vmem:[#allocation2] sm:$0xff] %v2145_v1  ;;  %v2146_v4 = vadd.f32 %v2142_v2, %v3504_v16  ;;  %v3051_v16 = vld [vmem:[%s3727_s28] ss:$16 sps:$4 sm:$0xff] (!%p2683_p5)   ;;  %2406 = vmatpush1.bf16.msra.mxu1 (!%p2683_p5), %v3052_v8 }
 0x9a1   : > { %2363 = vmatpush1.bf16.msra.mxu0 (!%p2683_p5), %v3051_v16  ;;  %2407 = vmatprep.subr.bf16.mxu1 (!%p2683_p5), %v3055_v10 }
 0x9a2   : > { %2148 = vst [vmem:[#allocation2 + $0x8] sm:$0xff] %v2146_v4  ;;  %2364 = vmatprep.subr.bf16.mxu0 (!%p2683_p5), %v3053_v9 }
 0x9a4   : > { %2408 = vmatpush1.bf16.msra.mxu1 %v3058_v13 }
 0x9a5   : > { %2365 = vmatpush1.bf16.msra.mxu0 %v3057_v11  ;;  %2409 = vmatprep.subr.bf16.mxu1 %v3061_v15 }
 0x9a6   : > { %2366 = vmatprep.subr.bf16.mxu0 %v3059_v14 }
 0x9a7   : > { %v3564_v31 = vld [vmem:[#allocation2] sm:$0xff] }
 0x9a8   : > { %v2155_v7 = vmul.f32 %v3564_v31, %v3564_v31  ;;  %2410 = vmatpush1.bf16.msra.mxu1 %v3064_v18 }
 0x9a9   : > { %v3566_v5 = vld [vmem:[#allocation2 + $0x8] sm:$0xff]  ;;  %2367 = vmatpush1.bf16.msra.mxu0 %v3063_v17  ;;  %2411 = vmatprep.subr.bf16.mxu1 %v3067_v20 }
 0x9aa   : > { %2157 = vadd.xlane.f32.xlu0 %v2155_v7  ;;  %v2156_v3 = vmul.f32 %v3566_v5, %v3566_v5  ;;  %2368 = vmatprep.subr.bf16.mxu0 %v3065_v19 }
 0x9ac   : > { %2412 = vmatpush1.bf16.msra.mxu1 %v3070_v22 }
 0x9ad   : > { %2369 = vmatpush1.bf16.msra.mxu0 %v3069_v21  ;;  %2413 = vmatprep.subr.bf16.mxu1 %v3073_v24 }
 0x9ae   : > { %2159 = vadd.xlane.f32.xlu0 %v2156_v3  ;;  %2370 = vmatprep.subr.bf16.mxu0 %v3071_v23 }
 0x9b0   : > { %2414 = vmatpush1.bf16.msra.mxu1 %v3076_v45 }
 0x9b1   : > { %2371 = vmatpush1.bf16.msra.mxu0 %v3075_v25  ;;  %2415 = vmatprep.subr.bf16.mxu1 %v3079_v26 }
 0x9b2   : > { %2372 = vmatprep.subr.bf16.mxu0 %v3077_v47 }
 0x9b4   : > { %2416 = vmatpush1.bf16.msra.mxu1 %v3082_v28 }
 0x9b5   : > { %2373 = vmatpush1.bf16.msra.mxu0 %v3081_v27  ;;  %2417 = vmatprep.subr.bf16.mxu1 %v3085_v30 }
 0x9b6   : > { %2374 = vmatprep.subr.bf16.mxu0 %v3083_v29 }
 0x9b8   : > { %2418 = vmatpush1.bf16.msra.mxu1 %v3088_v33 }
 0x9b9   : > { %2375 = vmatpush1.bf16.msra.mxu0 %v3087_v32  ;;  %2419 = vmatprep.subr.bf16.mxu1 %v3091_v35 }
 0x9ba   : > { %2376 = vmatprep.subr.bf16.mxu0 %v3089_v34 }
 0x9bc   : > { %2420 = vmatpush1.bf16.msra.mxu1 %v3094_v38 }
 0x9bd   : > { %2377 = vmatpush1.bf16.msra.mxu0 %v3093_v37 }
 0xa37   : > { %v2158_v39 = vpop.xlane.xlu0 %2157 }
 0xa38   : > { %v2161_v40 = vmul.f32 0.0078125, %v2158_v39 }
 0xa3a   : > { %v2163_v41 = vadd.f32 1e-06, %v2161_v40 }
 0xa3b   : > { %v2160_v42 = vpop.xlane.xlu0 %2159 }
 0xa3c   : > { %v2162_v6 = vmul.f32 0.0078125, %v2160_v42  ;;  %3095 = vrsqrt.f32 %v2163_v41 }
 0xa3e   : > { %v2164_v43 = vadd.f32 1e-06, %v2162_v6 }
 0xa40   : > { %3097 = vrsqrt.f32 %v2164_v43 }
 0xa46   : > { %v3096_v46 = vpop.eup %3095 }
 0xa47   : > { %v2167_v50 = vmul.f32 %v3096_v46, %v3564_v31 }
 0xa4a   : > { %v3098_v49 = vpop.eup %3097 }
 0xa4b   : > { %v2168_v51 = vmul.f32 %v3098_v49, %v3566_v5 }
 0xa4d   : > { %v2169_v52 = vpack.c.bf16 %v2168_v51, %v2167_v50 }
 0xa4f   : > { %2395 = vmatmul.mubr.bf16.vlgmr.msra.gmra.mrb[0].mxu0 %v2169_v52  ;;  %2438 = vmatmul.mubr.bf16.vlgmr.msra.gmra.mrb[0].mxu1 %v2169_v52 }
 0xb22   : > { %v2396_v53 = vpop.f32.mrb[0].mxu0  ;;  %v2439_v55 = vpop.f32.mrb[0].mxu1 }
 0xb23   : > { %2448 = vst [vmem:[%s3728_s29] sm:$0xff] %v2396_v53  ;;  %v2398_v56 = vpop.f32.mrb[1].mxu0  ;;  %v2441_v44 = vpop.f32.mrb[1].mxu1 }
 0xb24   : > { %2450 = vst [vmem:[%s3729_s21 + $0x10] sm:$0xff] %v2439_v55  ;;  %2449 = vst [vmem:[%s3729_s21 + $0x8] sm:$0xff] %v2398_v56  ;;  %v2400_v48 = vpop.f32.mrb[2].mxu0  ;;  %v2443_v57 = vpop.f32.mrb[2].mxu1 }
 0xb25   : > { %2451 = vst [vmem:[%s3729_s21 + $0x18] sm:$0xff] %v2441_v44  ;;  %2452 = vst [vmem:[%s3729_s21 + $0x20] sm:$0xff] %v2400_v48  ;;  %v2402_v58 = vpop.f32.mrb[3].mxu0  ;;  %v2445_v59 = vpop.f32.mrb[3].mxu1 }
 0xb26   : > { %2454 = vst [vmem:[%s3729_s21 + $0x30] sm:$0xff] %v2443_v57  ;;  %2453 = vst [vmem:[%s3729_s21 + $0x28] sm:$0xff] %v2402_v58 }
 0xb27   : > { %2455 = vst [vmem:[%s3729_s21 + $0x38] sm:$0xff] %v2445_v59 }
 0xb28 PF: > { %s3730_s24 = sld [smem:[#allocation3_spill]] }
 0xb2e   : > { %s24_s29 = sadd.s32 1, %s3730_s24  }
 0xb2f   : > { %p21_p6 = scmp.ge.s32.totalorder %s24_s29, 6  }
 0xb31   :  { %23 = sbr.rel (!%p21_p6) target bundleno = 6 (0x6), region = 134 }

// kernel: forward.2
= control target key start
LH: loop header
LB: loop body
LE: loop exit
PB: predicated region body
PF: predicated region fallthrough
CT: control target
= control target key end

     0   :  { %14 = vsyncpa [#allocation3], 0  ;;  %s3998_s0 = inlined_call_operand.vmem [shape: f32[2,64], index: 0, kind: input, shape index: {}]   ;;  %s3999_s1 = inlined_call_operand.vmem [shape: bf16[64,128], index: 1, kind: input, shape index: {}]   ;;  %s4000_s2 = inlined_call_operand.vmem [shape: f32[1,128], index: 2, kind: input, shape index: {}]   ;;  %s4001_s3 = inlined_call_operand.hbm [shape: bf16[128,1024], index: 3, kind: input, shape index: {}]   ;;  %s4002_s4 = inlined_call_operand.hbm [shape: bf16[512,128], index: 4, kind: input, shape index: {}]   ;;  %s4003_s5 = inlined_call_operand.hbm [shape: bf16[128,1024], index: 5, kind: input, shape index: {}]   ;;  %s4004_s6 = inlined_call_operand.hbm [shape: bf16[512,128], index: 6, kind: input, shape index: {}]   ;;  %s4005_s7 = inlined_call_operand.hbm [shape: bf16[128,1024], index: 7, kind: input, shape index: {}]   ;;  %s4006_s8 = inlined_call_operand.hbm [shape: bf16[512,128], index: 8, kind: input, shape index: {}]   ;;  %s4007_s9 = inlined_call_operand.vmem [shape: f32[2,128], index: 9, kind: output, shape index: {}]  }
   0x1   :  { %15 = vsyncpa [#allocation5], 0 }
   0x2   :  { %16 = vsyncpa [#allocation8], 0 }
   0x3   :  { %17 = vsyncpa [#allocation11], 0  ;;  %s3773_s30 = smov [#allocation4]   ;;  %s3633_s13 = scalar_lea.hbm %s4002_s4, 4096 }
   0x4   :  { %s41_s10 = sshll.u32 %s3773_s30, 4  ;;  %p3634_p0 = scmp.ne.s32.totalorder %s4002_s4, %s3633_s13  ;;  %s42_s10 = int_to_ptr.vmem [resolvable:$true] %s41_s10 }
   0x5   :  { %p3637_p1 = scmp.lt.u32.totalorder %s3633_s13, %s4002_s4 }
   0x7   :  { %p3639_p2 = pnand %p3637_p1, %p3634_p0 }
   0x9   :  { %3642 = shalt.err (!%p3639_p2)
}
   0xa   :  { %s3643_s18 = scalar_lea.vmem %s42_s10, 4096  ;;  %p3648_p4 = scmp.lt.s32.totalorder %s42_s10, %s42_s10 }
   0xb   :  { %p3644_p3 = scmp.ne.s32.totalorder %s42_s10, %s3643_s18  ;;  %p3649_p5 = scmp.lt.s32.totalorder %s3643_s18, %s3643_s18 }
   0xd   :  { %p3650_p6 = por %p3649_p5, %p3648_p4 }
   0xf   :  { %p3651_p7 = pnand %p3650_p6, %p3644_p3 }
  0x11   :  { %3654 = shalt.err (!%p3651_p7)
}
  0x12   :  { %s3774_s19 = smov 64   ;;  %s3775_s20 = smov 4  }
  0x13   :  { %47 = dma.hbm_to_vmem [thread:$0]  %s4002_s4, 4096, %s42_s10, [#allocation5], %s3774_s19, %s3774_s19, %s3775_s20  }
  0x14   :  { %s3776_s23 = smov [#allocation7]   ;;  %s3777_s25 = smov [#allocation2]  }
  0x15   :  { %s65_s24 = sshll.u32 %s3776_s23, 4  ;;  %s29_s26 = sshll.u32 %s3777_s25, 4  ;;  %s66_s24 = int_to_ptr.vmem [resolvable:$true] %s65_s24  ;;  %s30_s26 = int_to_ptr.vmem [resolvable:$true] %s29_s26 }
  0x16   :  { %s3655_s29 = scalar_lea.hbm %s4004_s6, 4096 }
  0x17   :  { %p3656_p8 = scmp.ne.s32.totalorder %s4004_s6, %s3655_s29  ;;  %p3659_p9 = scmp.lt.u32.totalorder %s3655_s29, %s4004_s6 }
  0x19   :  { %p3661_p10 = pnand %p3659_p9, %p3656_p8 }
  0x1b   :  { %3664 = shalt.err (!%p3661_p10)
}
  0x1c   :  { %s3665_s4 = scalar_lea.vmem %s66_s24, 4096  ;;  %p3670_p12 = scmp.lt.s32.totalorder %s66_s24, %s66_s24 }
  0x1d   :  { %p3666_p11 = scmp.ne.s32.totalorder %s66_s24, %s3665_s4  ;;  %p3671_p13 = scmp.lt.s32.totalorder %s3665_s4, %s3665_s4 }
  0x1f   :  { %p3672_p0 = por %p3671_p13, %p3670_p12 }
  0x21   :  { %p3673_p1 = pnand %p3672_p0, %p3666_p11 }
  0x23   :  { %3676 = shalt.err (!%p3673_p1)
}
  0x24   :  { %71 = dma.hbm_to_vmem [thread:$0]  %s4004_s6, 4096, %s66_s24, [#allocation8], %s3774_s19, %s3774_s19, %s3775_s20  }
  0x25   :  { %s3677_s17 = scalar_lea.hbm %s4001_s3, 8192 }
  0x26   :  { %p3678_p2 = scmp.ne.s32.totalorder %s4001_s3, %s3677_s17  ;;  %p3681_p3 = scmp.lt.u32.totalorder %s3677_s17, %s4001_s3 }
  0x28   :  { %p3683_p4 = pnand %p3681_p3, %p3678_p2 }
  0x2a   :  { %3686 = shalt.err (!%p3683_p4)
}
  0x2b   :  { %s3687_s25 = scalar_lea.vmem %s30_s26, 8192  ;;  %p3692_p6 = scmp.lt.s32.totalorder %s30_s26, %s30_s26 }
  0x2c   :  { %p3688_p5 = scmp.ne.s32.totalorder %s30_s26, %s3687_s25  ;;  %p3693_p7 = scmp.lt.s32.totalorder %s3687_s25, %s3687_s25 }
  0x2e   :  { %p3694_p8 = por %p3693_p7, %p3692_p6 }
  0x30   :  { %p3695_p9 = pnand %p3694_p8, %p3688_p5 }
  0x32   :  { %3698 = shalt.err (!%p3695_p9)
}
  0x33   :  { %s3778_s6 = smov 512   ;;  %s3779_s24 = smov 32  }
  0x34   :  { %35 = dma.hbm_to_vmem [thread:$0]  %s4001_s3, 8192, %s30_s26, [#allocation3], %s3778_s6, %s3778_s6, %s3779_s24  }
  0x35   :  { %s3780_s29 = smov [#allocation6]   ;;  %s3781_s11 = smov [#allocation9]  }
  0x36   :  { %s53_s30 = sshll.u32 %s3780_s29, 4  ;;  %s77_s12 = sshll.u32 %s3781_s11, 4  ;;  %s54_s30 = int_to_ptr.vmem [resolvable:$true] %s53_s30  ;;  %s78_s12 = int_to_ptr.vmem [resolvable:$true] %s77_s12 }
  0x37   :  { %s3699_s10 = scalar_lea.hbm %s4003_s5, 8192 }
  0x38   :  { %p3700_p10 = scmp.ne.s32.totalorder %s4003_s5, %s3699_s10  ;;  %p3703_p11 = scmp.lt.u32.totalorder %s3699_s10, %s4003_s5 }
  0x3a   :  { %p3705_p12 = pnand %p3703_p11, %p3700_p10 }
  0x3c   :  { %3708 = shalt.err (!%p3705_p12)
}
  0x3d   :  { %s3709_s3 = scalar_lea.vmem %s54_s30, 8192  ;;  %p3714_p0 = scmp.lt.s32.totalorder %s54_s30, %s54_s30 }
  0x3e   :  { %p3710_p13 = scmp.ne.s32.totalorder %s54_s30, %s3709_s3  ;;  %p3715_p1 = scmp.lt.s32.totalorder %s3709_s3, %s3709_s3 }
  0x40   :  { %p3716_p2 = por %p3715_p1, %p3714_p0 }
  0x42   :  { %p3717_p3 = pnand %p3716_p2, %p3710_p13 }
  0x44   :  { %3720 = shalt.err (!%p3717_p3)
}
  0x45   :  { %59 = dma.hbm_to_vmem [thread:$0]  %s4003_s5, 8192, %s54_s30, [#allocation5], %s3778_s6, %s3778_s6, %s3779_s24  }
  0x46   :  { %s3721_s23 = scalar_lea.hbm %s4005_s7, 8192 }
  0x47   :  { %p3722_p4 = scmp.ne.s32.totalorder %s4005_s7, %s3721_s23  ;;  %p3725_p5 = scmp.lt.u32.totalorder %s3721_s23, %s4005_s7 }
  0x49   :  { %p3727_p6 = pnand %p3725_p5, %p3722_p4 }
  0x4b   :  { %3730 = shalt.err (!%p3727_p6)
}
  0x4c   :  { %s3731_s11 = scalar_lea.vmem %s78_s12, 8192  ;;  %p3736_p8 = scmp.lt.s32.totalorder %s78_s12, %s78_s12 }
  0x4d   :  { %p3732_p7 = scmp.ne.s32.totalorder %s78_s12, %s3731_s11  ;;  %p3737_p9 = scmp.lt.s32.totalorder %s3731_s11, %s3731_s11 }
  0x4f   :  { %p3738_p10 = por %p3737_p9, %p3736_p8 }
  0x51   :  { %p3739_p11 = pnand %p3738_p10, %p3732_p7 }
  0x53   :  { %3742 = shalt.err (!%p3739_p11)
}
  0x54   :  { %83 = dma.hbm_to_vmem [thread:$0]  %s4005_s7, 8192, %s78_s12, [#allocation8], %s3778_s6, %s3778_s6, %s3779_s24  }
  0x55   :  { %s3782_s13 = smov [#allocation10]   ;;  %s3743_s15 = scalar_lea.hbm %s4006_s8, 4096 }
  0x56   :  { %s89_s4 = sshll.u32 %s3782_s13, 4  ;;  %p3744_p12 = scmp.ne.s32.totalorder %s4006_s8, %s3743_s15  ;;  %s90_s4 = int_to_ptr.vmem [resolvable:$true] %s89_s4 }
  0x57   :  { %p3747_p13 = scmp.lt.u32.totalorder %s3743_s15, %s4006_s8 }
  0x59   :  { %p3749_p0 = pnand %p3747_p13, %p3744_p12 }
  0x5b   :  { %3752 = shalt.err (!%p3749_p0)
}
  0x5c   :  { %s3753_s18 = scalar_lea.vmem %s90_s4, 4096  ;;  %p3758_p2 = scmp.lt.s32.totalorder %s90_s4, %s90_s4 }
  0x5d   :  { %p3754_p1 = scmp.ne.s32.totalorder %s90_s4, %s3753_s18  ;;  %p3759_p3 = scmp.lt.s32.totalorder %s3753_s18, %s3753_s18 }
  0x5f   :  { %p3760_p4 = por %p3759_p3, %p3758_p2 }
  0x61   :  { %p3761_p5 = pnand %p3760_p4, %p3754_p1 }
  0x63   :  { %3764 = shalt.err (!%p3761_p5)
}
  0x64   :  { %95 = dma.hbm_to_vmem [thread:$0]  %s4006_s8, 4096, %s90_s4, [#allocation11], %s3774_s19, %s3774_s19, %s3775_s20  }
  0x65   :  { %3765 = dma.done.wait [#allocation3], 8192  }
  0x66   :  { %3766 = vsyncadd [#allocation3], 4294959104 }
  0x67   :  { %3767 = dma.done.wait [#allocation5], 12288  }
  0x68   :  { %3768 = vsyncadd [#allocation5], 4294955008 }
  0x69   :  { %3769 = dma.done.wait [#allocation8], 12288  }
  0x6a   :  { %3770 = vsyncadd [#allocation8], 4294955008 }
  0x6b   :  { %3771 = dma.done.wait [#allocation11], 4096  }
  0x6c   :  { %3772 = vsyncadd [#allocation11], 4294963200  ;;  %vm117_vm0 = vcmask 517120   ;;  %v115_v0 = vld [vmem:[%s3998_s0] sm:$0x3]  ;;  %v3783_v4 = vmov 0.0  }
  0x6d   :  { %v116_v1 = vmul.f32 %v115_v0, %v115_v0  ;;  %v3477_v3 = vld [vmem:[%s3999_s1] sm:$0xff]   ;;  %3452 = vmatprep.subr.bf16.mxu0 %v3783_v4  ;;  %v3478_v5 = vld [vmem:[%s3999_s1 + $0x8] sm:$0xff]   ;;  %vm3784_vm1 = vmmov 0   ;;  %v3479_v6 = vld [vmem:[%s3999_s1 + $0x10] sm:$0xff]   ;;  %vm164_vm2 = vcmask 523264   ;;  %vm209_vm3 = vcmask 1041408  }
  0x6e   :  { %3453 = vmatpush3.bf16.msra.mxu0 %v3477_v3  ;;  %3460 = vmatprep.mubr.msk.bf16.mxu0 %vm3784_vm1, %v3783_v4  ;;  %v3480_v7 = vld [vmem:[%s3999_s1 + $0x18] sm:$0xff]   ;;  %v219_v13 = vld [vmem:[#allocation2] sm:$0xff]  ;;  %v220_v15 = vld [vmem:[#allocation2 + $0x8] sm:$0xff] }
  0x6f   :  { %v118_v2 = vsel %vm117_vm0, %v116_v1, 0.0  ;;  %3454 = vmatprep.subr.bf16.mxu0 %v3783_v4  ;;  %v223_v14 = vld [vmem:[#allocation2 + $0x20] sm:$0xff]  ;;  %v224_v17 = vld [vmem:[#allocation2 + $0x28] sm:$0xff] }
  0x70   :  { %119 = vadd.xlane.f32.xlu0 %v118_v2  ;;  %v3016_v16 = vcombine.high %v219_v13, %v223_v14  ;;  %v3015_v18 = vcombine.low %v219_v13, %v223_v14  ;;  %v227_v19 = vld [vmem:[#allocation2 + $0x40] sm:$0xff]  ;;  %v3017_v21 = vcombine.low %v220_v15, %v224_v17  ;;  %v3018_v22 = vcombine.high %v220_v15, %v224_v17  ;;  %v228_v24 = vld [vmem:[#allocation2 + $0x48] sm:$0xff]  ;;  %v221_v17 = vld [vmem:[#allocation2 + $0x10] sm:$0xff] }
  0x71   :  { %v231_v20 = vld [vmem:[#allocation2 + $0x60] sm:$0xff]  ;;  %v232_v25 = vld [vmem:[#allocation2 + $0x68] sm:$0xff] }
  0x72   :  { %3455 = vmatpush3.bf16.msra.mxu0 %v3478_v5  ;;  %v3024_v23 = vcombine.high %v227_v19, %v231_v20  ;;  %v235_v26 = vld [vmem:[#allocation2 + $0x80] sm:$0xff]  ;;  %603 = vmatprep.subr.bf16.mxu1 %v3016_v16  ;;  %v3026_v27 = vcombine.high %v228_v24, %v232_v25  ;;  %v236_v29 = vld [vmem:[#allocation2 + $0x88] sm:$0xff]  ;;  %v3023_v31 = vcombine.low %v227_v19, %v231_v20  ;;  %v222_v19 = vld [vmem:[#allocation2 + $0x18] sm:$0xff] }
  0x73   :  { %3456 = vmatprep.subr.bf16.mxu0 %v3783_v4  ;;  %v239_v28 = vld [vmem:[#allocation2 + $0xa0] sm:$0xff]  ;;  %v240_v30 = vld [vmem:[#allocation2 + $0xa8] sm:$0xff]  ;;  %604 = vmatpush1.bf16.msra.mxu1 %v3015_v18  ;;  %v3025_v32 = vcombine.low %v228_v24, %v232_v25  ;;  %v225_v18 = vld [vmem:[#allocation2 + $0x30] sm:$0xff] }
  0x74   :  { %605 = vmatprep.subr.bf16.mxu1 %v3024_v23  ;;  %v3032_v33 = vcombine.high %v235_v26, %v239_v28  ;;  %v3034_v34 = vcombine.high %v236_v29, %v240_v30  ;;  %v243_v35 = vld [vmem:[#allocation2 + $0xc0] sm:$0xff]  ;;  %v244_v37 = vld [vmem:[#allocation2 + $0xc8] sm:$0xff]  ;;  %v3031_v39 = vcombine.low %v235_v26, %v239_v28  ;;  %v3033_v40 = vcombine.low %v236_v29, %v240_v30  ;;  %v226_v23 = vld [vmem:[#allocation2 + $0x38] sm:$0xff] }
  0x75   :  { %v247_v36 = vld [vmem:[#allocation2 + $0xe0] sm:$0xff]  ;;  %v248_v38 = vld [vmem:[#allocation2 + $0xe8] sm:$0xff]  ;;  %v3021_v25 = vcombine.low %v222_v19, %v226_v23  ;;  %v3020_v28 = vcombine.high %v221_v17, %v225_v18  ;;  %v3022_v29 = vcombine.high %v222_v19, %v226_v23  ;;  %v282_v23 = vld [vmem:[#allocation2 + $0x1f8] sm:$0xff] }
  0x76   :  { %3457 = vmatpush3.bf16.msra.mxu0 %v3479_v6  ;;  %v3040_v41 = vcombine.high %v243_v35, %v247_v36  ;;  %v3042_v42 = vcombine.high %v244_v37, %v248_v38  ;;  %v3039_v43 = vcombine.low %v243_v35, %v247_v36  ;;  %v3041_v44 = vcombine.low %v244_v37, %v248_v38  ;;  %v3009_v45 = vld [vmem:[%s4000_s2] ss:$0 sm:$0xff]  ;;  %v252_v55 = vld [vmem:[#allocation2 + $0x108] sm:$0xff]  ;;  %v233_v35 = vld [vmem:[#allocation2 + $0x70] sm:$0xff] }
  0x77   :  { %3458 = vmatprep.subr.bf16.mxu0 %v3783_v4  ;;  %606 = vmatpush1.bf16.msra.mxu1 %v3023_v31  ;;  %v251_v53 = vld [vmem:[#allocation2 + $0x100] sm:$0xff]  ;;  %v256_v57 = vld [vmem:[#allocation2 + $0x128] sm:$0xff]  ;;  %v230_v36 = vld [vmem:[#allocation2 + $0x58] sm:$0xff] }
  0x78   :  { %607 = vmatprep.subr.bf16.mxu1 %v3032_v33  ;;  %v255_v54 = vld [vmem:[#allocation2 + $0x120] sm:$0xff]  ;;  %v3049_v58 = vcombine.low %v252_v55, %v256_v57  ;;  %v3050_v59 = vcombine.high %v252_v55, %v256_v57  ;;  %v260_v63 = vld [vmem:[#allocation2 + $0x148] sm:$0xff]  ;;  %v229_v33 = vld [vmem:[#allocation2 + $0x50] sm:$0xff] }
  0x79   :  { %v3048_v56 = vcombine.high %v251_v53, %v255_v54  ;;  %v3047_v60 = vcombine.low %v251_v53, %v255_v54  ;;  %v259_v61 = vld [vmem:[#allocation2 + $0x140] sm:$0xff]  ;;  %v264_v1 = vld [vmem:[#allocation2 + $0x168] sm:$0xff]  ;;  %v234_v37 = vld [vmem:[#allocation2 + $0x78] sm:$0xff] }
  0x7a   :  { %3459 = vmatpush3.bf16.msra.mxu0 %v3480_v7  ;;  %v263_v62 = vld [vmem:[#allocation2 + $0x160] sm:$0xff]  ;;  %v3057_v5 = vcombine.low %v260_v63, %v264_v1  ;;  %v3058_v6 = vcombine.high %v260_v63, %v264_v1  ;;  %v276_v14 = vld [vmem:[#allocation2 + $0x1c8] sm:$0xff]  ;;  %v246_v53 = vld [vmem:[#allocation2 + $0xd8] sm:$0xff] }
  0x7b   :  { %644 = vmatprep.subr.bf16.mxu0 %v3018_v22  ;;  %608 = vmatpush1.bf16.msra.mxu1 %v3031_v39  ;;  %v3055_v2 = vcombine.low %v259_v61, %v263_v62  ;;  %v267_v3 = vld [vmem:[#allocation2 + $0x180] sm:$0xff]  ;;  %v280_v15 = vld [vmem:[#allocation2 + $0x1e8] sm:$0xff]  ;;  %v3019_v22 = vcombine.low %v221_v17, %v225_v18  ;;  %v250_v54 = vld [vmem:[#allocation2 + $0xf8] sm:$0xff] }
  0x7c   :  { %609 = vmatprep.subr.bf16.mxu1 %v3040_v41  ;;  %v271_v4 = vld [vmem:[#allocation2 + $0x1a0] sm:$0xff]  ;;  %v3074_v24 = vcombine.high %v276_v14, %v280_v15  ;;  %v3030_v41 = vcombine.high %v230_v36, %v234_v37 }
  0x7d   :  { %v3064_v7 = vcombine.high %v267_v3, %v271_v4  ;;  %v279_v13 = vld [vmem:[#allocation2 + $0x1e0] sm:$0xff]  ;;  %v3063_v16 = vcombine.low %v267_v3, %v271_v4  ;;  %v261_v3 = vld [vmem:[#allocation2 + $0x150] sm:$0xff] }
  0x7e   :  { %v265_v4 = vld [vmem:[#allocation2 + $0x170] sm:$0xff] }
  0x7f   :  { %610 = vmatpush1.bf16.msra.mxu1 %v3039_v43  ;;  %v241_v43 = vld [vmem:[#allocation2 + $0xb0] sm:$0xff] }
  0x80   :  { %611 = vmatprep.subr.bf16.mxu1 %v3048_v56 }
  0x83   :  { %612 = vmatpush1.bf16.msra.mxu1 %v3047_v60  ;;  %v257_v60 = vld [vmem:[#allocation2 + $0x130] sm:$0xff] }
  0xfd   :  { %v120_v8 = vpop.xlane.xlu0 %119 }
  0xfe   :  { %v121_v9 = vmax.f32 %v120_v8, 1e-24  ;;  %v268_v8 = vld [vmem:[#allocation2 + $0x188] sm:$0xff] }
 0x100   :  { %3577 = vrsqrt.f32 %v121_v9  ;;  %v272_v9 = vld [vmem:[#allocation2 + $0x1a8] sm:$0xff] }
 0x101   :  { %v3065_v20 = vcombine.low %v268_v8, %v272_v9 }
 0x10a   :  { %v3578_v10 = vpop.eup %3577 }
 0x10b   :  { %v123_v11 = vmul.f32 %v3578_v10, %v115_v0  ;;  %v3056_v0 = vcombine.high %v259_v61, %v263_v62  ;;  %v275_v10 = vld [vmem:[#allocation2 + $0x1c0] sm:$0xff]  ;;  %v254_v61 = vld [vmem:[#allocation2 + $0x118] sm:$0xff] }
 0x10c   :  { %v3071_v26 = vcombine.low %v275_v10, %v279_v13  ;;  %v258_v62 = vld [vmem:[#allocation2 + $0x138] sm:$0xff] }
 0x10d   :  { %v124_v12 = vpack.c.bf16 %v123_v11, %v123_v11  ;;  %v3785_v11 = vmov 0   ;;  %613 = vmatprep.subr.bf16.mxu1 %v3056_v0  ;;  %v3045_v0 = vcombine.low %v246_v53, %v250_v54 }
 0x10e   :  { %635 = vmatprep.mubr.bf16.mxu1 %v3785_v11  ;;  %614 = vmatpush1.bf16.msra.mxu1 %v3055_v2  ;;  %v3054_v2 = vcombine.high %v254_v61, %v258_v62 }
 0x10f   :  { %3461 = vmatmul.mubr.msk.bf16.vlgmr.msra.gmra.mrb[0].mxu0 %vm164_vm2, %v124_v12  ;;  %v3066_v12 = vcombine.high %v268_v8, %v272_v9  ;;  %615 = vmatprep.subr.bf16.mxu1 %v3064_v7  ;;  %v3053_v8 = vcombine.low %v254_v61, %v258_v62  ;;  %v3060_v9 = vcombine.high %v261_v3, %v265_v4  ;;  %v3511_v61 = vld [vmem:[#allocation4 + $0x38] sm:$0xff]  }
 0x110   :  { %645 = vmatpush1.bf16.msra.mxu0 %v3017_v21  ;;  %676 = vmatprep.mubr.bf16.mxu0 %v3785_v11  ;;  %v3072_v21 = vcombine.high %v275_v10, %v279_v13  ;;  %v273_v13 = vld [vmem:[#allocation2 + $0x1b0] sm:$0xff]  ;;  %v3512_v62 = vld [vmem:[#allocation4 + $0xb8] sm:$0xff]  }
 0x111   :  { %646 = vmatprep.subr.bf16.mxu0 %v3026_v27  ;;  %v3073_v27 = vcombine.low %v276_v14, %v280_v15  ;;  %v270_v14 = vld [vmem:[#allocation2 + $0x198] sm:$0xff] }
 0x112   :  { %616 = vmatpush1.bf16.msra.mxu1 %v3063_v16  ;;  %v274_v15 = vld [vmem:[#allocation2 + $0x1b8] sm:$0xff]  ;;  %v3059_v16 = vcombine.low %v261_v3, %v265_v4 }
 0x113   :  { %617 = vmatprep.subr.bf16.mxu1 %v3072_v21  ;;  %v3070_v19 = vcombine.high %v270_v14, %v274_v15  ;;  %v281_v21 = vld [vmem:[#allocation2 + $0x1f0] sm:$0xff] }
 0x114   :  { %647 = vmatpush1.bf16.msra.mxu0 %v3025_v32 }
 0x115   :  { %648 = vmatprep.subr.bf16.mxu0 %v3034_v34 }
 0x116   :  { %618 = vmatpush1.bf16.msra.mxu1 %v3071_v26 }
 0x117   :  { %685 = vmatprep.subr.bf16.mxu1 %v3020_v28 }
 0x118   :  { %649 = vmatpush1.bf16.msra.mxu0 %v3033_v40  ;;  %v3028_v40 = vcombine.high %v229_v33, %v233_v35 }
 0x119   :  { %650 = vmatprep.subr.bf16.mxu0 %v3042_v42  ;;  %v237_v42 = vld [vmem:[#allocation2 + $0x90] sm:$0xff] }
 0x11a   :  { %v3035_v55 = vcombine.low %v237_v42, %v241_v43 }
 0x11c   :  { %651 = vmatpush1.bf16.msra.mxu0 %v3041_v44  ;;  %v238_v44 = vld [vmem:[#allocation2 + $0x98] sm:$0xff] }
 0x11d   :  { %652 = vmatprep.subr.bf16.mxu0 %v3050_v59  ;;  %v253_v59 = vld [vmem:[#allocation2 + $0x110] sm:$0xff] }
 0x11e   :  { %v3052_v1 = vcombine.high %v253_v59, %v257_v60  ;;  %v3051_v7 = vcombine.low %v253_v59, %v257_v60  ;;  %v3509_v59 = vld [vmem:[#allocation4 + $0x78] sm:$0xff]  }
 0x11f   :  { %v3510_v60 = vld [vmem:[#allocation4 + $0xf8] sm:$0xff]  }
 0x120   :  { %653 = vmatpush1.bf16.msra.mxu0 %v3049_v58  ;;  %v3046_v58 = vcombine.high %v246_v53, %v250_v54  ;;  %v3503_v53 = vld [vmem:[#allocation4 + $0x28] sm:$0xff]  }
 0x121   :  { %654 = vmatprep.subr.bf16.mxu0 %v3058_v6  ;;  %v266_v6 = vld [vmem:[#allocation2 + $0x178] sm:$0xff]  ;;  %v3504_v54 = vld [vmem:[#allocation4 + $0xa8] sm:$0xff]  }
 0x124   :  { %655 = vmatpush1.bf16.msra.mxu0 %v3057_v5  ;;  %v262_v5 = vld [vmem:[#allocation2 + $0x158] sm:$0xff] }
 0x125   :  { %656 = vmatprep.subr.bf16.mxu0 %v3066_v12  ;;  %v3062_v10 = vcombine.high %v262_v5, %v266_v6  ;;  %v269_v12 = vld [vmem:[#allocation2 + $0x190] sm:$0xff]  ;;  %v3061_v17 = vcombine.low %v262_v5, %v266_v6 }
 0x126   :  { %v3068_v18 = vcombine.high %v269_v12, %v273_v13 }
 0x128   :  { %657 = vmatpush1.bf16.msra.mxu0 %v3065_v20  ;;  %v277_v20 = vld [vmem:[#allocation2 + $0x1d0] sm:$0xff] }
 0x129   :  { %658 = vmatprep.subr.bf16.mxu0 %v3074_v24  ;;  %v3067_v24 = vcombine.low %v269_v12, %v273_v13  ;;  %v3076_v26 = vcombine.high %v277_v20, %v281_v21  ;;  %v3075_v28 = vcombine.low %v277_v20, %v281_v21 }
 0x12c   :  { %659 = vmatpush1.bf16.msra.mxu0 %v3073_v27 }
 0x12d   :  { %726 = vmatprep.subr.bf16.mxu0 %v3022_v29 }
 0x1e2   :  { %v202_v46 = vpop.f32.mrb[0].mxu0 }
 0x1e3   :  { %v3944_v47 = vadd.f32 %v3009_v45, %v202_v46  ;;  %v3462_v48 = vpop.f32.mrb[1].mxu0  ;;  %v242_v45 = vld [vmem:[#allocation2 + $0xb8] sm:$0xff]  ;;  %v3027_v46 = vcombine.low %v229_v33, %v233_v35  ;;  %v3484_v33 = vld [vmem:[#allocation4 + $0x80] sm:$0xff]   ;;  %v3486_v35 = vld [vmem:[#allocation4 + $0xc8] sm:$0xff]  }
 0x1e4   :  { %v205_v49 = vpop.f32.mrb[2].mxu0  ;;  %v3029_v48 = vcombine.low %v230_v36, %v234_v37  ;;  %v3037_v56 = vcombine.low %v238_v44, %v242_v45  ;;  %v3487_v36 = vld [vmem:[#allocation4 + $0x8] sm:$0xff]  }
 0x1e5   :  { %v3463_v50 = vpop.f32.mrb[3].mxu0  ;;  %v208_v51 = vmul.f32 %v3944_v47, %v3944_v47  ;;  %v3036_v49 = vcombine.high %v237_v42, %v241_v43  ;;  %v3488_v37 = vld [vmem:[#allocation4 + $0x88] sm:$0xff]   ;;  %v3493_v42 = vld [vmem:[#allocation4 + $0x58] sm:$0xff]  }
 0x1e6   :  { %v3038_v50 = vcombine.high %v238_v44, %v242_v45  ;;  %v3494_v43 = vld [vmem:[#allocation4 + $0xd8] sm:$0xff]  }
 0x1e7   :  { %v210_v52 = vsel %vm209_vm3, %v208_v51, 0.0  ;;  %v245_v51 = vld [vmem:[#allocation2 + $0xd0] sm:$0xff]  ;;  %v3495_v44 = vld [vmem:[#allocation4 + $0x18] sm:$0xff]  }
 0x1e8   :  { %211 = vadd.xlane.f32.xlu0 %v210_v52  ;;  %v249_v52 = vld [vmem:[#allocation2 + $0xf0] sm:$0xff]  ;;  %v3496_v45 = vld [vmem:[#allocation4 + $0x98] sm:$0xff]  }
 0x1e9   :  { %v3044_v57 = vcombine.high %v245_v51, %v249_v52  ;;  %v3043_v63 = vcombine.low %v245_v51, %v249_v52  ;;  %v3501_v51 = vld [vmem:[#allocation4 + $0x68] sm:$0xff]  }
 0x1ea   :  { %v3502_v52 = vld [vmem:[#allocation4 + $0xe8] sm:$0xff]  }
 0x275   :  { %v212_v30 = vpop.xlane.xlu0 %211 }
 0x276   :  { %v214_v31 = vmul.f32 0.0078125, %v212_v30  ;;  %v3481_v30 = vld [vmem:[#allocation4 + $0x40] sm:$0xff]  }
 0x278   :  { %v215_v32 = vadd.f32 1e-06, %v214_v31  ;;  %v3482_v31 = vld [vmem:[#allocation4 + $0xc0] sm:$0xff]  }
 0x27a   :  { %3579 = vrsqrt.f32 %v215_v32  ;;  %v3483_v32 = vld [vmem:[#allocation4] sm:$0xff]  }
 0x284   :  { %v3580_v34 = vpop.eup %3579 }
 0x285   :  { %v217_v38 = vmul.f32 %v3580_v34, %v3944_v47  ;;  %v3485_v34 = vld [vmem:[#allocation4 + $0x48] sm:$0xff]  }
 0x287   :  { %v3952_v39 = vpack.c.bf16 %v217_v38, %v217_v38  ;;  %v3489_v38 = vld [vmem:[#allocation4 + $0x50] sm:$0xff]  }
 0x289   :  { %636 = vmatmul.mubr.bf16.vlgmr.msra.gmra.mrb[0].mxu1 %v3952_v39  ;;  %677 = vmatmul.mubr.bf16.vlgmr.msra.gmra.mrb[4].mxu0 %v3952_v39 }
 0x28a   :  { %686 = vmatpush1.bf16.msra.mxu1 %v3019_v22  ;;  %727 = vmatpush1.bf16.msra.mxu0 %v3021_v25  ;;  %v278_v22 = vld [vmem:[#allocation2 + $0x1d8] sm:$0xff]  ;;  %v3069_v25 = vcombine.low %v270_v14, %v274_v15 }
 0x28b   :  { %687 = vmatprep.subr.bf16.mxu1 %v3028_v40  ;;  %728 = vmatprep.subr.bf16.mxu0 %v3030_v41  ;;  %v3078_v27 = vcombine.high %v278_v22, %v282_v23  ;;  %v3077_v29 = vcombine.low %v278_v22, %v282_v23  ;;  %v3490_v40 = vld [vmem:[#allocation4 + $0xd0] sm:$0xff]  }
 0x28c   :  { %717 = vmatprep.mubr.bf16.mxu1 %v3785_v11  ;;  %758 = vmatprep.mubr.bf16.mxu0 %v3785_v11  ;;  %v3491_v41 = vld [vmem:[#allocation4 + $0x10] sm:$0xff]  }
 0x28e   :  { %688 = vmatpush1.bf16.msra.mxu1 %v3027_v46  ;;  %729 = vmatpush1.bf16.msra.mxu0 %v3029_v48  ;;  %v3497_v46 = vld [vmem:[#allocation4 + $0x60] sm:$0xff]  }
 0x28f   :  { %689 = vmatprep.subr.bf16.mxu1 %v3036_v49  ;;  %730 = vmatprep.subr.bf16.mxu0 %v3038_v50  ;;  %v3498_v48 = vld [vmem:[#allocation4 + $0xe0] sm:$0xff]  }
 0x290   :  { %v3499_v49 = vld [vmem:[#allocation4 + $0x20] sm:$0xff]  }
 0x291   :  { %v3500_v50 = vld [vmem:[#allocation4 + $0xa0] sm:$0xff]  }
 0x292   :  { %690 = vmatpush1.bf16.msra.mxu1 %v3035_v55  ;;  %731 = vmatpush1.bf16.msra.mxu0 %v3037_v56  ;;  %v3505_v55 = vld [vmem:[#allocation4 + $0x70] sm:$0xff]  }
 0x293   :  { %691 = vmatprep.subr.bf16.mxu1 %v3044_v57  ;;  %732 = vmatprep.subr.bf16.mxu0 %v3046_v58  ;;  %v3506_v56 = vld [vmem:[#allocation4 + $0xf0] sm:$0xff]  }
 0x294   :  { %v3507_v57 = vld [vmem:[#allocation4 + $0x30] sm:$0xff]  }
 0x295   :  { %v3508_v58 = vld [vmem:[#allocation4 + $0xb0] sm:$0xff]  }
 0x296   :  { %692 = vmatpush1.bf16.msra.mxu1 %v3043_v63  ;;  %733 = vmatpush1.bf16.msra.mxu0 %v3045_v0 }
 0x297   :  { %693 = vmatprep.subr.bf16.mxu1 %v3052_v1  ;;  %734 = vmatprep.subr.bf16.mxu0 %v3054_v2 }
 0x29a   :  { %694 = vmatpush1.bf16.msra.mxu1 %v3051_v7  ;;  %735 = vmatpush1.bf16.msra.mxu0 %v3053_v8 }
 0x29b   :  { %695 = vmatprep.subr.bf16.mxu1 %v3060_v9  ;;  %736 = vmatprep.subr.bf16.mxu0 %v3062_v10 }
 0x29e   :  { %696 = vmatpush1.bf16.msra.mxu1 %v3059_v16  ;;  %737 = vmatpush1.bf16.msra.mxu0 %v3061_v17 }
 0x29f   :  { %697 = vmatprep.subr.bf16.mxu1 %v3068_v18  ;;  %738 = vmatprep.subr.bf16.mxu0 %v3070_v19 }
 0x2a2   :  { %698 = vmatpush1.bf16.msra.mxu1 %v3067_v24  ;;  %739 = vmatpush1.bf16.msra.mxu0 %v3069_v25 }
 0x2a3   :  { %699 = vmatprep.subr.bf16.mxu1 %v3076_v26  ;;  %740 = vmatprep.subr.bf16.mxu0 %v3078_v27 }
 0x2a6   :  { %700 = vmatpush1.bf16.msra.mxu1 %v3075_v28  ;;  %741 = vmatpush1.bf16.msra.mxu0 %v3077_v29 }
 0x2a7   :  { %3320 = vmatprep.subr.bf16.mxu1 %v3481_v30  ;;  %3342 = vmatprep.subr.bf16.mxu0 %v3482_v31 }
 0x2a9   :  { %718 = vmatmul.mubr.bf16.vlgmr.msra.gmra.mrb[4].mxu1 %v3952_v39  ;;  %759 = vmatmul.mubr.bf16.vlgmr.msra.gmra.mrb[8].mxu0 %v3952_v39  ;;  %v3492_v39 = vld [vmem:[#allocation4 + $0x90] sm:$0xff]  }
 0x2aa   :  { %3321 = vmatpush3.bf16.msra.mxu1 %v3483_v32  ;;  %3343 = vmatpush3.bf16.msra.mxu0 %v3484_v33 }
 0x2ab   :  { %3322 = vmatprep.subr.bf16.mxu1 %v3485_v34  ;;  %3344 = vmatprep.subr.bf16.mxu0 %v3486_v35 }
 0x2ae   :  { %3323 = vmatpush3.bf16.msra.mxu1 %v3487_v36  ;;  %3345 = vmatpush3.bf16.msra.mxu0 %v3488_v37 }
 0x2af   :  { %3324 = vmatprep.subr.bf16.mxu1 %v3489_v38  ;;  %3346 = vmatprep.subr.bf16.mxu0 %v3490_v40 }
 0x2b2   :  { %3325 = vmatpush3.bf16.msra.mxu1 %v3491_v41  ;;  %3347 = vmatpush3.bf16.msra.mxu0 %v3492_v39 }
 0x2b3   :  { %3326 = vmatprep.subr.bf16.mxu1 %v3493_v42  ;;  %3348 = vmatprep.subr.bf16.mxu0 %v3494_v43 }
 0x2b6   :  { %3327 = vmatpush3.bf16.msra.mxu1 %v3495_v44  ;;  %3349 = vmatpush3.bf16.msra.mxu0 %v3496_v45  ;;  %v1149_v44 = vld [vmem:[#allocation6] sm:$0xff] }
 0x2b7   :  { %3328 = vmatprep.subr.bf16.mxu1 %v3497_v46  ;;  %3350 = vmatprep.subr.bf16.mxu0 %v3498_v48  ;;  %v1153_v45 = vld [vmem:[#allocation6 + $0x20] sm:$0xff]  ;;  %v1150_v46 = vld [vmem:[#allocation6 + $0x8] sm:$0xff] }
 0x2b8   :  { %v3115_v48 = vcombine.low %v1149_v44, %v1153_v45 }
 0x2ba   :  { %3329 = vmatpush3.bf16.msra.mxu1 %v3499_v49  ;;  %3351 = vmatpush3.bf16.msra.mxu0 %v3500_v50  ;;  %v3116_v49 = vcombine.high %v1149_v44, %v1153_v45  ;;  %v1154_v50 = vld [vmem:[#allocation6 + $0x28] sm:$0xff] }
 0x2bb   :  { %3330 = vmatprep.subr.bf16.mxu1 %v3501_v51  ;;  %3352 = vmatprep.subr.bf16.mxu0 %v3502_v52  ;;  %v1157_v51 = vld [vmem:[#allocation6 + $0x40] sm:$0xff] }
 0x2bc   :  { %v1161_v52 = vld [vmem:[#allocation6 + $0x60] sm:$0xff] }
 0x2be   :  { %3331 = vmatpush3.bf16.msra.mxu1 %v3503_v53  ;;  %3353 = vmatpush3.bf16.msra.mxu0 %v3504_v54  ;;  %v3117_v53 = vcombine.low %v1150_v46, %v1154_v50  ;;  %v3118_v54 = vcombine.high %v1150_v46, %v1154_v50  ;;  %v1198_v46 = vld [vmem:[#allocation6 + $0x188] sm:$0xff] }
 0x2bf   :  { %3332 = vmatprep.subr.bf16.mxu1 %v3505_v55  ;;  %3354 = vmatprep.subr.bf16.mxu0 %v3506_v56  ;;  %v3124_v55 = vcombine.high %v1157_v51, %v1161_v52  ;;  %v1158_v56 = vld [vmem:[#allocation6 + $0x48] sm:$0xff] }
 0x2c2   :  { %3333 = vmatpush3.bf16.msra.mxu1 %v3507_v57  ;;  %3355 = vmatpush3.bf16.msra.mxu0 %v3508_v58  ;;  %v1162_v57 = vld [vmem:[#allocation6 + $0x68] sm:$0xff]  ;;  %v1165_v58 = vld [vmem:[#allocation6 + $0x80] sm:$0xff] }
 0x2c3   :  { %3334 = vmatprep.subr.bf16.mxu1 %v3509_v59  ;;  %3356 = vmatprep.subr.bf16.mxu0 %v3510_v60  ;;  %v3126_v59 = vcombine.high %v1158_v56, %v1162_v57  ;;  %v1169_v60 = vld [vmem:[#allocation6 + $0xa0] sm:$0xff] }
 0x2c6   :  { %3335 = vmatpush3.bf16.msra.mxu1 %v3511_v61  ;;  %3357 = vmatpush3.bf16.msra.mxu0 %v3512_v62  ;;  %v1166_v61 = vld [vmem:[#allocation6 + $0x88] sm:$0xff] }
 0x2c7   :  { %1533 = vmatprep.subr.bf16.mxu1 %v3116_v49  ;;  %v1170_v62 = vld [vmem:[#allocation6 + $0xa8] sm:$0xff]  ;;  %1574 = vmatprep.subr.bf16.mxu0 %v3118_v54  ;;  %v1205_v49 = vld [vmem:[#allocation6 + $0x1c0] sm:$0xff] }
 0x35c   :  { %v637_v63 = vpop.f32.mrb[0].mxu1  ;;  %v678_v0 = vpop.f32.mrb[4].mxu0 }
 0x35d   :  { %v3079_v1 = vmul.f32 -1.442695, %v637_v63  ;;  %v3081_v2 = vmul.f32 -1.442695, %v678_v0  ;;  %v639_v3 = vpop.f32.mrb[1].mxu1  ;;  %v680_v4 = vpop.f32.mrb[5].mxu0 }
 0x35e   :  { %v3080_v5 = vmul.f32 -1.442695, %v639_v3  ;;  %v3082_v6 = vmul.f32 -1.442695, %v680_v4  ;;  %v641_v7 = vpop.f32.mrb[2].mxu1  ;;  %v682_v8 = vpop.f32.mrb[6].mxu0 }
 0x35f   :  { %3581 = vpow2.f32 %v3079_v1  ;;  %v642_v9 = vpop.f32.mrb[3].mxu1  ;;  %v683_v10 = vpop.f32.mrb[7].mxu0  ;;  %v3132_v1 = vcombine.high %v1165_v58, %v1169_v60  ;;  %v3131_v7 = vcombine.low %v1165_v58, %v1169_v60  ;;  %v3133_v8 = vcombine.low %v1166_v61, %v1170_v62 }
 0x360   :  { %3583 = vpow2.f32 %v3081_v2  ;;  %v3134_v2 = vcombine.high %v1166_v61, %v1170_v62  ;;  %v1156_v61 = vld [vmem:[#allocation6 + $0x38] sm:$0xff] }
 0x361   :  { %3585 = vpow2.f32 %v3080_v5  ;;  %v1174_v5 = vld [vmem:[#allocation6 + $0xc8] sm:$0xff] }
 0x362   :  { %3587 = vpow2.f32 %v3082_v6  ;;  %v1178_v6 = vld [vmem:[#allocation6 + $0xe8] sm:$0xff] }
 0x363   :  { %v3142_v10 = vcombine.high %v1174_v5, %v1178_v6 }
 0x369   :  { %v3582_v12 = vpop.eup %3581 }
 0x36a   :  { %v3584_v13 = vpop.eup %3583  ;;  %v779_v14 = vadd.f32 1.0, %v3582_v12 }
 0x36b   :  { %v3586_v15 = vpop.eup %3585  ;;  %v781_v16 = vadd.f32 1.0, %v3584_v13  ;;  %v3141_v13 = vcombine.low %v1174_v5, %v1178_v6 }
 0x36c   :  { %v3588_v17 = vpop.eup %3587  ;;  %3589 = vrcp.f32 %v779_v14  ;;  %v780_v18 = vadd.f32 1.0, %v3586_v15 }
 0x36d   :  { %3591 = vrcp.f32 %v781_v16  ;;  %v782_v19 = vadd.f32 1.0, %v3588_v17 }
 0x36e   :  { %3593 = vrcp.f32 %v780_v18 }
 0x36f   :  { %3595 = vrcp.f32 %v782_v19 }
 0x376   :  { %v3590_v20 = vpop.eup %3589 }
 0x377   :  { %v3592_v21 = vpop.eup %3591  ;;  %v791_v24 = vmul.f32 %v3590_v20, %v637_v63  ;;  %v3123_v63 = vcombine.low %v1157_v51, %v1161_v52  ;;  %v1209_v51 = vld [vmem:[#allocation6 + $0x1e0] sm:$0xff]  ;;  %v1206_v52 = vld [vmem:[#allocation6 + $0x1c8] sm:$0xff] }
 0x378   :  { %v3594_v22 = vpop.eup %3593  ;;  %v793_v25 = vmul.f32 %v3592_v21, %v678_v0  ;;  %v3125_v0 = vcombine.low %v1158_v56, %v1162_v57  ;;  %v1155_v56 = vld [vmem:[#allocation6 + $0x30] sm:$0xff]  ;;  %v1152_v57 = vld [vmem:[#allocation6 + $0x18] sm:$0xff] }
 0x379   :  { %v3596_v23 = vpop.eup %3595  ;;  %v792_v26 = vmul.f32 %v3594_v22, %v639_v3  ;;  %v1173_v3 = vld [vmem:[#allocation6 + $0xc0] sm:$0xff] }
 0x37a   :  { %v794_v27 = vmul.f32 %v3596_v23, %v680_v4  ;;  %v1177_v4 = vld [vmem:[#allocation6 + $0xe0] sm:$0xff] }
 0x37b   :  { %v3140_v9 = vcombine.high %v1173_v3, %v1177_v4  ;;  %v3139_v12 = vcombine.low %v1173_v3, %v1177_v4  ;;  %v3122_v3 = vcombine.high %v1152_v57, %v1156_v61 }
 0x37c   :  { %v719_v28 = vpop.f32.mrb[4].mxu1  ;;  %v760_v29 = vpop.f32.mrb[8].mxu0 }
 0x37d   :  { %v795_v30 = vmul.f32 %v791_v24, %v719_v28  ;;  %v797_v31 = vmul.f32 %v793_v25, %v760_v29  ;;  %v721_v32 = vpop.f32.mrb[5].mxu1  ;;  %v762_v33 = vpop.f32.mrb[9].mxu0  ;;  %v1181_v28 = vld [vmem:[#allocation6 + $0x100] sm:$0xff] }
 0x37e   :  { %v796_v34 = vmul.f32 %v792_v26, %v721_v32  ;;  %v798_v35 = vmul.f32 %v794_v27, %v762_v33  ;;  %v723_v36 = vpop.f32.mrb[6].mxu1  ;;  %v764_v37 = vpop.f32.mrb[10].mxu0  ;;  %v1185_v29 = vld [vmem:[#allocation6 + $0x120] sm:$0xff]  ;;  %v1186_v32 = vld [vmem:[#allocation6 + $0x128] sm:$0xff] }
 0x37f   :  { %v724_v38 = vpop.f32.mrb[7].mxu1  ;;  %v765_v40 = vpop.f32.mrb[11].mxu0  ;;  %v799_v42 = vpack.c.bf16 %v795_v30, %v795_v30  ;;  %v801_v43 = vpack.c.bf16 %v797_v31, %v797_v31  ;;  %v1182_v30 = vld [vmem:[#allocation6 + $0x108] sm:$0xff]  ;;  %v3148_v31 = vcombine.high %v1181_v28, %v1185_v29  ;;  %v3147_v33 = vcombine.low %v1181_v28, %v1185_v29  ;;  %v1189_v36 = vld [vmem:[#allocation6 + $0x140] sm:$0xff]  ;;  %v1176_v28 = vld [vmem:[#allocation6 + $0xd8] sm:$0xff] }
 0x380   :  { %v800_v41 = vpack.c.bf16 %v796_v34, %v796_v34  ;;  %v802_v39 = vpack.c.bf16 %v798_v35, %v798_v35  ;;  %v3149_v34 = vcombine.low %v1182_v30, %v1186_v32  ;;  %v3150_v35 = vcombine.high %v1182_v30, %v1186_v32  ;;  %v1190_v37 = vld [vmem:[#allocation6 + $0x148] sm:$0xff]  ;;  %v1180_v29 = vld [vmem:[#allocation6 + $0xf8] sm:$0xff] }
 0x382   :  { %1091 = vmatprep.mubr.bf16.mxu1 %v800_v41  ;;  %1131 = vmatprep.mubr.bf16.mxu0 %v802_v39  ;;  %v1194_v41 = vld [vmem:[#allocation6 + $0x168] sm:$0xff]  ;;  %v1197_v39 = vld [vmem:[#allocation6 + $0x180] sm:$0xff] }
 0x383   :  { %1092 = vmatmul.mubr.bf16.vlgmr.msra.gmra.mrb[8].mxu1 %v799_v42  ;;  %1132 = vmatmul.mubr.bf16.vlgmr.msra.gmra.mrb[12].mxu0 %v801_v43  ;;  %v1201_v42 = vld [vmem:[#allocation6 + $0x1a0] sm:$0xff]  ;;  %v3157_v43 = vcombine.low %v1190_v37, %v1194_v41  ;;  %v3158_v44 = vcombine.high %v1190_v37, %v1194_v41 }
 0x384   :  { %1565 = vmatprep.mubr.bf16.mxu1 %v3785_v11  ;;  %1606 = vmatprep.mubr.bf16.mxu0 %v3785_v11  ;;  %v3164_v45 = vcombine.high %v1197_v39, %v1201_v42  ;;  %v3163_v54 = vcombine.low %v1197_v39, %v1201_v42  ;;  %v1191_v39 = vld [vmem:[#allocation6 + $0x150] sm:$0xff] }
 0x385   :  { %1534 = vmatpush1.bf16.msra.mxu1 %v3115_v48  ;;  %1575 = vmatpush1.bf16.msra.mxu0 %v3117_v53  ;;  %v1202_v48 = vld [vmem:[#allocation6 + $0x1a8] sm:$0xff]  ;;  %v1195_v42 = vld [vmem:[#allocation6 + $0x170] sm:$0xff] }
 0x386   :  { %1535 = vmatprep.subr.bf16.mxu1 %v3124_v55  ;;  %1576 = vmatprep.subr.bf16.mxu0 %v3126_v59  ;;  %v3166_v50 = vcombine.high %v1198_v46, %v1202_v48  ;;  %v1210_v53 = vld [vmem:[#allocation6 + $0x1e8] sm:$0xff]  ;;  %v1151_v55 = vld [vmem:[#allocation6 + $0x10] sm:$0xff]  ;;  %v3165_v58 = vcombine.low %v1198_v46, %v1202_v48  ;;  %v3172_v59 = vcombine.high %v1205_v49, %v1209_v51 }
 0x387   :  { %v3119_v60 = vcombine.low %v1151_v55, %v1155_v56  ;;  %v3174_v62 = vcombine.high %v1206_v52, %v1210_v53  ;;  %v3160_v48 = vcombine.high %v1191_v39, %v1195_v42 }
 0x389   :  { %1536 = vmatpush1.bf16.msra.mxu1 %v3123_v63  ;;  %1577 = vmatpush1.bf16.msra.mxu0 %v3125_v0  ;;  %v3121_v63 = vcombine.low %v1152_v57, %v1156_v61  ;;  %v3171_v0 = vcombine.low %v1205_v49, %v1209_v51  ;;  %v1203_v51 = vld [vmem:[#allocation6 + $0x1b0] sm:$0xff]  ;;  %v1212_v61 = vld [vmem:[#allocation6 + $0x1f8] sm:$0xff] }
 0x38a   :  { %1537 = vmatprep.subr.bf16.mxu1 %v3132_v1  ;;  %1578 = vmatprep.subr.bf16.mxu0 %v3134_v2  ;;  %v3173_v1 = vcombine.low %v1206_v52, %v1210_v53  ;;  %v3120_v2 = vcombine.high %v1151_v55, %v1155_v56  ;;  %v1200_v52 = vld [vmem:[#allocation6 + $0x198] sm:$0xff] }
 0x38b   :  { %v1204_v53 = vld [vmem:[#allocation6 + $0x1b8] sm:$0xff] }
 0x38c   :  { %v3170_v57 = vcombine.high %v1200_v52, %v1204_v53 }
 0x38d   :  { %1538 = vmatpush1.bf16.msra.mxu1 %v3131_v7  ;;  %1579 = vmatpush1.bf16.msra.mxu0 %v3133_v8  ;;  %v1159_v7 = vld [vmem:[#allocation6 + $0x50] sm:$0xff] }
 0x38e   :  { %1539 = vmatprep.subr.bf16.mxu1 %v3140_v9  ;;  %1580 = vmatprep.subr.bf16.mxu0 %v3142_v10  ;;  %v1163_v9 = vld [vmem:[#allocation6 + $0x70] sm:$0xff]  ;;  %v1160_v10 = vld [vmem:[#allocation6 + $0x58] sm:$0xff] }
 0x391   :  { %1540 = vmatpush1.bf16.msra.mxu1 %v3139_v12  ;;  %1581 = vmatpush1.bf16.msra.mxu0 %v3141_v13  ;;  %v1164_v12 = vld [vmem:[#allocation6 + $0x78] sm:$0xff] }
 0x392   :  { %1541 = vmatprep.subr.bf16.mxu1 %v3148_v31  ;;  %1582 = vmatprep.subr.bf16.mxu0 %v3150_v35  ;;  %v1187_v35 = vld [vmem:[#allocation6 + $0x130] sm:$0xff] }
 0x395   :  { %1542 = vmatpush1.bf16.msra.mxu1 %v3147_v33  ;;  %1583 = vmatpush1.bf16.msra.mxu0 %v3149_v34  ;;  %v3146_v33 = vcombine.high %v1176_v28, %v1180_v29  ;;  %v1183_v34 = vld [vmem:[#allocation6 + $0x110] sm:$0xff] }
 0x396   :  { %1584 = vmatprep.subr.bf16.mxu0 %v3158_v44  ;;  %v1196_v44 = vld [vmem:[#allocation6 + $0x178] sm:$0xff] }
 0x399   :  { %1585 = vmatpush1.bf16.msra.mxu0 %v3157_v43  ;;  %v1192_v43 = vld [vmem:[#allocation6 + $0x158] sm:$0xff] }
 0x39a   :  { %1586 = vmatprep.subr.bf16.mxu0 %v3166_v50  ;;  %v3162_v49 = vcombine.high %v1192_v43, %v1196_v44  ;;  %v1199_v50 = vld [vmem:[#allocation6 + $0x190] sm:$0xff]  ;;  %v3161_v55 = vcombine.low %v1192_v43, %v1196_v44 }
 0x39b   :  { %v3168_v56 = vcombine.high %v1199_v50, %v1203_v51 }
 0x39d   :  { %1587 = vmatpush1.bf16.msra.mxu0 %v3165_v58  ;;  %v1207_v58 = vld [vmem:[#allocation6 + $0x1d0] sm:$0xff] }
 0x39e   :  { %1588 = vmatprep.subr.bf16.mxu0 %v3174_v62  ;;  %v3167_v62 = vcombine.low %v1199_v50, %v1203_v51 }
 0x3a1   :  { %1589 = vmatpush1.bf16.msra.mxu0 %v3173_v1 }
 0x3a2   :  { %1656 = vmatprep.subr.bf16.mxu0 %v3122_v3 }
 0x456   :  { %v3336_v14 = vpop.f32.mrb[8].mxu1  ;;  %v3358_v15 = vpop.f32.mrb[12].mxu0 }
 0x457   :  { %v3337_v16 = vpop.f32.mrb[9].mxu1  ;;  %v3359_v17 = vpop.f32.mrb[13].mxu0 }
 0x458   :  { %v3338_v18 = vadd.f32 %v3337_v16, %v3336_v14  ;;  %v3360_v19 = vadd.f32 %v3359_v17, %v3358_v15  ;;  %v3339_v20 = vpop.f32.mrb[10].mxu1  ;;  %v3361_v21 = vpop.f32.mrb[14].mxu0  ;;  %v3128_v15 = vcombine.high %v1159_v7, %v1163_v9  ;;  %v3130_v16 = vcombine.high %v1160_v10, %v1164_v12  ;;  %v1167_v17 = vld [vmem:[#allocation6 + $0x90] sm:$0xff] }
 0x459   :  { %v3340_v22 = vpop.f32.mrb[11].mxu1  ;;  %v3362_v23 = vpop.f32.mrb[15].mxu0  ;;  %v1172_v20 = vld [vmem:[#allocation6 + $0xb8] sm:$0xff]  ;;  %v3127_v21 = vcombine.low %v1159_v7, %v1163_v9  ;;  %v3516_v7 = vld [vmem:[#allocation7 + $0x80] sm:$0xff]   ;;  %v3518_v9 = vld [vmem:[#allocation7 + $0xc8] sm:$0xff]  }
 0x45a   :  { %v1134_v24 = vadd.f32 %v3360_v19, %v3338_v18  ;;  %v1171_v18 = vld [vmem:[#allocation6 + $0xb0] sm:$0xff]  ;;  %v1168_v19 = vld [vmem:[#allocation6 + $0x98] sm:$0xff]  ;;  %v3129_v22 = vcombine.low %v1160_v10, %v1164_v12  ;;  %v3519_v10 = vld [vmem:[#allocation7 + $0x8] sm:$0xff]  }
 0x45b   :  { %v3136_v23 = vcombine.high %v1167_v17, %v1171_v18  ;;  %v3135_v30 = vcombine.low %v1167_v17, %v1171_v18  ;;  %v3137_v31 = vcombine.low %v1168_v19, %v1172_v20  ;;  %v3520_v12 = vld [vmem:[#allocation7 + $0x88] sm:$0xff]   ;;  %v3525_v17 = vld [vmem:[#allocation7 + $0x58] sm:$0xff]  }
 0x45c   :  { %v3963_v25 = vadd.f32 %v1134_v24, %v3944_v47  ;;  %v1193_v47 = vld [vmem:[#allocation6 + $0x160] sm:$0xff]  ;;  %v3138_v24 = vcombine.high %v1168_v19, %v1172_v20  ;;  %v3526_v18 = vld [vmem:[#allocation7 + $0xd8] sm:$0xff]  }
 0x45d   :  { %v3155_v38 = vcombine.low %v1189_v36, %v1193_v47  ;;  %v3156_v40 = vcombine.high %v1189_v36, %v1193_v47  ;;  %v1184_v36 = vld [vmem:[#allocation6 + $0x118] sm:$0xff] }
 0x45e   :  { %v1140_v26 = vmul.f32 %v3963_v25, %v3963_v25  ;;  %v1188_v47 = vld [vmem:[#allocation6 + $0x138] sm:$0xff] }
 0x45f   :  { %1543 = vmatprep.subr.bf16.mxu1 %v3156_v40  ;;  %v3152_v40 = vcombine.high %v1183_v34, %v1187_v35  ;;  %v3154_v41 = vcombine.high %v1184_v36, %v1188_v47  ;;  %v3153_v46 = vcombine.low %v1184_v36, %v1188_v47  ;;  %v3527_v19 = vld [vmem:[#allocation7 + $0x18] sm:$0xff]  }
 0x460   :  { %v1141_v27 = vsel %vm209_vm3, %v1140_v26, 0.0  ;;  %1544 = vmatpush1.bf16.msra.mxu1 %v3155_v38  ;;  %v1175_v26 = vld [vmem:[#allocation6 + $0xd0] sm:$0xff]  ;;  %v3145_v38 = vcombine.low %v1176_v28, %v1180_v29  ;;  %v3528_v20 = vld [vmem:[#allocation7 + $0x98] sm:$0xff]   ;;  %v3535_v28 = vld [vmem:[#allocation7 + $0x28] sm:$0xff]  }
 0x461   :  { %1142 = vadd.xlane.f32.xlu1 %v1141_v27  ;;  %1545 = vmatprep.subr.bf16.mxu1 %v3164_v45  ;;  %v1179_v27 = vld [vmem:[#allocation6 + $0xf0] sm:$0xff]  ;;  %v3151_v45 = vcombine.low %v1183_v34, %v1187_v35  ;;  %v3536_v29 = vld [vmem:[#allocation7 + $0xa8] sm:$0xff]   ;;  %v3541_v34 = vld [vmem:[#allocation7 + $0x78] sm:$0xff]  }
 0x462   :  { %v3144_v32 = vcombine.high %v1175_v26, %v1179_v27  ;;  %v3143_v37 = vcombine.low %v1175_v26, %v1179_v27  ;;  %v3533_v26 = vld [vmem:[#allocation7 + $0x68] sm:$0xff]   ;;  %v3542_v35 = vld [vmem:[#allocation7 + $0xf8] sm:$0xff]  }
 0x463   :  { %v3534_v27 = vld [vmem:[#allocation7 + $0xe8] sm:$0xff]   ;;  %v3543_v36 = vld [vmem:[#allocation7 + $0x38] sm:$0xff]  }
 0x464   :  { %1546 = vmatpush1.bf16.msra.mxu1 %v3163_v54  ;;  %v3159_v54 = vcombine.low %v1191_v39, %v1195_v42  ;;  %v3544_v47 = vld [vmem:[#allocation7 + $0xb8] sm:$0xff]  }
 0x465   :  { %1547 = vmatprep.subr.bf16.mxu1 %v3172_v59  ;;  %v1211_v59 = vld [vmem:[#allocation6 + $0x1f0] sm:$0xff] }
 0x468   :  { %1548 = vmatpush1.bf16.msra.mxu1 %v3171_v0  ;;  %v3176_v0 = vcombine.high %v1207_v58, %v1211_v59 }
 0x469   :  { %1615 = vmatprep.subr.bf16.mxu1 %v3120_v2  ;;  %v3175_v2 = vcombine.low %v1207_v58, %v1211_v59 }
 0x4ee   :  { %v1143_v4 = vpop.xlane.xlu1 %1142 }
 0x4ef   :  { %v1144_v5 = vmul.f32 0.0078125, %v1143_v4  ;;  %v3513_v4 = vld [vmem:[#allocation7 + $0x40] sm:$0xff]  }
 0x4f1   :  { %v1145_v6 = vadd.f32 1e-06, %v1144_v5  ;;  %v3514_v5 = vld [vmem:[#allocation7 + $0xc0] sm:$0xff]  }
 0x4f3   :  { %3597 = vrsqrt.f32 %v1145_v6  ;;  %v3515_v6 = vld [vmem:[#allocation7] sm:$0xff]  }
 0x4fd   :  { %v3598_v8 = vpop.eup %3597 }
 0x4fe   :  { %v1147_v13 = vmul.f32 %v3598_v8, %v3963_v25  ;;  %v3517_v8 = vld [vmem:[#allocation7 + $0x48] sm:$0xff]  }
 0x500   :  { %v3969_v14 = vpack.c.bf16 %v1147_v13, %v1147_v13  ;;  %v3521_v13 = vld [vmem:[#allocation7 + $0x50] sm:$0xff]  }
 0x502   :  { %1566 = vmatmul.mubr.bf16.vlgmr.msra.gmra.mrb[12].mxu1 %v3969_v14  ;;  %1607 = vmatmul.mubr.bf16.vlgmr.msra.gmra.mrb[16].mxu0 %v3969_v14 }
 0x503   :  { %1616 = vmatpush1.bf16.msra.mxu1 %v3119_v60  ;;  %1657 = vmatpush1.bf16.msra.mxu0 %v3121_v63  ;;  %v1208_v60 = vld [vmem:[#allocation6 + $0x1d8] sm:$0xff]  ;;  %v3169_v63 = vcombine.low %v1200_v52, %v1204_v53 }
 0x504   :  { %1617 = vmatprep.subr.bf16.mxu1 %v3128_v15  ;;  %1658 = vmatprep.subr.bf16.mxu0 %v3130_v16  ;;  %v3178_v1 = vcombine.high %v1208_v60, %v1212_v61  ;;  %v3177_v3 = vcombine.low %v1208_v60, %v1212_v61  ;;  %v3522_v15 = vld [vmem:[#allocation7 + $0xd0] sm:$0xff]  }
 0x505   :  { %1647 = vmatprep.mubr.bf16.mxu1 %v3785_v11  ;;  %1688 = vmatprep.mubr.bf16.mxu0 %v3785_v11  ;;  %v3523_v16 = vld [vmem:[#allocation7 + $0x10] sm:$0xff]  }
 0x507   :  { %1618 = vmatpush1.bf16.msra.mxu1 %v3127_v21  ;;  %1659 = vmatpush1.bf16.msra.mxu0 %v3129_v22  ;;  %v3529_v21 = vld [vmem:[#allocation7 + $0x60] sm:$0xff]  }
 0x508   :  { %1619 = vmatprep.subr.bf16.mxu1 %v3136_v23  ;;  %1660 = vmatprep.subr.bf16.mxu0 %v3138_v24  ;;  %v3530_v22 = vld [vmem:[#allocation7 + $0xe0] sm:$0xff]  }
 0x509   :  { %v3531_v23 = vld [vmem:[#allocation7 + $0x20] sm:$0xff]  }
 0x50a   :  { %v3532_v24 = vld [vmem:[#allocation7 + $0xa0] sm:$0xff]  }
 0x50b   :  { %1620 = vmatpush1.bf16.msra.mxu1 %v3135_v30  ;;  %1661 = vmatpush1.bf16.msra.mxu0 %v3137_v31  ;;  %v3537_v30 = vld [vmem:[#allocation7 + $0x70] sm:$0xff]  }
 0x50c   :  { %1621 = vmatprep.subr.bf16.mxu1 %v3144_v32  ;;  %1662 = vmatprep.subr.bf16.mxu0 %v3146_v33  ;;  %v3538_v31 = vld [vmem:[#allocation7 + $0xf0] sm:$0xff]  }
 0x50d   :  { %v3539_v32 = vld [vmem:[#allocation7 + $0x30] sm:$0xff]  }
 0x50e   :  { %v3540_v33 = vld [vmem:[#allocation7 + $0xb0] sm:$0xff]  }
 0x50f   :  { %1622 = vmatpush1.bf16.msra.mxu1 %v3143_v37  ;;  %1663 = vmatpush1.bf16.msra.mxu0 %v3145_v38 }
 0x510   :  { %1623 = vmatprep.subr.bf16.mxu1 %v3152_v40  ;;  %1664 = vmatprep.subr.bf16.mxu0 %v3154_v41 }
 0x513   :  { %1624 = vmatpush1.bf16.msra.mxu1 %v3151_v45  ;;  %1665 = vmatpush1.bf16.msra.mxu0 %v3153_v46 }
 0x514   :  { %1625 = vmatprep.subr.bf16.mxu1 %v3160_v48  ;;  %1666 = vmatprep.subr.bf16.mxu0 %v3162_v49 }
 0x517   :  { %1626 = vmatpush1.bf16.msra.mxu1 %v3159_v54  ;;  %1667 = vmatpush1.bf16.msra.mxu0 %v3161_v55 }
 0x518   :  { %1627 = vmatprep.subr.bf16.mxu1 %v3168_v56  ;;  %1668 = vmatprep.subr.bf16.mxu0 %v3170_v57 }
 0x51b   :  { %1628 = vmatpush1.bf16.msra.mxu1 %v3167_v62  ;;  %1669 = vmatpush1.bf16.msra.mxu0 %v3169_v63 }
 0x51c   :  { %1629 = vmatprep.subr.bf16.mxu1 %v3176_v0  ;;  %1670 = vmatprep.subr.bf16.mxu0 %v3178_v1 }
 0x51f   :  { %1630 = vmatpush1.bf16.msra.mxu1 %v3175_v2  ;;  %1671 = vmatpush1.bf16.msra.mxu0 %v3177_v3 }
 0x520   :  { %3364 = vmatprep.subr.bf16.mxu1 %v3513_v4  ;;  %3386 = vmatprep.subr.bf16.mxu0 %v3514_v5 }
 0x522   :  { %1648 = vmatmul.mubr.bf16.vlgmr.msra.gmra.mrb[16].mxu1 %v3969_v14  ;;  %1689 = vmatmul.mubr.bf16.vlgmr.msra.gmra.mrb[20].mxu0 %v3969_v14  ;;  %v3524_v14 = vld [vmem:[#allocation7 + $0x90] sm:$0xff]  }
 0x523   :  { %3365 = vmatpush3.bf16.msra.mxu1 %v3515_v6  ;;  %3387 = vmatpush3.bf16.msra.mxu0 %v3516_v7 }
 0x524   :  { %3366 = vmatprep.subr.bf16.mxu1 %v3517_v8  ;;  %3388 = vmatprep.subr.bf16.mxu0 %v3518_v9 }
 0x527   :  { %3367 = vmatpush3.bf16.msra.mxu1 %v3519_v10  ;;  %3389 = vmatpush3.bf16.msra.mxu0 %v3520_v12 }
 0x528   :  { %3368 = vmatprep.subr.bf16.mxu1 %v3521_v13  ;;  %3390 = vmatprep.subr.bf16.mxu0 %v3522_v15 }
 0x52b   :  { %3369 = vmatpush3.bf16.msra.mxu1 %v3523_v16  ;;  %3391 = vmatpush3.bf16.msra.mxu0 %v3524_v14 }
 0x52c   :  { %3370 = vmatprep.subr.bf16.mxu1 %v3525_v17  ;;  %3392 = vmatprep.subr.bf16.mxu0 %v3526_v18 }
 0x52f   :  { %3371 = vmatpush3.bf16.msra.mxu1 %v3527_v19  ;;  %3393 = vmatpush3.bf16.msra.mxu0 %v3528_v20  ;;  %v2079_v19 = vld [vmem:[#allocation9] sm:$0xff] }
 0x530   :  { %3372 = vmatprep.subr.bf16.mxu1 %v3529_v21  ;;  %3394 = vmatprep.subr.bf16.mxu0 %v3530_v22  ;;  %v2083_v20 = vld [vmem:[#allocation9 + $0x20] sm:$0xff]  ;;  %v2080_v21 = vld [vmem:[#allocation9 + $0x8] sm:$0xff] }
 0x531   :  { %v3215_v22 = vcombine.low %v2079_v19, %v2083_v20 }
 0x533   :  { %3373 = vmatpush3.bf16.msra.mxu1 %v3531_v23  ;;  %3395 = vmatpush3.bf16.msra.mxu0 %v3532_v24  ;;  %v3216_v23 = vcombine.high %v2079_v19, %v2083_v20  ;;  %v2084_v24 = vld [vmem:[#allocation9 + $0x28] sm:$0xff] }
 0x534   :  { %3374 = vmatprep.subr.bf16.mxu1 %v3533_v26  ;;  %3396 = vmatprep.subr.bf16.mxu0 %v3534_v27  ;;  %v2087_v26 = vld [vmem:[#allocation9 + $0x40] sm:$0xff] }
 0x535   :  { %v2091_v27 = vld [vmem:[#allocation9 + $0x60] sm:$0xff] }
 0x537   :  { %3375 = vmatpush3.bf16.msra.mxu1 %v3535_v28  ;;  %3397 = vmatpush3.bf16.msra.mxu0 %v3536_v29  ;;  %v3217_v28 = vcombine.low %v2080_v21, %v2084_v24  ;;  %v3218_v29 = vcombine.high %v2080_v21, %v2084_v24  ;;  %v2128_v21 = vld [vmem:[#allocation9 + $0x188] sm:$0xff] }
 0x538   :  { %3376 = vmatprep.subr.bf16.mxu1 %v3537_v30  ;;  %3398 = vmatprep.subr.bf16.mxu0 %v3538_v31  ;;  %v3224_v30 = vcombine.high %v2087_v26, %v2091_v27  ;;  %v2088_v31 = vld [vmem:[#allocation9 + $0x48] sm:$0xff] }
 0x53b   :  { %3377 = vmatpush3.bf16.msra.mxu1 %v3539_v32  ;;  %3399 = vmatpush3.bf16.msra.mxu0 %v3540_v33  ;;  %v2092_v32 = vld [vmem:[#allocation9 + $0x68] sm:$0xff]  ;;  %v2095_v33 = vld [vmem:[#allocation9 + $0x80] sm:$0xff] }
 0x53c   :  { %3378 = vmatprep.subr.bf16.mxu1 %v3541_v34  ;;  %3400 = vmatprep.subr.bf16.mxu0 %v3542_v35  ;;  %v3226_v34 = vcombine.high %v2088_v31, %v2092_v32  ;;  %v2099_v35 = vld [vmem:[#allocation9 + $0xa0] sm:$0xff] }
 0x53f   :  { %3379 = vmatpush3.bf16.msra.mxu1 %v3543_v36  ;;  %3401 = vmatpush3.bf16.msra.mxu0 %v3544_v47  ;;  %v2096_v36 = vld [vmem:[#allocation9 + $0x88] sm:$0xff] }
 0x540   :  { %2463 = vmatprep.subr.bf16.mxu1 %v3216_v23  ;;  %v2100_v47 = vld [vmem:[#allocation9 + $0xa8] sm:$0xff]  ;;  %2504 = vmatprep.subr.bf16.mxu0 %v3218_v29  ;;  %v2135_v23 = vld [vmem:[#allocation9 + $0x1c0] sm:$0xff] }
 0x5d5   :  { %v1567_v37 = vpop.f32.mrb[12].mxu1  ;;  %v1608_v38 = vpop.f32.mrb[16].mxu0 }
 0x5d6   :  { %v3179_v40 = vmul.f32 -1.442695, %v1567_v37  ;;  %v3181_v41 = vmul.f32 -1.442695, %v1608_v38  ;;  %v1569_v39 = vpop.f32.mrb[13].mxu1  ;;  %v1610_v42 = vpop.f32.mrb[17].mxu0 }
 0x5d7   :  { %v3180_v43 = vmul.f32 -1.442695, %v1569_v39  ;;  %v3182_v44 = vmul.f32 -1.442695, %v1610_v42  ;;  %v1571_v45 = vpop.f32.mrb[14].mxu1  ;;  %v1612_v46 = vpop.f32.mrb[18].mxu0 }
 0x5d8   :  { %3599 = vpow2.f32 %v3179_v40  ;;  %v1572_v48 = vpop.f32.mrb[15].mxu1  ;;  %v1613_v49 = vpop.f32.mrb[19].mxu0  ;;  %v3232_v40 = vcombine.high %v2095_v33, %v2099_v35  ;;  %v3231_v45 = vcombine.low %v2095_v33, %v2099_v35  ;;  %v3233_v46 = vcombine.low %v2096_v36, %v2100_v47 }
 0x5d9   :  { %3601 = vpow2.f32 %v3181_v41  ;;  %v3234_v41 = vcombine.high %v2096_v36, %v2100_v47  ;;  %v2086_v36 = vld [vmem:[#allocation9 + $0x38] sm:$0xff] }
 0x5da   :  { %3603 = vpow2.f32 %v3180_v43  ;;  %v2104_v43 = vld [vmem:[#allocation9 + $0xc8] sm:$0xff] }
 0x5db   :  { %3605 = vpow2.f32 %v3182_v44  ;;  %v2108_v44 = vld [vmem:[#allocation9 + $0xe8] sm:$0xff] }
 0x5dc   :  { %v3242_v49 = vcombine.high %v2104_v43, %v2108_v44 }
 0x5e2   :  { %v3600_v50 = vpop.eup %3599 }
 0x5e3   :  { %v3602_v51 = vpop.eup %3601  ;;  %v1709_v52 = vadd.f32 1.0, %v3600_v50 }
 0x5e4   :  { %v3604_v53 = vpop.eup %3603  ;;  %v1711_v54 = vadd.f32 1.0, %v3602_v51  ;;  %v3241_v51 = vcombine.low %v2104_v43, %v2108_v44 }
 0x5e5   :  { %v3606_v55 = vpop.eup %3605  ;;  %3607 = vrcp.f32 %v1709_v52  ;;  %v1710_v56 = vadd.f32 1.0, %v3604_v53 }
 0x5e6   :  { %3609 = vrcp.f32 %v1711_v54  ;;  %v1712_v57 = vadd.f32 1.0, %v3606_v55 }
 0x5e7   :  { %3611 = vrcp.f32 %v1710_v56 }
 0x5e8   :  { %3613 = vrcp.f32 %v1712_v57 }
 0x5ef   :  { %v3608_v58 = vpop.eup %3607 }
 0x5f0   :  { %v3610_v59 = vpop.eup %3609  ;;  %v1721_v62 = vmul.f32 %v3608_v58, %v1567_v37  ;;  %v3223_v37 = vcombine.low %v2087_v26, %v2091_v27  ;;  %v2139_v26 = vld [vmem:[#allocation9 + $0x1e0] sm:$0xff]  ;;  %v2136_v27 = vld [vmem:[#allocation9 + $0x1c8] sm:$0xff] }
 0x5f1   :  { %v3612_v60 = vpop.eup %3611  ;;  %v1723_v63 = vmul.f32 %v3610_v59, %v1608_v38  ;;  %v3225_v38 = vcombine.low %v2088_v31, %v2092_v32  ;;  %v2085_v31 = vld [vmem:[#allocation9 + $0x30] sm:$0xff]  ;;  %v2082_v32 = vld [vmem:[#allocation9 + $0x18] sm:$0xff] }
 0x5f2   :  { %v3614_v61 = vpop.eup %3613  ;;  %v1722_v0 = vmul.f32 %v3612_v60, %v1569_v39  ;;  %v2103_v39 = vld [vmem:[#allocation9 + $0xc0] sm:$0xff] }
 0x5f3   :  { %v1724_v1 = vmul.f32 %v3614_v61, %v1610_v42  ;;  %v2107_v42 = vld [vmem:[#allocation9 + $0xe0] sm:$0xff] }
 0x5f4   :  { %v3240_v48 = vcombine.high %v2103_v39, %v2107_v42  ;;  %v3239_v50 = vcombine.low %v2103_v39, %v2107_v42  ;;  %v3222_v39 = vcombine.high %v2082_v32, %v2086_v36 }
 0x5f5   :  { %v1649_v2 = vpop.f32.mrb[16].mxu1  ;;  %v1690_v3 = vpop.f32.mrb[20].mxu0 }
 0x5f6   :  { %v1725_v4 = vmul.f32 %v1721_v62, %v1649_v2  ;;  %v1727_v5 = vmul.f32 %v1723_v63, %v1690_v3  ;;  %v1651_v6 = vpop.f32.mrb[17].mxu1  ;;  %v1692_v7 = vpop.f32.mrb[21].mxu0  ;;  %v2111_v2 = vld [vmem:[#allocation9 + $0x100] sm:$0xff] }
 0x5f7   :  { %v1726_v8 = vmul.f32 %v1722_v0, %v1651_v6  ;;  %v1728_v9 = vmul.f32 %v1724_v1, %v1692_v7  ;;  %v1653_v10 = vpop.f32.mrb[18].mxu1  ;;  %v1694_v12 = vpop.f32.mrb[22].mxu0  ;;  %v2115_v3 = vld [vmem:[#allocation9 + $0x120] sm:$0xff]  ;;  %v2116_v6 = vld [vmem:[#allocation9 + $0x128] sm:$0xff] }
 0x5f8   :  { %v1654_v13 = vpop.f32.mrb[19].mxu1  ;;  %v1695_v15 = vpop.f32.mrb[23].mxu0  ;;  %v1729_v17 = vpack.c.bf16 %v1725_v4, %v1725_v4  ;;  %v1731_v18 = vpack.c.bf16 %v1727_v5, %v1727_v5  ;;  %v2112_v4 = vld [vmem:[#allocation9 + $0x108] sm:$0xff]  ;;  %v3248_v5 = vcombine.high %v2111_v2, %v2115_v3  ;;  %v3247_v7 = vcombine.low %v2111_v2, %v2115_v3  ;;  %v2119_v10 = vld [vmem:[#allocation9 + $0x140] sm:$0xff]  ;;  %v2106_v2 = vld [vmem:[#allocation9 + $0xd8] sm:$0xff] }
 0x5f9   :  { %v1730_v16 = vpack.c.bf16 %v1726_v8, %v1726_v8  ;;  %v1732_v14 = vpack.c.bf16 %v1728_v9, %v1728_v9  ;;  %v3249_v8 = vcombine.low %v2112_v4, %v2116_v6  ;;  %v3250_v9 = vcombine.high %v2112_v4, %v2116_v6  ;;  %v2120_v12 = vld [vmem:[#allocation9 + $0x148] sm:$0xff]  ;;  %v2110_v3 = vld [vmem:[#allocation9 + $0xf8] sm:$0xff] }
 0x5fb   :  { %2021 = vmatprep.mubr.bf16.mxu1 %v1730_v16  ;;  %2061 = vmatprep.mubr.bf16.mxu0 %v1732_v14  ;;  %v2124_v16 = vld [vmem:[#allocation9 + $0x168] sm:$0xff]  ;;  %v2127_v14 = vld [vmem:[#allocation9 + $0x180] sm:$0xff] }
 0x5fc   :  { %2022 = vmatmul.mubr.bf16.vlgmr.msra.gmra.mrb[20].mxu1 %v1729_v17  ;;  %2062 = vmatmul.mubr.bf16.vlgmr.msra.gmra.mrb[24].mxu0 %v1731_v18  ;;  %v2131_v17 = vld [vmem:[#allocation9 + $0x1a0] sm:$0xff]  ;;  %v3257_v18 = vcombine.low %v2120_v12, %v2124_v16  ;;  %v3258_v19 = vcombine.high %v2120_v12, %v2124_v16  ;;  %v2121_v16 = vld [vmem:[#allocation9 + $0x150] sm:$0xff] }
 0x5fd   :  { %2495 = vmatprep.mubr.bf16.mxu1 %v3785_v11  ;;  %2536 = vmatprep.mubr.bf16.mxu0 %v3785_v11  ;;  %v3264_v20 = vcombine.high %v2127_v14, %v2131_v17  ;;  %v3263_v29 = vcombine.low %v2127_v14, %v2131_v17  ;;  %v2125_v14 = vld [vmem:[#allocation9 + $0x170] sm:$0xff]  ;;  %v2122_v17 = vld [vmem:[#allocation9 + $0x158] sm:$0xff] }
 0x5fe   :  { %2464 = vmatpush1.bf16.msra.mxu1 %v3215_v22  ;;  %2505 = vmatpush1.bf16.msra.mxu0 %v3217_v28  ;;  %v2132_v22 = vld [vmem:[#allocation9 + $0x1a8] sm:$0xff] }
 0x5ff   :  { %2465 = vmatprep.subr.bf16.mxu1 %v3224_v30  ;;  %2506 = vmatprep.subr.bf16.mxu0 %v3226_v34  ;;  %v3266_v24 = vcombine.high %v2128_v21, %v2132_v22  ;;  %v2140_v28 = vld [vmem:[#allocation9 + $0x1e8] sm:$0xff]  ;;  %v2081_v30 = vld [vmem:[#allocation9 + $0x10] sm:$0xff]  ;;  %v3265_v33 = vcombine.low %v2128_v21, %v2132_v22  ;;  %v3272_v34 = vcombine.high %v2135_v23, %v2139_v26 }
 0x600   :  { %v3219_v35 = vcombine.low %v2081_v30, %v2085_v31  ;;  %v3274_v47 = vcombine.high %v2136_v27, %v2140_v28  ;;  %v3260_v21 = vcombine.high %v2121_v16, %v2125_v14 }
 0x602   :  { %2466 = vmatpush1.bf16.msra.mxu1 %v3223_v37  ;;  %2507 = vmatpush1.bf16.msra.mxu0 %v3225_v38  ;;  %v3221_v37 = vcombine.low %v2082_v32, %v2086_v36  ;;  %v3271_v38 = vcombine.low %v2135_v23, %v2139_v26  ;;  %v2129_v23 = vld [vmem:[#allocation9 + $0x190] sm:$0xff]  ;;  %v2130_v26 = vld [vmem:[#allocation9 + $0x198] sm:$0xff] }
 0x603   :  { %2467 = vmatprep.subr.bf16.mxu1 %v3232_v40  ;;  %2508 = vmatprep.subr.bf16.mxu0 %v3234_v41  ;;  %v3273_v40 = vcombine.low %v2136_v27, %v2140_v28  ;;  %v3220_v41 = vcombine.high %v2081_v30, %v2085_v31  ;;  %v2134_v27 = vld [vmem:[#allocation9 + $0x1b8] sm:$0xff]  ;;  %v3259_v28 = vcombine.low %v2121_v16, %v2125_v14  ;;  %v2137_v32 = vld [vmem:[#allocation9 + $0x1d0] sm:$0xff] }
 0x604   :  { %v3270_v31 = vcombine.high %v2130_v26, %v2134_v27 }
 0x606   :  { %2468 = vmatpush1.bf16.msra.mxu1 %v3231_v45  ;;  %2509 = vmatpush1.bf16.msra.mxu0 %v3233_v46  ;;  %v2089_v45 = vld [vmem:[#allocation9 + $0x50] sm:$0xff] }
 0x607   :  { %2469 = vmatprep.subr.bf16.mxu1 %v3240_v48  ;;  %2510 = vmatprep.subr.bf16.mxu0 %v3242_v49  ;;  %v2093_v48 = vld [vmem:[#allocation9 + $0x70] sm:$0xff]  ;;  %v2090_v49 = vld [vmem:[#allocation9 + $0x58] sm:$0xff] }
 0x60a   :  { %2470 = vmatpush1.bf16.msra.mxu1 %v3239_v50  ;;  %2511 = vmatpush1.bf16.msra.mxu0 %v3241_v51  ;;  %v2094_v50 = vld [vmem:[#allocation9 + $0x78] sm:$0xff] }
 0x60b   :  { %2471 = vmatprep.subr.bf16.mxu1 %v3248_v5  ;;  %2512 = vmatprep.subr.bf16.mxu0 %v3250_v9  ;;  %v2117_v9 = vld [vmem:[#allocation9 + $0x130] sm:$0xff] }
 0x60e   :  { %2472 = vmatpush1.bf16.msra.mxu1 %v3247_v7  ;;  %2513 = vmatpush1.bf16.msra.mxu0 %v3249_v8  ;;  %v3246_v7 = vcombine.high %v2106_v2, %v2110_v3  ;;  %v2113_v8 = vld [vmem:[#allocation9 + $0x110] sm:$0xff] }
 0x60f   :  { %2514 = vmatprep.subr.bf16.mxu0 %v3258_v19  ;;  %v3251_v19 = vcombine.low %v2113_v8, %v2117_v9 }
 0x612   :  { %2515 = vmatpush1.bf16.msra.mxu0 %v3257_v18  ;;  %v2126_v18 = vld [vmem:[#allocation9 + $0x178] sm:$0xff] }
 0x613   :  { %2516 = vmatprep.subr.bf16.mxu0 %v3266_v24  ;;  %v3262_v22 = vcombine.high %v2122_v17, %v2126_v18  ;;  %v2133_v24 = vld [vmem:[#allocation9 + $0x1b0] sm:$0xff] }
 0x614   :  { %v3268_v30 = vcombine.high %v2129_v23, %v2133_v24  ;;  %v3267_v36 = vcombine.low %v2129_v23, %v2133_v24 }
 0x616   :  { %2517 = vmatpush1.bf16.msra.mxu0 %v3265_v33  ;;  %v2141_v33 = vld [vmem:[#allocation9 + $0x1f0] sm:$0xff] }
 0x617   :  { %2518 = vmatprep.subr.bf16.mxu0 %v3274_v47  ;;  %v3269_v47 = vcombine.low %v2130_v26, %v2134_v27 }
 0x61a   :  { %2519 = vmatpush1.bf16.msra.mxu0 %v3273_v40  ;;  %v3275_v40 = vcombine.low %v2137_v32, %v2141_v33 }
 0x61b   :  { %2586 = vmatprep.subr.bf16.mxu0 %v3222_v39  ;;  %v3545_v39 = vld [vmem:[#allocation10 + $0x40] sm:$0xff]  }
 0x6cf   :  { %v3380_v52 = vpop.f32.mrb[20].mxu1  ;;  %v3402_v53 = vpop.f32.mrb[24].mxu0 }
 0x6d0   :  { %v3381_v54 = vpop.f32.mrb[21].mxu1  ;;  %v3403_v55 = vpop.f32.mrb[25].mxu0 }
 0x6d1   :  { %v3382_v56 = vadd.f32 %v3381_v54, %v3380_v52  ;;  %v3404_v57 = vadd.f32 %v3403_v55, %v3402_v53  ;;  %v3383_v58 = vpop.f32.mrb[22].mxu1  ;;  %v3405_v59 = vpop.f32.mrb[26].mxu0  ;;  %v3228_v53 = vcombine.high %v2089_v45, %v2093_v48  ;;  %v3230_v54 = vcombine.high %v2090_v49, %v2094_v50  ;;  %v2097_v55 = vld [vmem:[#allocation9 + $0x90] sm:$0xff] }
 0x6d2   :  { %v3384_v60 = vpop.f32.mrb[23].mxu1  ;;  %v3406_v61 = vpop.f32.mrb[27].mxu0  ;;  %v2102_v58 = vld [vmem:[#allocation9 + $0xb8] sm:$0xff]  ;;  %v3227_v59 = vcombine.low %v2089_v45, %v2093_v48  ;;  %v3549_v45 = vld [vmem:[#allocation10 + $0x48] sm:$0xff]  }
 0x6d3   :  { %v2064_v62 = vadd.f32 %v3404_v57, %v3382_v56  ;;  %v2101_v56 = vld [vmem:[#allocation9 + $0xb0] sm:$0xff]  ;;  %v2098_v57 = vld [vmem:[#allocation9 + $0x98] sm:$0xff]  ;;  %v3229_v60 = vcombine.low %v2090_v49, %v2094_v50  ;;  %v3551_v48 = vld [vmem:[#allocation10 + $0x8] sm:$0xff]  }
 0x6d4   :  { %v3236_v61 = vcombine.high %v2097_v55, %v2101_v56  ;;  %v3235_v4 = vcombine.low %v2097_v55, %v2101_v56  ;;  %v3237_v5 = vcombine.low %v2098_v57, %v2102_v58  ;;  %v3552_v49 = vld [vmem:[#allocation10 + $0x88] sm:$0xff]   ;;  %v3553_v50 = vld [vmem:[#allocation10 + $0x50] sm:$0xff]   ;;  %v3558_v55 = vld [vmem:[#allocation10 + $0xd8] sm:$0xff]  }
 0x6d5   :  { %v3980_v63 = vadd.f32 %v2064_v62, %v3963_v25  ;;  %v2123_v25 = vld [vmem:[#allocation9 + $0x160] sm:$0xff]  ;;  %v3238_v62 = vcombine.high %v2098_v57, %v2102_v58  ;;  %v3559_v56 = vld [vmem:[#allocation10 + $0x18] sm:$0xff]  }
 0x6d6   :  { %v3255_v13 = vcombine.low %v2119_v10, %v2123_v25  ;;  %v3256_v15 = vcombine.high %v2119_v10, %v2123_v25  ;;  %v2114_v10 = vld [vmem:[#allocation9 + $0x118] sm:$0xff]  ;;  %v3561_v58 = vld [vmem:[#allocation10 + $0x60] sm:$0xff]  }
 0x6d7   :  { %v2070_v0 = vmul.f32 %v3980_v63, %v3980_v63  ;;  %v2118_v25 = vld [vmem:[#allocation9 + $0x138] sm:$0xff] }
 0x6d8   :  { %2473 = vmatprep.subr.bf16.mxu1 %v3256_v15  ;;  %v3252_v15 = vcombine.high %v2113_v8, %v2117_v9  ;;  %v3560_v57 = vld [vmem:[#allocation10 + $0x98] sm:$0xff]  }
 0x6d9   :  { %v2071_v1 = vsel %vm209_vm3, %v2070_v0, 0.0  ;;  %2474 = vmatpush1.bf16.msra.mxu1 %v3255_v13  ;;  %v2105_v0 = vld [vmem:[#allocation9 + $0xd0] sm:$0xff]  ;;  %v3245_v13 = vcombine.low %v2106_v2, %v2110_v3  ;;  %v3568_v2 = vld [vmem:[#allocation10 + $0xa8] sm:$0xff]   ;;  %v3574_v8 = vld [vmem:[#allocation10 + $0xf8] sm:$0xff]  }
 0x6da   :  { %2072 = vadd.xlane.f32.xlu1 %v2071_v1  ;;  %2475 = vmatprep.subr.bf16.mxu1 %v3264_v20  ;;  %v2109_v1 = vld [vmem:[#allocation9 + $0xf0] sm:$0xff]  ;;  %v3253_v20 = vcombine.low %v2114_v10, %v2118_v25  ;;  %v3575_v9 = vld [vmem:[#allocation10 + $0x38] sm:$0xff]  }
 0x6db   :  { %v3244_v6 = vcombine.high %v2105_v0, %v2109_v1  ;;  %v3243_v12 = vcombine.low %v2105_v0, %v2109_v1  ;;  %v3566_v0 = vld [vmem:[#allocation10 + $0xe8] sm:$0xff]   ;;  %v3569_v3 = vld [vmem:[#allocation10 + $0x70] sm:$0xff]  }
 0x6dc   :  { %v3567_v1 = vld [vmem:[#allocation10 + $0x28] sm:$0xff]  }
 0x6dd   :  { %2476 = vmatpush1.bf16.msra.mxu1 %v3263_v29  ;;  %v3261_v29 = vcombine.low %v2122_v17, %v2126_v18 }
 0x6de   :  { %2477 = vmatprep.subr.bf16.mxu1 %v3272_v34  ;;  %v2138_v34 = vld [vmem:[#allocation9 + $0x1d8] sm:$0xff] }
 0x6e1   :  { %2478 = vmatpush1.bf16.msra.mxu1 %v3271_v38 }
 0x6e2   :  { %2545 = vmatprep.subr.bf16.mxu1 %v3220_v41 }
 0x767   :  { %v2073_v42 = vpop.xlane.xlu1 %2072 }
 0x768   :  { %v2074_v43 = vmul.f32 0.0078125, %v2073_v42  ;;  %v3546_v42 = vld [vmem:[#allocation10 + $0xc0] sm:$0xff]  }
 0x76a   :  { %v2075_v44 = vadd.f32 1e-06, %v2074_v43  ;;  %v3547_v43 = vld [vmem:[#allocation10] sm:$0xff]  }
 0x76c   :  { %3615 = vrsqrt.f32 %v2075_v44  ;;  %v3548_v44 = vld [vmem:[#allocation10 + $0x80] sm:$0xff]  }
 0x776   :  { %v3616_v46 = vpop.eup %3615 }
 0x777   :  { %v2077_v51 = vmul.f32 %v3616_v46, %v3980_v63  ;;  %v3550_v46 = vld [vmem:[#allocation10 + $0xc8] sm:$0xff]  }
 0x779   :  { %v3986_v52 = vpack.c.bf16 %v2077_v51, %v2077_v51  ;;  %v3554_v51 = vld [vmem:[#allocation10 + $0xd0] sm:$0xff]  }
 0x77b   :  { %2496 = vmatmul.mubr.bf16.vlgmr.msra.gmra.mrb[24].mxu1 %v3986_v52  ;;  %2537 = vmatmul.mubr.bf16.vlgmr.msra.gmra.mrb[28].mxu0 %v3986_v52 }
 0x77c   :  { %2546 = vmatpush1.bf16.msra.mxu1 %v3219_v35  ;;  %2587 = vmatpush1.bf16.msra.mxu0 %v3221_v37  ;;  %v2142_v35 = vld [vmem:[#allocation9 + $0x1f8] sm:$0xff]  ;;  %v3276_v37 = vcombine.high %v2137_v32, %v2141_v33 }
 0x77d   :  { %2547 = vmatprep.subr.bf16.mxu1 %v3228_v53  ;;  %2588 = vmatprep.subr.bf16.mxu0 %v3230_v54  ;;  %v3278_v38 = vcombine.high %v2138_v34, %v2142_v35  ;;  %v3277_v41 = vcombine.low %v2138_v34, %v2142_v35  ;;  %v3555_v53 = vld [vmem:[#allocation10 + $0x10] sm:$0xff]   ;;  %v3557_v54 = vld [vmem:[#allocation10 + $0x58] sm:$0xff]  }
 0x77e   :  { %2577 = vmatprep.mubr.bf16.mxu1 %v3785_v11  ;;  %2618 = vmatprep.mubr.bf16.mxu0 %v3785_v11  ;;  %v3254_v11 = vcombine.high %v2114_v10, %v2118_v25  ;;  %v3576_v10 = vld [vmem:[#allocation10 + $0xb8] sm:$0xff]  }
 0x780   :  { %2548 = vmatpush1.bf16.msra.mxu1 %v3227_v59  ;;  %2589 = vmatpush1.bf16.msra.mxu0 %v3229_v60  ;;  %v3562_v59 = vld [vmem:[#allocation10 + $0xe0] sm:$0xff]  }
 0x781   :  { %2549 = vmatprep.subr.bf16.mxu1 %v3236_v61  ;;  %2590 = vmatprep.subr.bf16.mxu0 %v3238_v62  ;;  %v3563_v60 = vld [vmem:[#allocation10 + $0x20] sm:$0xff]   ;;  %v3565_v62 = vld [vmem:[#allocation10 + $0x68] sm:$0xff]  }
 0x782   :  { %v3564_v61 = vld [vmem:[#allocation10 + $0xa0] sm:$0xff]  }
 0x784   :  { %2550 = vmatpush1.bf16.msra.mxu1 %v3235_v4  ;;  %2591 = vmatpush1.bf16.msra.mxu0 %v3237_v5  ;;  %v3570_v4 = vld [vmem:[#allocation10 + $0xf0] sm:$0xff]  }
 0x785   :  { %2551 = vmatprep.subr.bf16.mxu1 %v3244_v6  ;;  %2592 = vmatprep.subr.bf16.mxu0 %v3246_v7  ;;  %v3571_v5 = vld [vmem:[#allocation10 + $0x30] sm:$0xff]   ;;  %v3573_v7 = vld [vmem:[#allocation10 + $0x78] sm:$0xff]  }
 0x786   :  { %v3572_v6 = vld [vmem:[#allocation10 + $0xb0] sm:$0xff]  }
 0x788   :  { %2552 = vmatpush1.bf16.msra.mxu1 %v3243_v12  ;;  %2593 = vmatpush1.bf16.msra.mxu0 %v3245_v13 }
 0x789   :  { %2553 = vmatprep.subr.bf16.mxu1 %v3252_v15  ;;  %2594 = vmatprep.subr.bf16.mxu0 %v3254_v11 }
 0x78c   :  { %2554 = vmatpush1.bf16.msra.mxu1 %v3251_v19  ;;  %2595 = vmatpush1.bf16.msra.mxu0 %v3253_v20 }
 0x78d   :  { %2555 = vmatprep.subr.bf16.mxu1 %v3260_v21  ;;  %2596 = vmatprep.subr.bf16.mxu0 %v3262_v22 }
 0x790   :  { %2556 = vmatpush1.bf16.msra.mxu1 %v3259_v28  ;;  %2597 = vmatpush1.bf16.msra.mxu0 %v3261_v29 }
 0x791   :  { %2557 = vmatprep.subr.bf16.mxu1 %v3268_v30  ;;  %2598 = vmatprep.subr.bf16.mxu0 %v3270_v31 }
 0x794   :  { %2558 = vmatpush1.bf16.msra.mxu1 %v3267_v36  ;;  %2599 = vmatpush1.bf16.msra.mxu0 %v3269_v47 }
 0x795   :  { %2559 = vmatprep.subr.bf16.mxu1 %v3276_v37  ;;  %2600 = vmatprep.subr.bf16.mxu0 %v3278_v38 }
 0x798   :  { %2560 = vmatpush1.bf16.msra.mxu1 %v3275_v40  ;;  %2601 = vmatpush1.bf16.msra.mxu0 %v3277_v41 }
 0x799   :  { %3408 = vmatprep.subr.bf16.mxu1 %v3545_v39  ;;  %3430 = vmatprep.subr.bf16.mxu0 %v3546_v42 }
 0x79b   :  { %2578 = vmatmul.mubr.bf16.vlgmr.msra.gmra.mrb[28].mxu1 %v3986_v52  ;;  %2619 = vmatmul.mubr.bf16.vlgmr.msra.gmra.mrb[32].mxu0 %v3986_v52  ;;  %v3556_v52 = vld [vmem:[#allocation10 + $0x90] sm:$0xff]  }
 0x79c   :  { %3409 = vmatpush3.bf16.msra.mxu1 %v3547_v43  ;;  %3431 = vmatpush3.bf16.msra.mxu0 %v3548_v44 }
 0x79d   :  { %3410 = vmatprep.subr.bf16.mxu1 %v3549_v45  ;;  %3432 = vmatprep.subr.bf16.mxu0 %v3550_v46 }
 0x7a0   :  { %3411 = vmatpush3.bf16.msra.mxu1 %v3551_v48  ;;  %3433 = vmatpush3.bf16.msra.mxu0 %v3552_v49 }
 0x7a1   :  { %3412 = vmatprep.subr.bf16.mxu1 %v3553_v50  ;;  %3434 = vmatprep.subr.bf16.mxu0 %v3554_v51 }
 0x7a4   :  { %3413 = vmatpush3.bf16.msra.mxu1 %v3555_v53  ;;  %3435 = vmatpush3.bf16.msra.mxu0 %v3556_v52 }
 0x7a5   :  { %3414 = vmatprep.subr.bf16.mxu1 %v3557_v54  ;;  %3436 = vmatprep.subr.bf16.mxu0 %v3558_v55 }
 0x7a8   :  { %3415 = vmatpush3.bf16.msra.mxu1 %v3559_v56  ;;  %3437 = vmatpush3.bf16.msra.mxu0 %v3560_v57 }
 0x7a9   :  { %3416 = vmatprep.subr.bf16.mxu1 %v3561_v58  ;;  %3438 = vmatprep.subr.bf16.mxu0 %v3562_v59 }
 0x7ac   :  { %3417 = vmatpush3.bf16.msra.mxu1 %v3563_v60  ;;  %3439 = vmatpush3.bf16.msra.mxu0 %v3564_v61 }
 0x7ad   :  { %3418 = vmatprep.subr.bf16.mxu1 %v3565_v62  ;;  %3440 = vmatprep.subr.bf16.mxu0 %v3566_v0 }
 0x7b0   :  { %3419 = vmatpush3.bf16.msra.mxu1 %v3567_v1  ;;  %3441 = vmatpush3.bf16.msra.mxu0 %v3568_v2 }
 0x7b1   :  { %3420 = vmatprep.subr.bf16.mxu1 %v3569_v3  ;;  %3442 = vmatprep.subr.bf16.mxu0 %v3570_v4 }
 0x7b4   :  { %3421 = vmatpush3.bf16.msra.mxu1 %v3571_v5  ;;  %3443 = vmatpush3.bf16.msra.mxu0 %v3572_v6 }
 0x7b5   :  { %3422 = vmatprep.subr.bf16.mxu1 %v3573_v7  ;;  %3444 = vmatprep.subr.bf16.mxu0 %v3574_v8 }
 0x7b8   :  { %3423 = vmatpush3.bf16.msra.mxu1 %v3575_v9  ;;  %3445 = vmatpush3.bf16.msra.mxu0 %v3576_v10 }
 0x84e   :  { %v2497_v25 = vpop.f32.mrb[24].mxu1  ;;  %v2538_v12 = vpop.f32.mrb[28].mxu0 }
 0x84f   :  { %v3279_v13 = vmul.f32 -1.442695, %v2497_v25  ;;  %v3281_v15 = vmul.f32 -1.442695, %v2538_v12  ;;  %v2499_v11 = vpop.f32.mrb[25].mxu1  ;;  %v2540_v16 = vpop.f32.mrb[29].mxu0 }
 0x850   :  { %v3280_v14 = vmul.f32 -1.442695, %v2499_v11  ;;  %v3282_v17 = vmul.f32 -1.442695, %v2540_v16  ;;  %v2501_v18 = vpop.f32.mrb[26].mxu1  ;;  %v2542_v19 = vpop.f32.mrb[30].mxu0 }
 0x851   :  { %3617 = vpow2.f32 %v3279_v13  ;;  %v2502_v20 = vpop.f32.mrb[27].mxu1  ;;  %v2543_v21 = vpop.f32.mrb[31].mxu0 }
 0x852   :  { %3619 = vpow2.f32 %v3281_v15 }
 0x853   :  { %3621 = vpow2.f32 %v3280_v14 }
 0x854   :  { %3623 = vpow2.f32 %v3282_v17 }
 0x85b   :  { %v3618_v22 = vpop.eup %3617 }
 0x85c   :  { %v3620_v23 = vpop.eup %3619  ;;  %v2639_v24 = vadd.f32 1.0, %v3618_v22 }
 0x85d   :  { %v3622_v26 = vpop.eup %3621  ;;  %v2641_v27 = vadd.f32 1.0, %v3620_v23 }
 0x85e   :  { %v3624_v28 = vpop.eup %3623  ;;  %3625 = vrcp.f32 %v2639_v24  ;;  %v2640_v29 = vadd.f32 1.0, %v3622_v26 }
 0x85f   :  { %3627 = vrcp.f32 %v2641_v27  ;;  %v2642_v30 = vadd.f32 1.0, %v3624_v28 }
 0x860   :  { %3629 = vrcp.f32 %v2640_v29 }
 0x861   :  { %3631 = vrcp.f32 %v2642_v30 }
 0x868   :  { %v3626_v31 = vpop.eup %3625 }
 0x869   :  { %v3628_v32 = vpop.eup %3627  ;;  %v2651_v35 = vmul.f32 %v3626_v31, %v2497_v25 }
 0x86a   :  { %v3630_v33 = vpop.eup %3629  ;;  %v2653_v36 = vmul.f32 %v3628_v32, %v2538_v12 }
 0x86b   :  { %v3632_v34 = vpop.eup %3631  ;;  %v2652_v47 = vmul.f32 %v3630_v33, %v2499_v11 }
 0x86c   :  { %v2654_v37 = vmul.f32 %v3632_v34, %v2540_v16 }
 0x86e   :  { %v2579_v38 = vpop.f32.mrb[28].mxu1  ;;  %v2620_v40 = vpop.f32.mrb[32].mxu0 }
 0x86f   :  { %v2655_v41 = vmul.f32 %v2651_v35, %v2579_v38  ;;  %v2657_v39 = vmul.f32 %v2653_v36, %v2620_v40  ;;  %v2581_v42 = vpop.f32.mrb[29].mxu1  ;;  %v2622_v43 = vpop.f32.mrb[33].mxu0 }
 0x870   :  { %v2656_v44 = vmul.f32 %v2652_v47, %v2581_v42  ;;  %v2658_v45 = vmul.f32 %v2654_v37, %v2622_v43  ;;  %v2583_v46 = vpop.f32.mrb[30].mxu1  ;;  %v2624_v48 = vpop.f32.mrb[34].mxu0 }
 0x871   :  { %v2584_v49 = vpop.f32.mrb[31].mxu1  ;;  %v2625_v50 = vpop.f32.mrb[35].mxu0  ;;  %v2659_v52 = vpack.c.bf16 %v2655_v41, %v2655_v41  ;;  %v2661_v54 = vpack.c.bf16 %v2657_v39, %v2657_v39 }
 0x872   :  { %v2660_v51 = vpack.c.bf16 %v2656_v44, %v2656_v44  ;;  %v2662_v53 = vpack.c.bf16 %v2658_v45, %v2658_v45 }
 0x874   :  { %2951 = vmatprep.mubr.bf16.mxu1 %v2660_v51  ;;  %2991 = vmatprep.mubr.bf16.mxu0 %v2662_v53 }
 0x875   :  { %2952 = vmatmul.mubr.bf16.vlgmr.msra.gmra.mrb[32].mxu1 %v2659_v52  ;;  %2992 = vmatmul.mubr.bf16.vlgmr.msra.gmra.mrb[36].mxu0 %v2661_v54 }
 0x948   :  { %v3424_v55 = vpop.f32.mrb[32].mxu1  ;;  %v3446_v56 = vpop.f32.mrb[36].mxu0 }
 0x949   :  { %v3425_v57 = vpop.f32.mrb[33].mxu1  ;;  %v3447_v58 = vpop.f32.mrb[37].mxu0 }
 0x94a   :  { %v3426_v59 = vadd.f32 %v3425_v57, %v3424_v55  ;;  %v3448_v60 = vadd.f32 %v3447_v58, %v3446_v56  ;;  %v3427_v61 = vpop.f32.mrb[34].mxu1  ;;  %v3449_v62 = vpop.f32.mrb[38].mxu0 }
 0x94b   :  { %v3428_v0 = vpop.f32.mrb[35].mxu1  ;;  %v3450_v1 = vpop.f32.mrb[39].mxu0 }
 0x94c   :  { %v2994_v2 = vadd.f32 %v3448_v60, %v3426_v59 }
 0x94e   :  { %v2999_v3 = vadd.f32 %v2994_v2, %v3980_v63 }
 0x950   :  { %3000 = vst [vmem:[%s4007_s9] sm:$0x3] %v2999_v3 }
 0x951   :  { %3005 = vsyncpa [#allocation3], 1 }
 0x952   :  { %3006 = vsyncpa [#allocation5], 1 }
 0x953   :  { %3007 = vsyncpa [#allocation8], 1 }
 0x954   :  { %3008 = vsyncpa [#allocation11], 1 }

</bundles_post_ra>
